<compile_context>
chip_gen: v5e
topology: v5e:2x2
jax: 0.10.0
libtpu: 0.0.40
codegen_flags: <defaults>
</compile_context>

<pallas_src>
import jax
import jax.numpy as jnp
from jax import lax
from jax.experimental import pallas as pl
from jax.experimental.pallas import tpu as pltpu

KERNEL_SET = (2, 3, 6, 7)
MAX_KERN = KERNEL_SET[-1]          # 7 taps in the fused conv
RF = MAX_KERN - 1                  # receptive-field minus one (6)
CHUNK_LANES = 512                  # in-kernel sub-chunk width (bounds live f32 acc)


def _fuse_inception_params(weights, biases):
    """Fuse the 4 per-kernel Conv2d params into one 7-tap dilated conv.

    weights[ki]: (cout_per, cin, 1, kern), biases[ki]: (cout_per,)
    Returns W: (7, cout, cin), b: (cout,) with kernel k's tap j at index 7-k+j.
    """
    blocks = []
    for w, kern in zip(weights, KERNEL_SET):
        w = w[:, :, 0, :]                                   # (cout_per, cin, kern)
        w = jnp.pad(w, ((0, 0), (0, 0), (MAX_KERN - kern, 0)))
        blocks.append(w)
    W = jnp.concatenate(blocks, axis=0)                     # (cout, cin, 7)
    W = jnp.transpose(W, (2, 0, 1)).astype(jnp.float32)     # (7, cout, cin)
    b = jnp.concatenate(biases).astype(jnp.float32)         # (cout,)
    return W, b


def _vmem_capacity_bytes():
    """Physical VMEM of the local TPU generation (fallback: v7x-safe 64 MiB)."""
    try:
        cap = int(getattr(pltpu.get_tpu_info(), "vmem_capacity_bytes", 0))
        if cap > 0:
            return cap
    except Exception:
        pass
    return 64 * 1024 * 1024


def _pick_v_tile(V, L, L_out, C_in, cout, budget_bytes, prefer_split):
    """Pick a node-tile size.

    Constraints: V_TILE divides V and both the input lane width (V_TILE*L) and the
    compacted output lane width (V_TILE*L_out) are 128-multiples, OR V_TILE == V
    (full-extent blocks are always legal).  Preference: ~512..8192 lanes (amortize
    the ~0.35 us/step overhead without blowing up in-kernel intermediates), fit the
    double-buffered VMEM budget, and -- when prefer_split -- leave >= 2 grid points
    along the node axis for v7x's two TensorCores.
    """
    def aligned(vt):
        return vt == V or ((vt * L) % 128 == 0 and (vt * L_out) % 128 == 0)

    def buf_bytes(vt):
        # double-buffered f32 input block + bf16 compacted output block
        return 2 * (C_in * vt * L * 4 + cout * vt * L_out * 2)

    cands = [vt for vt in range(1, V + 1)
             if V % vt == 0 and aligned(vt) and buf_bytes(vt) <= budget_bytes]
    if not cands:                      # budget too tight -> fall back to alignment only
        cands = [vt for vt in range(1, V + 1) if V % vt == 0 and aligned(vt)]

    def score(vt):
        lanes = vt * L
        in_range = 512 <= lanes <= 8192
        split_ok = (V // vt) >= 2 if prefer_split else True
        return (in_range, split_ok, -abs(lanes - 4096))

    return max(cands, key=score)


def _build_tasks(V_TILE, L, L_out, rfd, chunk):
    """Static in-kernel work plan.

    Each task is (x0, xlen, writes): load x[:, x0:x0+xlen] (flattened node*time
    lanes), compute acc over xlen - rfd valid columns, then for each
    (o0, a0, w) in writes store acc[:, a0:a0+w] to out[:, o0:o0+w].
    Small L  -> group several whole nodes per task (~`chunk` lanes).
    Large L  -> per node, split the L_out output columns into ~`chunk`-lane pieces
                (each piece re-reads its rfd-column halo from the input block).
    """
    tasks = []
    if L <= chunk:
        npg = max(1, chunk // L)                      # nodes per group
        v0 = 0
        while v0 < V_TILE:
            gn = min(npg, V_TILE - v0)
            writes = [((v0 + i) * L_out, i * L, L_out) for i in range(gn)]
            tasks.append((v0 * L, gn * L, writes))
            v0 += gn
    else:
        for v in range(V_TILE):
            t0 = 0
            while t0 < L_out:
                tl = min(chunk, L_out - t0)
                tasks.append((v * L + t0, tl + rfd, [(v * L_out + t0, 0, tl)]))
                t0 += tl
    return tasks


def _make_kernel(cout, dil, tasks):
    C2 = 2 * cout
    rfd = RF * dil

    def kernel(x_ref, w_ref, b_ref, o_ref):
        w = w_ref[...]                                       # (7, C2, C_in) bf16
        bias = b_ref[...]                                    # (C2, 1) f32
        for (x0, xlen, writes) in tasks:                     # static unroll, ~512-lane chunks
            nv = xlen - rfd                                  # valid acc columns
            xg = x_ref[0, :, x0:x0 + xlen].astype(jnp.bfloat16)   # (C_in, xlen)
            acc = jnp.broadcast_to(bias, (C2, nv))           # bias folded into acc init (f32)
            for j in range(MAX_KERN):                        # 7 taps, bf16 MXU, f32 accumulate
                acc = acc + jnp.dot(w[j], xg[:, j * dil:j * dil + nv],
                                    preferred_element_type=jnp.float32)
            gate = jnp.maximum(acc[:cout], 0.0)              # ReLU branch (VPU)
            filt = jnp.tanh(acc[cout:])                      # tanh branch (EUP)
            res = (gate * filt).astype(o_ref.dtype)          # (cout, nv) bf16
            # Compacted per-node writes: only the L_out valid columns of each node
            # are stored; together they cover every lane of the output block, so
            # nothing stale is ever DMA'd to HBM.
            for (o0, a0, wd) in writes:
                o_ref[0, :, o0:o0 + wd] = res[:, a0:a0 + wd]

    return kernel


def temporal_convolution(x, gate_weights, gate_biases, filt_weights, filt_biases,
                         dilation_factor=2, out_dtype=jnp.bfloat16):
    """x: (N, C_in, V, L); *_weights[ki]: (cout_per, C_in, 1, kern); *_biases[ki]: (cout_per,).

    Returns gate*filter of shape (N, cout, V, L - 6*dilation_factor) in `out_dtype`.
    """
    N, C_in, V, L = x.shape
    dil = int(dilation_factor)
    L_out = L - RF * dil
    assert L_out > 0, "sequence too short for the (1,7)-dilated kernel"

    cout_per = gate_weights[0].shape[0]
    cout = cout_per * len(KERNEL_SET)
    C2 = 2 * cout

    # Fuse both inception branches into one (7, 2*cout, C_in) bf16 weight + f32 bias.
    Wg, bg = _fuse_inception_params(gate_weights, gate_biases)
    Wf, bf_ = _fuse_inception_params(filt_weights, filt_biases)
    W = jnp.concatenate([Wg, Wf], axis=1).astype(jnp.bfloat16)   # (7, C2, C_in)
    b = jnp.concatenate([bg, bf_]).reshape(C2, 1).astype(jnp.float32)

    # Keep x in its source dtype (no standalone host-side cast pass); the kernel
    # casts each chunk to bf16 right before the MXU.  (node, time) -> one lane axis.
    x_flat = x.reshape(N, C_in, V * L)

    # Generation-aware VMEM budget: ~48 MiB usable on v7x (64 MiB phys),
    # ~96 MiB on v5e/v6e (128 MiB phys).
    vmem_cap = min((_vmem_capacity_bytes() * 3) // 4, 96 * 1024 * 1024)
    V_TILE = _pick_v_tile(V, L, L_out, C_in, cout,
                          budget_bytes=vmem_cap // 2, prefer_split=(N == 1))
    n_vt = V // V_TILE
    T = V_TILE * L                     # input lanes per tile (128-mult or full extent)
    T_out = V_TILE * L_out             # compacted output lanes per tile

    tasks = _build_tasks(V_TILE, L, L_out, RF * dil, CHUNK_LANES)

    out = pl.pallas_call(
        _make_kernel(cout=cout, dil=dil, tasks=tasks),
        out_shape=jax.ShapeDtypeStruct((N, cout, V * L_out), out_dtype),
        grid_spec=pltpu.PrefetchScalarGridSpec(
            num_scalar_prefetch=0,
            grid=(N, n_vt),
            in_specs=[
                pl.BlockSpec((1, C_in, T), lambda n, vt: (n, 0, vt)),
                pl.BlockSpec((MAX_KERN, C2, C_in), lambda n, vt: (0, 0, 0)),
                pl.BlockSpec((C2, 1), lambda n, vt: (0, 0)),
            ],
            out_specs=pl.BlockSpec((1, cout, T_out), lambda n, vt: (n, 0, vt)),
        ),
        compiler_params=pltpu.CompilerParams(
            dimension_semantics=("parallel", "parallel"),
            vmem_limit_bytes=vmem_cap,
        ),
    )(x_flat, W, b)

    # Metadata-only reshape of the already-compacted result (no extra HBM pass).
    return out.reshape(N, cout, V, L_out)


# ----------------------------- pure-JAX reference -----------------------------

def _dilated_inception_ref(x, weights, biases, dil):
    outs = []
    for w, bias in zip(weights, biases):
        y = lax.conv_general_dilated(
            x, w, window_strides=(1, 1), padding="VALID",
            rhs_dilation=(1, dil),
            dimension_numbers=("NCHW", "OIHW", "NCHW"))
        outs.append(y + bias[None, :, None, None])
    L_out = outs[-1].shape[-1]
    outs = [o[..., -L_out:] for o in outs]
    return jnp.concatenate(outs, axis=1)


def temporal_convolution_ref(x, gw, gb, fw, fb, dil):
    gate = jax.nn.relu(_dilated_inception_ref(x, gw, gb, dil))
    filt = jnp.tanh(_dilated_inception_ref(x, fw, fb, dil))
    return gate * filt


if __name__ == "__main__":
    # Small shapes consistent with the module: NCHW, H = nodes, W = seq len.
    N, C_in, V, L = 2, 4, 16, 64
    C_out, dil = 32, 2
    cout_per = C_out // len(KERNEL_SET)

    keys = jax.random.split(jax.random.PRNGKey(0), 1 + 4 * len(KERNEL_SET))
    x = jax.random.normal(keys[0], (N, C_in, V, L), dtype=jnp.float32)

    gw, gb, fw, fb = [], [], [], []
    idx = 1
    for kern in KERNEL_SET:
        gw.append(0.1 * jax.random.normal(keys[idx], (cout_per, C_in, 1, kern), jnp.float32)); idx += 1
        gb.append(0.1 * jax.random.normal(keys[idx], (cout_per,), jnp.float32)); idx += 1
        fw.append(0.1 * jax.random.normal(keys[idx], (cout_per, C_in, 1, kern), jnp.float32)); idx += 1
        fb.append(0.1 * jax.random.normal(keys[idx], (cout_per,), jnp.float32)); idx += 1

    out = temporal_convolution(x, gw, gb, fw, fb, dil)
    out = jax.block_until_ready(out)

    ref = temporal_convolution_ref(x, gw, gb, fw, fb, dil)
    assert out.shape == (N, C_out, V, L - RF * dil), out.shape
    assert out.dtype == jnp.bfloat16, out.dtype
    out_f32 = out.astype(jnp.float32)
    # Tolerance accounts for the deliberate bf16 x/W operands and bf16 output.
    assert jnp.allclose(out_f32, ref, atol=5e-2, rtol=5e-2), (
        float(jnp.max(jnp.abs(out_f32 - ref))))

    print("KERNEL_OK")
</pallas_src>

<mosaic_0001>
module attributes {stable_mosaic.version = 11 : i64} {
  func.func @kernel(%arg0: i32, %arg1: i32, %arg2: memref<1x4x1024xf32, #tpu.memory_space<vmem>>, %arg3: memref<7x64x4xbf16, #tpu.memory_space<vmem>>, %arg4: memref<64x1xf32, #tpu.memory_space<vmem>>, %arg5: memref<1x32x832xbf16, #tpu.memory_space<vmem>>) attributes {dimension_semantics = [#tpu.dimension_semantics<parallel>, #tpu.dimension_semantics<parallel>], iteration_bounds = array<i64: 2, 1>, scalar_prefetch = 0 : i64, scratch_operands = 0 : i64, tpu.core_type = #tpu.core_type<tc>, window_params = [{transform_indices = @transform_0, window_bounds = array<i64: 1, 4, 1024>}, {pipeline_mode = #tpu.pipeline_mode<synchronous>, transform_indices = @transform_1, window_bounds = array<i64: 7, 64, 4>}, {pipeline_mode = #tpu.pipeline_mode<synchronous>, transform_indices = @transform_2, window_bounds = array<i64: 64, 1>}, {transform_indices = @transform_3, window_bounds = array<i64: 1, 32, 832>}]} {
    %c0 = arith.constant 0 : index
    %c0_0 = arith.constant 0 : index
    %c0_1 = arith.constant 0 : index
    %0 = vector.load %arg3[%c0, %c0_0, %c0_1] : memref<7x64x4xbf16, #tpu.memory_space<vmem>>, vector<7x64x4xbf16>
    %c0_2 = arith.constant 0 : index
    %c0_3 = arith.constant 0 : index
    %1 = vector.load %arg4[%c0_2, %c0_3] : memref<64x1xf32, #tpu.memory_space<vmem>>, vector<64x1xf32>
    %c0_4 = arith.constant 0 : index
    %c0_5 = arith.constant 0 : index
    %c0_6 = arith.constant 0 : index
    %2 = vector.load %arg2[%c0_4, %c0_5, %c0_6] : memref<1x4x1024xf32, #tpu.memory_space<vmem>>, vector<1x4x512xf32>
    %3 = vector.shape_cast %2 : vector<1x4x512xf32> to vector<4x512xf32>
    %4 = arith.truncf %3 : vector<4x512xf32> to vector<4x512xbf16>
    %5 = vector.shape_cast %1 : vector<64x1xf32> to vector<64x1xf32>
    %6 = vector.broadcast %5 : vector<64x1xf32> to vector<64x500xf32>
    %7 = vector.extract_strided_slice %0 {offsets = [0, 0, 0], sizes = [1, 64, 4], strides = [1, 1, 1]} : vector<7x64x4xbf16> to vector<1x64x4xbf16>
    %8 = vector.shape_cast %7 : vector<1x64x4xbf16> to vector<64x4xbf16>
    %9 = vector.extract_strided_slice %4 {offsets = [0, 0], sizes = [4, 500], strides = [1, 1]} : vector<4x512xbf16> to vector<4x500xbf16>
    %cst = arith.constant dense<0.000000e+00> : vector<64x500xf32>
    %10 = tpu.matmul %8, %9, %cst {dimension_numbers = #tpu.dot_dimension_numbers<[1], [0], [0], [1], [0, 0, 1, 1], [], []>} : vector<64x4xbf16>, vector<4x500xbf16>, vector<64x500xf32> -> vector<64x500xf32>
    %11 = arith.addf %6, %10 : vector<64x500xf32>
    %12 = vector.extract_strided_slice %0 {offsets = [1, 0, 0], sizes = [1, 64, 4], strides = [1, 1, 1]} : vector<7x64x4xbf16> to vector<1x64x4xbf16>
    %13 = vector.shape_cast %12 : vector<1x64x4xbf16> to vector<64x4xbf16>
    %14 = vector.extract_strided_slice %4 {offsets = [0, 2], sizes = [4, 500], strides = [1, 1]} : vector<4x512xbf16> to vector<4x500xbf16>
    %cst_7 = arith.constant dense<0.000000e+00> : vector<64x500xf32>
    %15 = tpu.matmul %13, %14, %cst_7 {dimension_numbers = #tpu.dot_dimension_numbers<[1], [0], [0], [1], [0, 0, 1, 1], [], []>} : vector<64x4xbf16>, vector<4x500xbf16>, vector<64x500xf32> -> vector<64x500xf32>
    %16 = arith.addf %11, %15 : vector<64x500xf32>
    %17 = vector.extract_strided_slice %0 {offsets = [2, 0, 0], sizes = [1, 64, 4], strides = [1, 1, 1]} : vector<7x64x4xbf16> to vector<1x64x4xbf16>
    %18 = vector.shape_cast %17 : vector<1x64x4xbf16> to vector<64x4xbf16>
    %19 = vector.extract_strided_slice %4 {offsets = [0, 4], sizes = [4, 500], strides = [1, 1]} : vector<4x512xbf16> to vector<4x500xbf16>
    %cst_8 = arith.constant dense<0.000000e+00> : vector<64x500xf32>
    %20 = tpu.matmul %18, %19, %cst_8 {dimension_numbers = #tpu.dot_dimension_numbers<[1], [0], [0], [1], [0, 0, 1, 1], [], []>} : vector<64x4xbf16>, vector<4x500xbf16>, vector<64x500xf32> -> vector<64x500xf32>
    %21 = arith.addf %16, %20 : vector<64x500xf32>
    %22 = vector.extract_strided_slice %0 {offsets = [3, 0, 0], sizes = [1, 64, 4], strides = [1, 1, 1]} : vector<7x64x4xbf16> to vector<1x64x4xbf16>
    %23 = vector.shape_cast %22 : vector<1x64x4xbf16> to vector<64x4xbf16>
    %24 = vector.extract_strided_slice %4 {offsets = [0, 6], sizes = [4, 500], strides = [1, 1]} : vector<4x512xbf16> to vector<4x500xbf16>
    %cst_9 = arith.constant dense<0.000000e+00> : vector<64x500xf32>
    %25 = tpu.matmul %23, %24, %cst_9 {dimension_numbers = #tpu.dot_dimension_numbers<[1], [0], [0], [1], [0, 0, 1, 1], [], []>} : vector<64x4xbf16>, vector<4x500xbf16>, vector<64x500xf32> -> vector<64x500xf32>
    %26 = arith.addf %21, %25 : vector<64x500xf32>
    %27 = vector.extract_strided_slice %0 {offsets = [4, 0, 0], sizes = [1, 64, 4], strides = [1, 1, 1]} : vector<7x64x4xbf16> to vector<1x64x4xbf16>
    %28 = vector.shape_cast %27 : vector<1x64x4xbf16> to vector<64x4xbf16>
    %29 = vector.extract_strided_slice %4 {offsets = [0, 8], sizes = [4, 500], strides = [1, 1]} : vector<4x512xbf16> to vector<4x500xbf16>
    %cst_10 = arith.constant dense<0.000000e+00> : vector<64x500xf32>
    %30 = tpu.matmul %28, %29, %cst_10 {dimension_numbers = #tpu.dot_dimension_numbers<[1], [0], [0], [1], [0, 0, 1, 1], [], []>} : vector<64x4xbf16>, vector<4x500xbf16>, vector<64x500xf32> -> vector<64x500xf32>
    %31 = arith.addf %26, %30 : vector<64x500xf32>
    %32 = vector.extract_strided_slice %0 {offsets = [5, 0, 0], sizes = [1, 64, 4], strides = [1, 1, 1]} : vector<7x64x4xbf16> to vector<1x64x4xbf16>
    %33 = vector.shape_cast %32 : vector<1x64x4xbf16> to vector<64x4xbf16>
    %34 = vector.extract_strided_slice %4 {offsets = [0, 10], sizes = [4, 500], strides = [1, 1]} : vector<4x512xbf16> to vector<4x500xbf16>
    %cst_11 = arith.constant dense<0.000000e+00> : vector<64x500xf32>
    %35 = tpu.matmul %33, %34, %cst_11 {dimension_numbers = #tpu.dot_dimension_numbers<[1], [0], [0], [1], [0, 0, 1, 1], [], []>} : vector<64x4xbf16>, vector<4x500xbf16>, vector<64x500xf32> -> vector<64x500xf32>
    %36 = arith.addf %31, %35 : vector<64x500xf32>
    %37 = vector.extract_strided_slice %0 {offsets = [6, 0, 0], sizes = [1, 64, 4], strides = [1, 1, 1]} : vector<7x64x4xbf16> to vector<1x64x4xbf16>
    %38 = vector.shape_cast %37 : vector<1x64x4xbf16> to vector<64x4xbf16>
    %39 = vector.extract_strided_slice %4 {offsets = [0, 12], sizes = [4, 500], strides = [1, 1]} : vector<4x512xbf16> to vector<4x500xbf16>
    %cst_12 = arith.constant dense<0.000000e+00> : vector<64x500xf32>
    %40 = tpu.matmul %38, %39, %cst_12 {dimension_numbers = #tpu.dot_dimension_numbers<[1], [0], [0], [1], [0, 0, 1, 1], [], []>} : vector<64x4xbf16>, vector<4x500xbf16>, vector<64x500xf32> -> vector<64x500xf32>
    %41 = arith.addf %36, %40 : vector<64x500xf32>
    %42 = vector.extract_strided_slice %41 {offsets = [0, 0], sizes = [32, 500], strides = [1, 1]} : vector<64x500xf32> to vector<32x500xf32>
    %cst_13 = arith.constant 0.000000e+00 : f32
    %43 = vector.broadcast %cst_13 : f32 to vector<32x500xf32>
    %44 = arith.maximumf %42, %43 : vector<32x500xf32>
    %45 = vector.extract_strided_slice %41 {offsets = [32, 0], sizes = [32, 500], strides = [1, 1]} : vector<64x500xf32> to vector<32x500xf32>
    %46 = math.tanh %45 : vector<32x500xf32>
    %47 = arith.mulf %44, %46 : vector<32x500xf32>
    %48 = arith.truncf %47 : vector<32x500xf32> to vector<32x500xbf16>
    %49 = vector.extract_strided_slice %48 {offsets = [0, 0], sizes = [32, 52], strides = [1, 1]} : vector<32x500xbf16> to vector<32x52xbf16>
    %c0_14 = arith.constant 0 : index
    %c0_15 = arith.constant 0 : index
    %c0_16 = arith.constant 0 : index
    %50 = vector.load %arg5[%c0_14, %c0_15, %c0_16] : memref<1x32x832xbf16, #tpu.memory_space<vmem>>, vector<1x32x52xbf16>
    %51 = vector.shape_cast %50 : vector<1x32x52xbf16> to vector<32x52xbf16>
    %52 = vector.shape_cast %49 : vector<32x52xbf16> to vector<1x32x52xbf16>
    tpu.vector_store %arg5[%c0_14, %c0_15, %c0_16], %52 {strides = array<i32>} : memref<1x32x832xbf16, #tpu.memory_space<vmem>>, vector<1x32x52xbf16>,
    %53 = vector.extract_strided_slice %48 {offsets = [0, 64], sizes = [32, 52], strides = [1, 1]} : vector<32x500xbf16> to vector<32x52xbf16>
    %c0_17 = arith.constant 0 : index
    %c0_18 = arith.constant 0 : index
    %c52 = arith.constant 52 : index
    %54 = vector.load %arg5[%c0_17, %c0_18, %c52] : memref<1x32x832xbf16, #tpu.memory_space<vmem>>, vector<1x32x52xbf16>
    %55 = vector.shape_cast %54 : vector<1x32x52xbf16> to vector<32x52xbf16>
    %56 = vector.shape_cast %53 : vector<32x52xbf16> to vector<1x32x52xbf16>
    tpu.vector_store %arg5[%c0_17, %c0_18, %c52], %56 {strides = array<i32>} : memref<1x32x832xbf16, #tpu.memory_space<vmem>>, vector<1x32x52xbf16>,
    %57 = vector.extract_strided_slice %48 {offsets = [0, 128], sizes = [32, 52], strides = [1, 1]} : vector<32x500xbf16> to vector<32x52xbf16>
    %c0_19 = arith.constant 0 : index
    %c0_20 = arith.constant 0 : index
    %c104 = arith.constant 104 : index
    %58 = vector.load %arg5[%c0_19, %c0_20, %c104] : memref<1x32x832xbf16, #tpu.memory_space<vmem>>, vector<1x32x52xbf16>
    %59 = vector.shape_cast %58 : vector<1x32x52xbf16> to vector<32x52xbf16>
    %60 = vector.shape_cast %57 : vector<32x52xbf16> to vector<1x32x52xbf16>
    tpu.vector_store %arg5[%c0_19, %c0_20, %c104], %60 {strides = array<i32>} : memref<1x32x832xbf16, #tpu.memory_space<vmem>>, vector<1x32x52xbf16>,
    %61 = vector.extract_strided_slice %48 {offsets = [0, 192], sizes = [32, 52], strides = [1, 1]} : vector<32x500xbf16> to vector<32x52xbf16>
    %c0_21 = arith.constant 0 : index
    %c0_22 = arith.constant 0 : index
    %c156 = arith.constant 156 : index
    %62 = vector.load %arg5[%c0_21, %c0_22, %c156] : memref<1x32x832xbf16, #tpu.memory_space<vmem>>, vector<1x32x52xbf16>
    %63 = vector.shape_cast %62 : vector<1x32x52xbf16> to vector<32x52xbf16>
    %64 = vector.shape_cast %61 : vector<32x52xbf16> to vector<1x32x52xbf16>
    tpu.vector_store %arg5[%c0_21, %c0_22, %c156], %64 {strides = array<i32>} : memref<1x32x832xbf16, #tpu.memory_space<vmem>>, vector<1x32x52xbf16>,
    %65 = vector.extract_strided_slice %48 {offsets = [0, 256], sizes = [32, 52], strides = [1, 1]} : vector<32x500xbf16> to vector<32x52xbf16>
    %c0_23 = arith.constant 0 : index
    %c0_24 = arith.constant 0 : index
    %c208 = arith.constant 208 : index
    %66 = vector.load %arg5[%c0_23, %c0_24, %c208] : memref<1x32x832xbf16, #tpu.memory_space<vmem>>, vector<1x32x52xbf16>
    %67 = vector.shape_cast %66 : vector<1x32x52xbf16> to vector<32x52xbf16>
    %68 = vector.shape_cast %65 : vector<32x52xbf16> to vector<1x32x52xbf16>
    tpu.vector_store %arg5[%c0_23, %c0_24, %c208], %68 {strides = array<i32>} : memref<1x32x832xbf16, #tpu.memory_space<vmem>>, vector<1x32x52xbf16>,
    %69 = vector.extract_strided_slice %48 {offsets = [0, 320], sizes = [32, 52], strides = [1, 1]} : vector<32x500xbf16> to vector<32x52xbf16>
    %c0_25 = arith.constant 0 : index
    %c0_26 = arith.constant 0 : index
    %c260 = arith.constant 260 : index
    %70 = vector.load %arg5[%c0_25, %c0_26, %c260] : memref<1x32x832xbf16, #tpu.memory_space<vmem>>, vector<1x32x52xbf16>
    %71 = vector.shape_cast %70 : vector<1x32x52xbf16> to vector<32x52xbf16>
    %72 = vector.shape_cast %69 : vector<32x52xbf16> to vector<1x32x52xbf16>
    tpu.vector_store %arg5[%c0_25, %c0_26, %c260], %72 {strides = array<i32>} : memref<1x32x832xbf16, #tpu.memory_space<vmem>>, vector<1x32x52xbf16>,
    %73 = vector.extract_strided_slice %48 {offsets = [0, 384], sizes = [32, 52], strides = [1, 1]} : vector<32x500xbf16> to vector<32x52xbf16>
    %c0_27 = arith.constant 0 : index
    %c0_28 = arith.constant 0 : index
    %c312 = arith.constant 312 : index
    %74 = vector.load %arg5[%c0_27, %c0_28, %c312] : memref<1x32x832xbf16, #tpu.memory_space<vmem>>, vector<1x32x52xbf16>
    %75 = vector.shape_cast %74 : vector<1x32x52xbf16> to vector<32x52xbf16>
    %76 = vector.shape_cast %73 : vector<32x52xbf16> to vector<1x32x52xbf16>
    tpu.vector_store %arg5[%c0_27, %c0_28, %c312], %76 {strides = array<i32>} : memref<1x32x832xbf16, #tpu.memory_space<vmem>>, vector<1x32x52xbf16>,
    %77 = vector.extract_strided_slice %48 {offsets = [0, 448], sizes = [32, 52], strides = [1, 1]} : vector<32x500xbf16> to vector<32x52xbf16>
    %c0_29 = arith.constant 0 : index
    %c0_30 = arith.constant 0 : index
    %c364 = arith.constant 364 : index
    %78 = vector.load %arg5[%c0_29, %c0_30, %c364] : memref<1x32x832xbf16, #tpu.memory_space<vmem>>, vector<1x32x52xbf16>
    %79 = vector.shape_cast %78 : vector<1x32x52xbf16> to vector<32x52xbf16>
    %80 = vector.shape_cast %77 : vector<32x52xbf16> to vector<1x32x52xbf16>
    tpu.vector_store %arg5[%c0_29, %c0_30, %c364], %80 {strides = array<i32>} : memref<1x32x832xbf16, #tpu.memory_space<vmem>>, vector<1x32x52xbf16>,
    %c0_31 = arith.constant 0 : index
    %c0_32 = arith.constant 0 : index
    %c512 = arith.constant 512 : index
    %81 = vector.load %arg2[%c0_31, %c0_32, %c512] : memref<1x4x1024xf32, #tpu.memory_space<vmem>>, vector<1x4x512xf32>
    %82 = vector.shape_cast %81 : vector<1x4x512xf32> to vector<4x512xf32>
    %83 = arith.truncf %82 : vector<4x512xf32> to vector<4x512xbf16>
    %84 = vector.shape_cast %1 : vector<64x1xf32> to vector<64x1xf32>
    %85 = vector.broadcast %84 : vector<64x1xf32> to vector<64x500xf32>
    %86 = vector.extract_strided_slice %0 {offsets = [0, 0, 0], sizes = [1, 64, 4], strides = [1, 1, 1]} : vector<7x64x4xbf16> to vector<1x64x4xbf16>
    %87 = vector.shape_cast %86 : vector<1x64x4xbf16> to vector<64x4xbf16>
    %88 = vector.extract_strided_slice %83 {offsets = [0, 0], sizes = [4, 500], strides = [1, 1]} : vector<4x512xbf16> to vector<4x500xbf16>
    %cst_33 = arith.constant dense<0.000000e+00> : vector<64x500xf32>
    %89 = tpu.matmul %87, %88, %cst_33 {dimension_numbers = #tpu.dot_dimension_numbers<[1], [0], [0], [1], [0, 0, 1, 1], [], []>} : vector<64x4xbf16>, vector<4x500xbf16>, vector<64x500xf32> -> vector<64x500xf32>
    %90 = arith.addf %85, %89 : vector<64x500xf32>
    %91 = vector.extract_strided_slice %0 {offsets = [1, 0, 0], sizes = [1, 64, 4], strides = [1, 1, 1]} : vector<7x64x4xbf16> to vector<1x64x4xbf16>
    %92 = vector.shape_cast %91 : vector<1x64x4xbf16> to vector<64x4xbf16>
    %93 = vector.extract_strided_slice %83 {offsets = [0, 2], sizes = [4, 500], strides = [1, 1]} : vector<4x512xbf16> to vector<4x500xbf16>
    %cst_34 = arith.constant dense<0.000000e+00> : vector<64x500xf32>
    %94 = tpu.matmul %92, %93, %cst_34 {dimension_numbers = #tpu.dot_dimension_numbers<[1], [0], [0], [1], [0, 0, 1, 1], [], []>} : vector<64x4xbf16>, vector<4x500xbf16>, vector<64x500xf32> -> vector<64x500xf32>
    %95 = arith.addf %90, %94 : vector<64x500xf32>
    %96 = vector.extract_strided_slice %0 {offsets = [2, 0, 0], sizes = [1, 64, 4], strides = [1, 1, 1]} : vector<7x64x4xbf16> to vector<1x64x4xbf16>
    %97 = vector.shape_cast %96 : vector<1x64x4xbf16> to vector<64x4xbf16>
    %98 = vector.extract_strided_slice %83 {offsets = [0, 4], sizes = [4, 500], strides = [1, 1]} : vector<4x512xbf16> to vector<4x500xbf16>
    %cst_35 = arith.constant dense<0.000000e+00> : vector<64x500xf32>
    %99 = tpu.matmul %97, %98, %cst_35 {dimension_numbers = #tpu.dot_dimension_numbers<[1], [0], [0], [1], [0, 0, 1, 1], [], []>} : vector<64x4xbf16>, vector<4x500xbf16>, vector<64x500xf32> -> vector<64x500xf32>
    %100 = arith.addf %95, %99 : vector<64x500xf32>
    %101 = vector.extract_strided_slice %0 {offsets = [3, 0, 0], sizes = [1, 64, 4], strides = [1, 1, 1]} : vector<7x64x4xbf16> to vector<1x64x4xbf16>
    %102 = vector.shape_cast %101 : vector<1x64x4xbf16> to vector<64x4xbf16>
    %103 = vector.extract_strided_slice %83 {offsets = [0, 6], sizes = [4, 500], strides = [1, 1]} : vector<4x512xbf16> to vector<4x500xbf16>
    %cst_36 = arith.constant dense<0.000000e+00> : vector<64x500xf32>
    %104 = tpu.matmul %102, %103, %cst_36 {dimension_numbers = #tpu.dot_dimension_numbers<[1], [0], [0], [1], [0, 0, 1, 1], [], []>} : vector<64x4xbf16>, vector<4x500xbf16>, vector<64x500xf32> -> vector<64x500xf32>
    %105 = arith.addf %100, %104 : vector<64x500xf32>
    %106 = vector.extract_strided_slice %0 {offsets = [4, 0, 0], sizes = [1, 64, 4], strides = [1, 1, 1]} : vector<7x64x4xbf16> to vector<1x64x4xbf16>
    %107 = vector.shape_cast %106 : vector<1x64x4xbf16> to vector<64x4xbf16>
    %108 = vector.extract_strided_slice %83 {offsets = [0, 8], sizes = [4, 500], strides = [1, 1]} : vector<4x512xbf16> to vector<4x500xbf16>
    %cst_37 = arith.constant dense<0.000000e+00> : vector<64x500xf32>
    %109 = tpu.matmul %107, %108, %cst_37 {dimension_numbers = #tpu.dot_dimension_numbers<[1], [0], [0], [1], [0, 0, 1, 1], [], []>} : vector<64x4xbf16>, vector<4x500xbf16>, vector<64x500xf32> -> vector<64x500xf32>
    %110 = arith.addf %105, %109 : vector<64x500xf32>
    %111 = vector.extract_strided_slice %0 {offsets = [5, 0, 0], sizes = [1, 64, 4], strides = [1, 1, 1]} : vector<7x64x4xbf16> to vector<1x64x4xbf16>
    %112 = vector.shape_cast %111 : vector<1x64x4xbf16> to vector<64x4xbf16>
    %113 = vector.extract_strided_slice %83 {offsets = [0, 10], sizes = [4, 500], strides = [1, 1]} : vector<4x512xbf16> to vector<4x500xbf16>
    %cst_38 = arith.constant dense<0.000000e+00> : vector<64x500xf32>
    %114 = tpu.matmul %112, %113, %cst_38 {dimension_numbers = #tpu.dot_dimension_numbers<[1], [0], [0], [1], [0, 0, 1, 1], [], []>} : vector<64x4xbf16>, vector<4x500xbf16>, vector<64x500xf32> -> vector<64x500xf32>
    %115 = arith.addf %110, %114 : vector<64x500xf32>
    %116 = vector.extract_strided_slice %0 {offsets = [6, 0, 0], sizes = [1, 64, 4], strides = [1, 1, 1]} : vector<7x64x4xbf16> to vector<1x64x4xbf16>
    %117 = vector.shape_cast %116 : vector<1x64x4xbf16> to vector<64x4xbf16>
    %118 = vector.extract_strided_slice %83 {offsets = [0, 12], sizes = [4, 500], strides = [1, 1]} : vector<4x512xbf16> to vector<4x500xbf16>
    %cst_39 = arith.constant dense<0.000000e+00> : vector<64x500xf32>
    %119 = tpu.matmul %117, %118, %cst_39 {dimension_numbers = #tpu.dot_dimension_numbers<[1], [0], [0], [1], [0, 0, 1, 1], [], []>} : vector<64x4xbf16>, vector<4x500xbf16>, vector<64x500xf32> -> vector<64x500xf32>
    %120 = arith.addf %115, %119 : vector<64x500xf32>
    %121 = vector.extract_strided_slice %120 {offsets = [0, 0], sizes = [32, 500], strides = [1, 1]} : vector<64x500xf32> to vector<32x500xf32>
    %cst_40 = arith.constant 0.000000e+00 : f32
    %122 = vector.broadcast %cst_40 : f32 to vector<32x500xf32>
    %123 = arith.maximumf %121, %122 : vector<32x500xf32>
    %124 = vector.extract_strided_slice %120 {offsets = [32, 0], sizes = [32, 500], strides = [1, 1]} : vector<64x500xf32> to vector<32x500xf32>
    %125 = math.tanh %124 : vector<32x500xf32>
    %126 = arith.mulf %123, %125 : vector<32x500xf32>
    %127 = arith.truncf %126 : vector<32x500xf32> to vector<32x500xbf16>
    %128 = vector.extract_strided_slice %127 {offsets = [0, 0], sizes = [32, 52], strides = [1, 1]} : vector<32x500xbf16> to vector<32x52xbf16>
    %c0_41 = arith.constant 0 : index
    %c0_42 = arith.constant 0 : index
    %c416 = arith.constant 416 : index
    %129 = vector.load %arg5[%c0_41, %c0_42, %c416] : memref<1x32x832xbf16, #tpu.memory_space<vmem>>, vector<1x32x52xbf16>
    %130 = vector.shape_cast %129 : vector<1x32x52xbf16> to vector<32x52xbf16>
    %131 = vector.shape_cast %128 : vector<32x52xbf16> to vector<1x32x52xbf16>
    tpu.vector_store %arg5[%c0_41, %c0_42, %c416], %131 {strides = array<i32>} : memref<1x32x832xbf16, #tpu.memory_space<vmem>>, vector<1x32x52xbf16>,
    %132 = vector.extract_strided_slice %127 {offsets = [0, 64], sizes = [32, 52], strides = [1, 1]} : vector<32x500xbf16> to vector<32x52xbf16>
    %c0_43 = arith.constant 0 : index
    %c0_44 = arith.constant 0 : index
    %c468 = arith.constant 468 : index
    %133 = vector.load %arg5[%c0_43, %c0_44, %c468] : memref<1x32x832xbf16, #tpu.memory_space<vmem>>, vector<1x32x52xbf16>
    %134 = vector.shape_cast %133 : vector<1x32x52xbf16> to vector<32x52xbf16>
    %135 = vector.shape_cast %132 : vector<32x52xbf16> to vector<1x32x52xbf16>
    tpu.vector_store %arg5[%c0_43, %c0_44, %c468], %135 {strides = array<i32>} : memref<1x32x832xbf16, #tpu.memory_space<vmem>>, vector<1x32x52xbf16>,
    %136 = vector.extract_strided_slice %127 {offsets = [0, 128], sizes = [32, 52], strides = [1, 1]} : vector<32x500xbf16> to vector<32x52xbf16>
    %c0_45 = arith.constant 0 : index
    %c0_46 = arith.constant 0 : index
    %c520 = arith.constant 520 : index
    %137 = vector.load %arg5[%c0_45, %c0_46, %c520] : memref<1x32x832xbf16, #tpu.memory_space<vmem>>, vector<1x32x52xbf16>
    %138 = vector.shape_cast %137 : vector<1x32x52xbf16> to vector<32x52xbf16>
    %139 = vector.shape_cast %136 : vector<32x52xbf16> to vector<1x32x52xbf16>
    tpu.vector_store %arg5[%c0_45, %c0_46, %c520], %139 {strides = array<i32>} : memref<1x32x832xbf16, #tpu.memory_space<vmem>>, vector<1x32x52xbf16>,
    %140 = vector.extract_strided_slice %127 {offsets = [0, 192], sizes = [32, 52], strides = [1, 1]} : vector<32x500xbf16> to vector<32x52xbf16>
    %c0_47 = arith.constant 0 : index
    %c0_48 = arith.constant 0 : index
    %c572 = arith.constant 572 : index
    %141 = vector.load %arg5[%c0_47, %c0_48, %c572] : memref<1x32x832xbf16, #tpu.memory_space<vmem>>, vector<1x32x52xbf16>
    %142 = vector.shape_cast %141 : vector<1x32x52xbf16> to vector<32x52xbf16>
    %143 = vector.shape_cast %140 : vector<32x52xbf16> to vector<1x32x52xbf16>
    tpu.vector_store %arg5[%c0_47, %c0_48, %c572], %143 {strides = array<i32>} : memref<1x32x832xbf16, #tpu.memory_space<vmem>>, vector<1x32x52xbf16>,
    %144 = vector.extract_strided_slice %127 {offsets = [0, 256], sizes = [32, 52], strides = [1, 1]} : vector<32x500xbf16> to vector<32x52xbf16>
    %c0_49 = arith.constant 0 : index
    %c0_50 = arith.constant 0 : index
    %c624 = arith.constant 624 : index
    %145 = vector.load %arg5[%c0_49, %c0_50, %c624] : memref<1x32x832xbf16, #tpu.memory_space<vmem>>, vector<1x32x52xbf16>
    %146 = vector.shape_cast %145 : vector<1x32x52xbf16> to vector<32x52xbf16>
    %147 = vector.shape_cast %144 : vector<32x52xbf16> to vector<1x32x52xbf16>
    tpu.vector_store %arg5[%c0_49, %c0_50, %c624], %147 {strides = array<i32>} : memref<1x32x832xbf16, #tpu.memory_space<vmem>>, vector<1x32x52xbf16>,
    %148 = vector.extract_strided_slice %127 {offsets = [0, 320], sizes = [32, 52], strides = [1, 1]} : vector<32x500xbf16> to vector<32x52xbf16>
    %c0_51 = arith.constant 0 : index
    %c0_52 = arith.constant 0 : index
    %c676 = arith.constant 676 : index
    %149 = vector.load %arg5[%c0_51, %c0_52, %c676] : memref<1x32x832xbf16, #tpu.memory_space<vmem>>, vector<1x32x52xbf16>
    %150 = vector.shape_cast %149 : vector<1x32x52xbf16> to vector<32x52xbf16>
    %151 = vector.shape_cast %148 : vector<32x52xbf16> to vector<1x32x52xbf16>
    tpu.vector_store %arg5[%c0_51, %c0_52, %c676], %151 {strides = array<i32>} : memref<1x32x832xbf16, #tpu.memory_space<vmem>>, vector<1x32x52xbf16>,
    %152 = vector.extract_strided_slice %127 {offsets = [0, 384], sizes = [32, 52], strides = [1, 1]} : vector<32x500xbf16> to vector<32x52xbf16>
    %c0_53 = arith.constant 0 : index
    %c0_54 = arith.constant 0 : index
    %c728 = arith.constant 728 : index
    %153 = vector.load %arg5[%c0_53, %c0_54, %c728] : memref<1x32x832xbf16, #tpu.memory_space<vmem>>, vector<1x32x52xbf16>
    %154 = vector.shape_cast %153 : vector<1x32x52xbf16> to vector<32x52xbf16>
    %155 = vector.shape_cast %152 : vector<32x52xbf16> to vector<1x32x52xbf16>
    tpu.vector_store %arg5[%c0_53, %c0_54, %c728], %155 {strides = array<i32>} : memref<1x32x832xbf16, #tpu.memory_space<vmem>>, vector<1x32x52xbf16>,
    %156 = vector.extract_strided_slice %127 {offsets = [0, 448], sizes = [32, 52], strides = [1, 1]} : vector<32x500xbf16> to vector<32x52xbf16>
    %c0_55 = arith.constant 0 : index
    %c0_56 = arith.constant 0 : index
    %c780 = arith.constant 780 : index
    %157 = vector.load %arg5[%c0_55, %c0_56, %c780] : memref<1x32x832xbf16, #tpu.memory_space<vmem>>, vector<1x32x52xbf16>
    %158 = vector.shape_cast %157 : vector<1x32x52xbf16> to vector<32x52xbf16>
    %159 = vector.shape_cast %156 : vector<32x52xbf16> to vector<1x32x52xbf16>
    tpu.vector_store %arg5[%c0_55, %c0_56, %c780], %159 {strides = array<i32>} : memref<1x32x832xbf16, #tpu.memory_space<vmem>>, vector<1x32x52xbf16>,
    return
  }
  func.func @transform_0(%arg0: i32, %arg1: i32) -> (i32, i32, i32) {
    %c0_i32 = arith.constant 0 : i32
    %c0_i32_0 = arith.constant 0 : i32
    return %arg0, %c0_i32, %arg1 : i32, i32, i32
  }
  func.func @transform_1(%arg0: i32, %arg1: i32) -> (i32, i32, i32) {
    %c0_i32 = arith.constant 0 : i32
    %c0_i32_0 = arith.constant 0 : i32
    %c0_i32_1 = arith.constant 0 : i32
    %c0_i32_2 = arith.constant 0 : i32
    return %c0_i32, %c0_i32_0, %c0_i32_1 : i32, i32, i32
  }
  func.func @transform_2(%arg0: i32, %arg1: i32) -> (i32, i32) {
    %c0_i32 = arith.constant 0 : i32
    %c0_i32_0 = arith.constant 0 : i32
    %c0_i32_1 = arith.constant 0 : i32
    return %c0_i32, %c0_i32_0 : i32, i32
  }
  func.func @transform_3(%arg0: i32, %arg1: i32) -> (i32, i32, i32) {
    %c0_i32 = arith.constant 0 : i32
    %c0_i32_0 = arith.constant 0 : i32
    return %arg0, %c0_i32, %arg1 : i32, i32, i32
  }
}

</mosaic_0001>

<bundles_post_ra>
// kernel: tpu_custom_call.1
= control target key start
LH: loop header
LB: loop body
LE: loop exit
PB: predicated region body
PF: predicated region fallthrough
CT: control target
= control target key end

     0   :  { %8 = vsyncpa [#allocation3], 0  ;;  %s6714_s0 = inlined_call_operand.vmem [shape: f32[2,4,1024], index: 0, kind: input, shape index: {}]   ;;  %s6715_s1 = inlined_call_operand.vmem [shape: bf16[7,64,4], index: 1, kind: input, shape index: {}]   ;;  %s6716_s2 = inlined_call_operand.vmem [shape: f32[64,1], index: 2, kind: input, shape index: {}]   ;;  %s6717_s3 = inlined_call_operand.hbm [shape: bf16[2,32,832], index: 3, kind: output, shape index: {}]  }
   0x1   :  { %10 = vsyncpa [#allocation3 + $0x1], 0  ;;  %s4251_s12 = smov 0   ;;  %s4253_s13 = smov 0  }
   0x2   :  { %s4255_s14 = smov 0   ;;  %s4257_s15 = smov 0  }
   0x3   :  { %s4259_s16 = smov 0   ;;  %s4261_s17 = smov 0  }
   0x4 LB: > { %s3578_s18 = sadd.s32 4294967295, %s4206_s17   ;;  %s3579_s19 = sadd.s32 4294967294, %s4206_s17   ;;  %s4206_s17 = sphi %s4261_s17, %s16_s17   ;;  %s4202_s16 = sphi %s4259_s16, %s6866_s16   ;;  %s4198_s15 = sphi %s4257_s15, %s6865_s15   ;;  %s4194_s14 = sphi %s4255_s14, %s6864_s14   ;;  %s4190_s13 = sphi %s4253_s13, %s6863_s13   ;;  %s4186_s12 = sphi %s4251_s12, %s6862_s12  }
   0x5   : > { %s28_s20 = sadd.s32 1, %s4202_s16  ;;  %s107_s21 = sadd.s32 1, %s4194_s14 }
   0x6   : > { %p30_p0 = scmp.ge.s32.totalorder %s28_s20, 2  ;;  %p117_p1 = scmp.ne.s32.totalorder %s4194_s14, %s4190_s13 }
   0x7   : > { %p118_p2 = scmp.eq.s32.totalorder %s3578_s18, 1  ;;  %p123_p3 = scmp.ne.s32.totalorder %s4190_s13, %s4186_s12 }
   0x8   : > { %s6868_s20 = smov (%p30_p0, %s28_s20), 0  ;;  %p124_p5 = scmp.eq.s32.totalorder %s3579_s19, 1 }
   0x9   : > { %p4291_p4 = por %p118_p2, %p117_p1  ;;  %s102_s23 = ssub.s32 %s4202_s16, %s6868_s20 }
   0xa   : > { %p3582_p6 = scmp.ge.s32.totalorder %s4206_s17, 1  ;;  %p105_p7 = scmp.eq.s32.totalorder %s102_s23, 0 }
   0xb   : > { %p4298_p8 = por %p124_p5, %p123_p3  ;;  %p161_p9 = scmp.lt.s32.totalorder %s4206_s17, 3 }
   0xc   : > { %s4304_s25 = scalar_select %p105_p7, %s4194_s14, %s107_s21  }
   0xd   : > { %p162_p10 = pnand %p3582_p6, %p161_p9 }
   0xf   : > { %165 = sbr.rel (%p162_p10) target bundleno = 1403 (0x57b), region = 32 }
  0x14   : > { %p190_p11 = scmp.lt.s32.totalorder %s4198_s15, 1  ;;  %s4208_s4 = smov 126   ;;  %vm365_vm0 = vcmask 1041408   ;;  %v3925_v22 = vld [vmem:[%s6715_s1] sm:$0xff]  ;;  %vm352_vm1 = vcmask 31744   ;;  %v3926_v23 = vld [vmem:[%s6715_s1 + $0x8] sm:$0xff] }
  0x15   : > { %s4209_s5 = smov 124   ;;  %s4210_s6 = smov 122   ;;  %v3927_v28 = vld [vmem:[%s6715_s1 + $0x10] sm:$0xff]  ;;  %v3928_v38 = vld [vmem:[%s6715_s1 + $0x18] sm:$0xff]  ;;  %v4214_v41 = vmov 0   ;;  %vm758_vm2 = vcmask 1014784  }
  0x16   : > { %s191_s26 = scalar_select %p190_p11, %s4198_s15, 1  ;;  %4034 = vset.pattern.permute.xlu1 %v4214_v41  ;;  %4033 = vset.pattern.permute.xlu0 %v4214_v41  ;;  %vm554_vm3 = vcmask 1031168   ;;  %v3929_v56 = vld [vmem:[%s6715_s1 + $0x20] sm:$0xff]  ;;  %vm962_vm4 = vcmask 998400   ;;  %v258_v62 = vld [vmem:[%s6716_s2 + $0x8] sm:$0xff]  ;;  %v259_v63 = vld [vmem:[%s6716_s2 + $0x10] sm:$0xff] }
  0x17   : > { %s4211_s9 = smov 120   ;;  %s4212_s18 = smov 118   ;;  %4035 = vset.pattern.permute.xlu2 %v4214_v41  ;;  %v257_v61 = vld [vmem:[%s6716_s2] sm:$0xff]  ;;  %vm1166_vm5 = vcmask 982016   ;;  %vm1370_vm6 = vcmask 965632   ;;  %vm1574_vm7 = vcmask 949248  }
  0x18   : > { %s3924_s27 = sshll.u32 %s191_s26, 5  ;;  %s4213_s19 = smov 116   ;;  %vm1806_vm8 = vcmask 420864   ;;  %vm1827_vm9 = vcmask 847264   ;;  %vm1857_vm10 = vcmask 1044288   ;;  %vm1858_vm11 = vcmask 228356  }
  0x19   : > { %s197_s30 = scalar_lea.vmem %s6714_s0, %s3924_s27  ;;  %s186_s26 = sand.u32 1, %s4190_s13   ;;  %vm5818_vm12 = vmor %vm1858_vm11, %vm1857_vm10  ;;  %vm1848_vm13 = vcmask 850944   ;;  %vm1918_vm14 = vcmask 1044096   ;;  %vm1919_vm15 = vcmask 31748   ;;  %vm3314_vm10 = vcmask 1044128  }
  0x1a   : > { %v266_v0 = vld [vmem:[%s197_s30 + $0x8] sm:$0xff]  ;;  %v265_v1 = vld [vmem:[%s197_s30] sm:$0xff]  ;;  %v2004_v2 = vld [vmem:[%s197_s30 + $0x18] sm:$0xff]  ;;  %s5491_s27 = smul.u32 112, %s186_s26  ;;  %s4215_s28 = smov 64   ;;  %vm3315_vm11 = vcmask 64516  }
  0x1b   : > { %271 = vst [vmem:[#allocation1 + $0x10] ss:$2 sm:$0xff] %v266_v0  ;;  %v2003_v3 = vld [vmem:[%s197_s30 + $0x10] sm:$0xff]  ;;  %s4216_s30 = smov 104   ;;  %s4218_s7 = smov 80  }
  0x1c   : > { %269 = vst [vmem:[#allocation1] ss:$2 sm:$0xff] %v265_v1  ;;  %s5505_s29 = scalar_lea.vmem [#allocation2], %s5491_s27  ;;  %s4219_s8 = smov 56  }
  0x1d   : > { %s4221_s10 = smov 108   ;;  %s4222_s11 = smov 32  }
  0x1e   : > { %s4224_s21 = smov 8   ;;  %s4225_s23 = smov 112  }
  0x1f   : > { %s4227_s27 = smov 100  }
  0x22   : > { %v274_v4 = vld.sshfl [vmem:[#allocation1 + $0x10] sm:$0xff pattern:$0x75316420]  ;;  %v275_v5 = vld.sshfl [vmem:[#allocation1 + $0x18] sm:$0xff pattern:$0x75316420] }
  0x23   : > { %v281_v6 = vpack.c.bf16 %v275_v5, %v274_v4  ;;  %2009 = vst [vmem:[#allocation1 + $0x10] ss:$2 sm:$0xff] %v2004_v2  ;;  %v272_v7 = vld.sshfl [vmem:[#allocation1] sm:$0xff pattern:$0x75316420] }
  0x24   : > { %v273_v8 = vld.sshfl [vmem:[#allocation1 + $0x8] sm:$0xff pattern:$0x75316420] }
  0x25   : > { %v346_v9 = vunpack.c.l.b16 %v281_v6  ;;  %v280_v10 = vpack.c.bf16 %v273_v8, %v272_v7  ;;  %2007 = vst [vmem:[#allocation1] ss:$2 sm:$0xff] %v2003_v3  ;;  %v347_v14 = vunpack.c.h.b16 %v281_v6 }
  0x27   : > { %v350_v11 = vpack.c.b16 %v346_v9, %v346_v9  ;;  %v344_v12 = vunpack.c.l.b16 %v280_v10  ;;  %v345_v15 = vunpack.c.h.b16 %v280_v10  ;;  %v351_v16 = vpack.c.b16 %v347_v14, %v347_v14  ;;  %v262_v9 = vld [vmem:[%s6716_s2 + $0x28] sm:$0xff]  ;;  %v260_v10 = vld [vmem:[%s6716_s2 + $0x18] sm:$0xff] }
  0x29   : > { %550 = vrot.lane.b32.xlu0 %v350_v11, %s4208_s4  ;;  %v4312_v13 = vpack.c.b16 %v344_v12, %v344_v12  ;;  %754 = vrot.lane.b32.xlu2 %v350_v11, %s4209_s5  ;;  %v349_v17 = vpack.c.b16 %v345_v15, %v345_v15  ;;  %v376_v18 = vsel %vm365_vm0, %v351_v16, 0  ;;  %v373_v21 = vsel %vm365_vm0, %v350_v11, 0 }
  0x2a   : > { %472 = vmatpush.bf16.msra.mxu3 %v376_v18  ;;  %443 = vmatpush.bf16.msra.mxu2 %v373_v21  ;;  %v2012_v24 = vld.sshfl [vmem:[#allocation1 + $0x10] sm:$0xff pattern:$0x75316420]  ;;  %v2013_v25 = vld.sshfl [vmem:[#allocation1 + $0x18] sm:$0xff pattern:$0x75316420] }
  0x2b   : > { %546 = vrot.lane.b32.xlu1 %v4312_v13, %s4208_s4  ;;  %v367_v19 = vsel %vm365_vm0, %v4312_v13, 0  ;;  %v370_v20 = vsel %vm365_vm0, %v349_v17, 0  ;;  %v2019_v29 = vpack.c.bf16 %v2013_v25, %v2012_v24  ;;  %v263_v21 = vld [vmem:[%s6716_s2 + $0x30] sm:$0xff] }
  0x2c   : > { %385 = vmatpush.bf16.msra.mxu0 %v367_v19  ;;  %414 = vmatpush.bf16.msra.mxu1 %v370_v20  ;;  %v2010_v26 = vld.sshfl [vmem:[#allocation1] sm:$0xff pattern:$0x75316420]  ;;  %v2011_v27 = vld.sshfl [vmem:[#allocation1 + $0x8] sm:$0xff pattern:$0x75316420] }
  0x2d   : > { %3613 = vmatmul.msk.bf16.vlgmr.msra.gmra.mxu3 %vm352_vm1, %v3925_v22  ;;  %3609 = vmatmul.msk.bf16.vlgmr.msra.gmra.mxu2 %vm352_vm1, %v3925_v22  ;;  %v2018_v30 = vpack.c.bf16 %v2011_v27, %v2010_v26  ;;  %v2024_v31 = vunpack.c.l.b16 %v2019_v29  ;;  %v2025_v33 = vunpack.c.h.b16 %v2019_v29  ;;  %v3931_v27 = vld [vmem:[%s6715_s1 + $0x30] sm:$0xff] }
  0x2f   : > { %3601 = vmatmul.msk.bf16.vlgmr.msra.gmra.mxu0 %vm352_vm1, %v3925_v22  ;;  %3605 = vmatmul.msk.bf16.vlgmr.msra.gmra.mxu1 %vm352_vm1, %v3925_v22  ;;  %v2022_v32 = vunpack.c.l.b16 %v2018_v30  ;;  %v4369_v34 = vpack.c.b16 %v2024_v31, %v2024_v31  ;;  %v4373_v36 = vpack.c.b16 %v2025_v33, %v2025_v33  ;;  %v2023_v37 = vunpack.c.h.b16 %v2018_v30  ;;  %v264_v22 = vld [vmem:[%s6716_s2 + $0x38] sm:$0xff] }
  0x31   : > { %552 = vrot.lane.b32.xlu0 %v351_v16, %s4208_s4  ;;  %756 = vrot.lane.b32.xlu2 %v351_v16, %s4209_s5  ;;  %6752 = vst [vmem:[#allocation5_spill] sm:$0xff] %v4369_v34  ;;  %v4371_v35 = vpack.c.b16 %v2022_v32, %v2022_v32  ;;  %v4384_v39 = vpack.c.b16 %v2023_v37, %v2023_v37  ;;  %v3932_v37 = vld [vmem:[%s6715_s1 + $0x38] sm:$0xff] }
  0x32   : > { %6754 = vst [vmem:[#allocation7_spill] sm:$0xff] %v4373_v36 }
  0x33   : > { %548 = vrot.lane.b32.xlu1 %v349_v17, %s4208_s4  ;;  %6753 = vst [vmem:[#allocation6_spill] sm:$0xff] %v4371_v35 }
  0x34   : > { %6755 = vst [vmem:[#allocation8_spill] sm:$0xff] %v4384_v39 }
  0x39   : > { %750 = vrot.lane.b32.xlu0 %v4312_v13, %s4209_s5  ;;  %958 = vrot.lane.b32.xlu2 %v350_v11, %s4210_s6 }
  0x3b   : > { %752 = vrot.lane.b32.xlu1 %v349_v17, %s4209_s5 }
  0x3d   : > { %3614 = vmatmul.msk.bf16.gmra.mxu3 %vm352_vm1, %v3926_v23  ;;  %3610 = vmatmul.msk.bf16.gmra.mxu2 %vm352_vm1, %v3926_v23 }
  0x3f   : > { %3602 = vmatmul.msk.bf16.gmra.mxu0 %vm352_vm1, %v3926_v23  ;;  %3606 = vmatmul.msk.bf16.gmra.mxu1 %vm352_vm1, %v3926_v23 }
  0x41   : > { %960 = vrot.lane.b32.xlu0 %v351_v16, %s4210_s6  ;;  %956 = vrot.lane.b32.xlu2 %v349_v17, %s4210_s6 }
  0x43   : > { %954 = vrot.lane.b32.xlu1 %v4312_v13, %s4210_s6 }
  0x49   : > { %1162 = vrot.lane.b32.xlu0 %v350_v11, %s4211_s9  ;;  %1158 = vrot.lane.b32.xlu2 %v4312_v13, %s4211_s9 }
  0x4b   : > { %1164 = vrot.lane.b32.xlu1 %v351_v16, %s4211_s9 }
  0x4d   : > { %3615 = vmatmul.msk.bf16.gmra.mxu3 %vm352_vm1, %v3927_v28  ;;  %3611 = vmatmul.msk.bf16.gmra.mxu2 %vm352_vm1, %v3927_v28 }
  0x4f   : > { %3603 = vmatmul.msk.bf16.gmra.mxu0 %vm352_vm1, %v3927_v28  ;;  %3607 = vmatmul.msk.bf16.gmra.mxu1 %vm352_vm1, %v3927_v28 }
  0x51   : > { %1160 = vrot.lane.b32.xlu0 %v349_v17, %s4211_s9  ;;  %1368 = vrot.lane.b32.xlu2 %v351_v16, %s4212_s18 }
  0x53   : > { %1366 = vrot.lane.b32.xlu1 %v350_v11, %s4212_s18 }
  0x59   : > { %1362 = vrot.lane.b32.xlu0 %v4312_v13, %s4212_s18  ;;  %1570 = vrot.lane.b32.xlu2 %v350_v11, %s4213_s19  ;;  %v261_v11 = vld [vmem:[%s6716_s2 + $0x20] sm:$0xff] }
  0x5b   : > { %1364 = vrot.lane.b32.xlu1 %v349_v17, %s4212_s18 }
  0x5d   : > { %3616 = vmatmul.msk.bf16.gmra.mxu3 %vm352_vm1, %v3928_v38  ;;  %3612 = vmatmul.msk.bf16.gmra.mxu2 %vm352_vm1, %v3928_v38 }
  0x5f   : > { %3604 = vmatmul.msk.bf16.gmra.mxu0 %vm352_vm1, %v3928_v38  ;;  %3608 = vmatmul.msk.bf16.gmra.mxu1 %vm352_vm1, %v3928_v38 }
  0x61   : > { %1572 = vrot.lane.b32.xlu0 %v351_v16, %s4213_s19  ;;  %1568 = vrot.lane.b32.xlu2 %v349_v17, %s4213_s19  ;;  %v3930_v16 = vld [vmem:[%s6715_s1 + $0x28] sm:$0xff] }
  0x63   : > { %1566 = vrot.lane.b32.xlu1 %v4312_v13, %s4213_s19 }
  0x69   : > { %2194 = vrot.lane.b32.xlu0 %v4369_v34, %s4208_s4  ;;  %2190 = vrot.lane.b32.xlu2 %v4371_v35, %s4208_s4 }
  0x6b   : > { %2196 = vrot.lane.b32.xlu1 %v4373_v36, %s4208_s4 }
  0x71   : > { %2192 = vrot.lane.b32.xlu0 %v4384_v39, %s4208_s4  ;;  %2367 = vrot.lane.b32.xlu2 %v4373_v36, %s4209_s5  ;;  %s3954_s4 = smul.u32 112, %s4198_s15 }
  0x73   : > { %2365 = vrot.lane.b32.xlu1 %v4369_v34, %s4209_s5 }
  0x79   : > { %2361 = vrot.lane.b32.xlu0 %v4371_v35, %s4209_s5  ;;  %2536 = vrot.lane.b32.xlu2 %v4369_v34, %s4210_s6 }
  0x7b   : > { %2363 = vrot.lane.b32.xlu1 %v4384_v39, %s4209_s5  ;;  %s4220_s5 = smov 28  }
  0x81   : > { %2538 = vrot.lane.b32.xlu0 %v4373_v36, %s4210_s6  ;;  %2534 = vrot.lane.b32.xlu2 %v4384_v39, %s4210_s6 }
  0x83   : > { %2532 = vrot.lane.b32.xlu1 %v4371_v35, %s4210_s6  ;;  %v755_v40 = vpop.permute.xlu2 %754  ;;  %s4217_s6 = smov 68  }
  0x89   : > { %2707 = vrot.lane.b32.xlu0 %v4369_v34, %s4211_s9  ;;  %2703 = vrot.lane.b32.xlu2 %v4371_v35, %s4211_s9 }
  0x8b   : > { %2709 = vrot.lane.b32.xlu1 %v4373_v36, %s4211_s9  ;;  %v757_v42 = vpop.permute.xlu2 %756 }
  0x8c   : > { %v761_v47 = vsel %vm758_vm2, %v755_v40, %v757_v42  ;;  %v784_v49 = vsel %vm365_vm0, %v757_v42, 0 }
  0x8d   : > { %v781_v52 = vsel %vm365_vm0, %v761_v47, 0 }
  0x91   : > { %2705 = vrot.lane.b32.xlu0 %v4384_v39, %s4211_s9  ;;  %2880 = vrot.lane.b32.xlu2 %v4373_v36, %s4212_s18  ;;  %s3496_s9 = sshll.u32 %s5505_s29, 4  ;;  %s3497_s9 = int_to_ptr.vmem [resolvable:$true] %s3496_s9 }
  0x93   : > { %2878 = vrot.lane.b32.xlu1 %v4369_v34, %s4212_s18  ;;  %v4420_v43 = vpop.permute.xlu2 %958 }
  0x99   : > { %2874 = vrot.lane.b32.xlu0 %v4371_v35, %s4212_s18  ;;  %3049 = vrot.lane.b32.xlu2 %v4369_v34, %s4213_s19 }
  0x9b   : > { %v551_v44 = vpop.permute.xlu0 %550  ;;  %2876 = vrot.lane.b32.xlu1 %v4384_v39, %s4212_s18  ;;  %v4428_v45 = vpop.permute.xlu2 %956  ;;  %s4223_s18 = smov 20  }
  0x9c   : > { %v964_v1 = vsel %vm962_vm4, %v4428_v45, %v4420_v43 }
  0x9d   : > { %v547_v46 = vpop.permute.xlu1 %546  ;;  %v982_v6 = vsel %vm365_vm0, %v964_v1, 0 }
  0xa1   : > { %3051 = vrot.lane.b32.xlu0 %v4373_v36, %s4213_s19  ;;  %3047 = vrot.lane.b32.xlu2 %v4384_v39, %s4213_s19 }
  0xa3   : > { %v553_v48 = vpop.permute.xlu0 %552  ;;  %3045 = vrot.lane.b32.xlu1 %v4371_v35, %s4213_s19  ;;  %v4441_v53 = vpop.permute.xlu2 %1158 }
  0xa4   : > { %v580_v50 = vsel %vm365_vm0, %v553_v48, 0  ;;  %v557_v51 = vsel %vm554_vm3, %v551_v44, %v553_v48 }
  0xa5   : > { %v549_v54 = vpop.permute.xlu1 %548  ;;  %676 = vmatpush.bf16.msrb.mxu3 %v580_v50  ;;  %v577_v55 = vsel %vm365_vm0, %v557_v51, 0 }
  0xa6   : > { %v555_v57 = vsel %vm554_vm3, %v547_v46, %v549_v54  ;;  %v556_v58 = vsel %vm554_vm3, %v549_v54, %v551_v44  ;;  %647 = vmatpush.bf16.msrb.mxu2 %v577_v55 }
  0xa7   : > { %v571_v59 = vsel %vm365_vm0, %v555_v57, 0  ;;  %v574_v60 = vsel %vm365_vm0, %v556_v58, 0 }
  0xa8   : > { %589 = vmatpush.bf16.msrb.mxu0 %v571_v59  ;;  %618 = vmatpush.bf16.msrb.mxu1 %v574_v60 }
  0xa9   : > { %880 = vmatpush.bf16.msra.mxu3 %v784_v49  ;;  %3641 = vmatmul.msk.bf16.vlgmr.msrb.gmra.mxu2 %vm352_vm1, %v3929_v56 }
  0xaa   : > { %851 = vmatpush.bf16.msra.mxu2 %v781_v52  ;;  %3645 = vmatmul.msk.bf16.vlgmr.msrb.gmra.mxu3 %vm352_vm1, %v3929_v56  ;;  %v3933_v52 = vld [vmem:[%s6715_s1 + $0x40] sm:$0xff] }
  0xab   : > { %284 = vperm.xlu0 %4033, %v257_v61   ;;  %3633 = vmatmul.msk.bf16.vlgmr.msrb.gmra.mxu0 %vm352_vm1, %v3929_v56  ;;  %v751_v0 = vpop.permute.xlu0 %750  ;;  %v4467_v2 = vpop.permute.xlu2 %1368 }
  0xac   : > { %3637 = vmatmul.msk.bf16.vlgmr.msrb.gmra.mxu1 %vm352_vm1, %v3929_v56  ;;  %289 = vperm.xlu1 %4034, %v258_v62   ;;  %v4535_v41 = vpop.f32.mrf.mxu1 }
  0xad   : > { %294 = vperm.xlu2 %4035, %v259_v63   ;;  %v753_v3 = vpop.permute.xlu1 %752 }
  0xae   : > { %v759_v4 = vsel %vm758_vm2, %v751_v0, %v753_v3  ;;  %v760_v5 = vsel %vm758_vm2, %v753_v3, %v755_v40  ;;  %v4533_v40 = vpop.f32.mrf.mxu0 }
  0xaf   : > { %v775_v7 = vsel %vm365_vm0, %v759_v4, 0  ;;  %v778_v8 = vsel %vm365_vm0, %v760_v5, 0 }
  0xb0   : > { %822 = vmatpush.bf16.msra.mxu1 %v778_v8  ;;  %793 = vmatpush.bf16.msra.mxu0 %v775_v7  ;;  %v4547_v46 = vpop.f32.mrf.mxu2  ;;  %v3934_v7 = vld [vmem:[%s6715_s1 + $0x48] sm:$0xff] }
  0xb3   : > { %309 = vperm.xlu0 %4033, %v262_v9   ;;  %v961_v12 = vpop.permute.xlu0 %960  ;;  %v4486_v15 = vpop.permute.xlu2 %1570 }
  0xb4   : > { %1026 = vmatpush.bf16.msrb.mxu1 %v982_v6  ;;  %v988_v13 = vsel %vm365_vm0, %v961_v12, 0  ;;  %299 = vperm.xlu1 %4034, %v260_v10   ;;  %v965_v14 = vsel %vm962_vm4, %v4420_v43, %v961_v12  ;;  %v4554_v50 = vpop.f32.mrf.mxu1 }
  0xb5   : > { %304 = vperm.xlu2 %4035, %v261_v11   ;;  %v955_v17 = vpop.permute.xlu1 %954  ;;  %v985_v18 = vsel %vm365_vm0, %v965_v14, 0  ;;  %1084 = vmatpush.bf16.msrb.mxu3 %v988_v13 }
  0xb6   : > { %v963_v19 = vsel %vm962_vm4, %v955_v17, %v4428_v45  ;;  %1055 = vmatpush.bf16.msrb.mxu2 %v985_v18  ;;  %v4545_v45 = vpop.f32.mrf.mxu3  ;;  %v4551_v48 = vpop.f32.mrf.mxu0 }
  0xb7   : > { %v979_v20 = vsel %vm365_vm0, %v963_v19, 0 }
  0xb8   : > { %997 = vmatpush.bf16.msrb.mxu0 %v979_v20  ;;  %v4570_v60 = vpop.f32.mrf.mxu2 }
  0xb9   : > { %3642 = vmatmul.msk.bf16.gmra.mxu2 %vm352_vm1, %v3930_v16 }
  0xba   : > { %3646 = vmatmul.msk.bf16.gmra.mxu3 %vm352_vm1, %v3930_v16 }
  0xbb   : > { %3634 = vmatmul.msk.bf16.gmra.mxu0 %vm352_vm1, %v3930_v16  ;;  %v1163_v23 = vpop.permute.xlu0 %1162  ;;  %v4505_v24 = vpop.permute.xlu2 %1568 }
  0xbc   : > { %3638 = vmatmul.msk.bf16.gmra.mxu1 %vm352_vm1, %v3930_v16  ;;  %314 = vperm.xlu1 %4034, %v263_v21   ;;  %v4584_v1 = vpop.f32.mrf.mxu1 }
  0xbd   : > { %319 = vperm.xlu2 %4035, %v264_v22   ;;  %v1165_v25 = vpop.permute.xlu1 %1164 }
  0xbe   : > { %v1169_v49 = vsel %vm1166_vm5, %v1163_v23, %v1165_v25  ;;  %v1192_v58 = vsel %vm365_vm0, %v1165_v25, 0  ;;  %v4568_v59 = vpop.f32.mrf.mxu3  ;;  %v4582_v0 = vpop.f32.mrf.mxu0  ;;  %v3935_v25 = vld [vmem:[%s6715_s1 + $0x50] sm:$0xff] }
  0xbf   : > { %v1189_v57 = vsel %vm365_vm0, %v1169_v49, 0 }
  0xc0   : > { %v4588_v5 = vpop.f32.mrf.mxu2 }
  0xc3   : > { %v1161_v26 = vpop.permute.xlu0 %1160  ;;  %v4512_v29 = vpop.permute.xlu2 %2190 }
  0xc4   : > { %6756 = vst [vmem:[#allocation9_spill] sm:$0xff] %v4512_v29  ;;  %v1168_v55 = vsel %vm1166_vm5, %v1161_v26, %v1163_v23  ;;  %v1167_v56 = vsel %vm1166_vm5, %v4441_v53, %v1161_v26  ;;  %v4599_v10 = vpop.f32.mrf.mxu1 }
  0xc5   : > { %v4510_v28 = vpop.permute.xlu1 %1366  ;;  %v1186_v61 = vsel %vm365_vm0, %v1168_v55, 0  ;;  %v1183_v62 = vsel %vm365_vm0, %v1167_v56, 0 }
  0xc6   : > { %v4586_v4 = vpop.f32.mrf.mxu3  ;;  %v4597_v9 = vpop.f32.mrf.mxu0 }
  0xc8   : > { %v4609_v14 = vpop.f32.mrf.mxu2 }
  0xc9   : > { %3643 = vmatmul.msk.bf16.gmra.mxu2 %vm352_vm1, %v3931_v27 }
  0xca   : > { %3647 = vmatmul.msk.bf16.gmra.mxu3 %vm352_vm1, %v3931_v27 }
  0xcb   : > { %3635 = vmatmul.msk.bf16.gmra.mxu0 %vm352_vm1, %v3931_v27  ;;  %v4518_v30 = vpop.permute.xlu0 %1362  ;;  %v4522_v32 = vpop.permute.xlu2 %2367 }
  0xcc   : > { %3639 = vmatmul.msk.bf16.gmra.mxu1 %vm352_vm1, %v3931_v27  ;;  %6757 = vst [vmem:[#allocation10_spill] sm:$0xff] %v4522_v32  ;;  %v4619_v19 = vpop.f32.mrf.mxu1 }
  0xcd   : > { %v4520_v31 = vpop.permute.xlu1 %1364 }
  0xce   : > { %v4607_v13 = vpop.f32.mrf.mxu3  ;;  %v4617_v18 = vpop.f32.mrf.mxu0 }
  0xd3   : > { %v4524_v33 = vpop.permute.xlu0 %1572  ;;  %v4537_v42 = vpop.permute.xlu2 %2536 }
  0xd4   : > { %6758 = vst [vmem:[#allocation11_spill] sm:$0xff] %v4537_v42  ;;  %v4644_v56 = vpop.f32.mrf.mxu1 }
  0xd5   : > { %v4529_v38 = vpop.permute.xlu1 %1566 }
  0xd6   : > { %v4630_v27 = vpop.f32.mrf.mxu3 }
  0xd9   : > { %3644 = vmatmul.msk.bf16.gmra.mxu2 %vm352_vm1, %v3932_v37 }
  0xda   : > { %3648 = vmatmul.msk.bf16.gmra.mxu3 %vm352_vm1, %v3932_v37 }
  0xdb   : > { %3636 = vmatmul.msk.bf16.gmra.mxu0 %vm352_vm1, %v3932_v37  ;;  %v4541_v43 = vpop.permute.xlu0 %2194  ;;  %v4556_v51 = vpop.permute.xlu2 %2534 }
  0xdc   : > { %3640 = vmatmul.msk.bf16.gmra.mxu1 %vm352_vm1, %v3932_v37  ;;  %6759 = vst [vmem:[#allocation12_spill] sm:$0xff] %v4541_v43  ;;  %v4632_v37 = vpop.f32.mrf.mxu2 }
  0xdd   : > { %v4543_v44 = vpop.permute.xlu1 %2196  ;;  %6762 = vst [vmem:[#allocation15_spill] sm:$0xff] %v4556_v51 }
  0xde   : > { %6760 = vst [vmem:[#allocation13_spill] sm:$0xff] %v4543_v44 }
  0xe3   : > { %v4549_v47 = vpop.permute.xlu0 %2192  ;;  %v2704_v3 = vpop.permute.xlu2 %2703 }
  0xe4   : > { %6761 = vst [vmem:[#allocation14_spill] sm:$0xff] %v4549_v47 }
  0xe5   : > { %v4561_v54 = vpop.permute.xlu1 %2365 }
  0xe6   : > { %6763 = vst [vmem:[#allocation16_spill] sm:$0xff] %v4561_v54 }
  0xe9   : > { %3673 = vmatmul.msk.bf16.vlgmr.msra.gmra.mxu2 %vm352_vm1, %v3933_v52 }
  0xea   : > { %3677 = vmatmul.msk.bf16.vlgmr.msra.gmra.mxu3 %vm352_vm1, %v3933_v52  ;;  %1259 = vmatpush.bf16.msra.mxu2 %v1189_v57 }
  0xeb   : > { %1288 = vmatpush.bf16.msra.mxu3 %v1192_v58  ;;  %3665 = vmatmul.msk.bf16.vlgmr.msra.gmra.mxu0 %vm352_vm1, %v3933_v52  ;;  %v4578_v53 = vpop.permute.xlu0 %2361  ;;  %v4601_v11 = vpop.permute.xlu2 %2880 }
  0xec   : > { %3669 = vmatmul.msk.bf16.vlgmr.msra.gmra.mxu1 %vm352_vm1, %v3933_v52  ;;  %6764 = vst [vmem:[#allocation17_spill] sm:$0xff] %v4578_v53  ;;  %1201 = vmatpush.bf16.msra.mxu0 %v1183_v62  ;;  %v4642_v52 = vpop.f32.mrf.mxu0 }
  0xed   : > { %1230 = vmatpush.bf16.msra.mxu1 %v1186_v61  ;;  %v4580_v63 = vpop.permute.xlu1 %2363  ;;  %6768 = vst [vmem:[#allocation21_spill] sm:$0xff] %v4601_v11 }
  0xee   : > { %6765 = vst [vmem:[#allocation18_spill] sm:$0xff] %v4580_v63 }
  0xf3   : > { %v4590_v6 = vpop.permute.xlu0 %2538  ;;  %v3050_v20 = vpop.permute.xlu2 %3049 }
  0xf4   : > { %6766 = vst [vmem:[#allocation19_spill] sm:$0xff] %v4590_v6 }
  0xf5   : > { %v4595_v8 = vpop.permute.xlu1 %2532 }
  0xf6   : > { %6767 = vst [vmem:[#allocation20_spill] sm:$0xff] %v4595_v8 }
  0xf9   : > { %3674 = vmatmul.msk.bf16.gmra.mxu2 %vm352_vm1, %v3934_v7 }
  0xfa   : > { %3678 = vmatmul.msk.bf16.gmra.mxu3 %vm352_vm1, %v3934_v7 }
  0xfb   : > { %3666 = vmatmul.msk.bf16.gmra.mxu0 %vm352_vm1, %v3934_v7  ;;  %v2708_v12 = vpop.permute.xlu0 %2707  ;;  %v3048_v57 = vpop.permute.xlu2 %3047 }
  0xfc   : > { %3670 = vmatmul.msk.bf16.gmra.mxu1 %vm352_vm1, %v3934_v7  ;;  %v4647_v61 = vsel %vm1574_vm7, %v3048_v57, %v3050_v20  ;;  %v4655_v7 = vpop.f32.mrf.mxu3 }
  0xfd   : > { %v4611_v16 = vpop.permute.xlu1 %2709  ;;  %6774 = vst [vmem:[#allocation27_spill] sm:$0xff] %v4647_v61  ;;  %v3936_v61 = vld [vmem:[%s6715_s1 + $0x58] sm:$0xff] }
  0xfe   : > { %6769 = vst [vmem:[#allocation22_spill] sm:$0xff] %v4611_v16  ;;  %v4615_v17 = vsel %vm1166_vm5, %v2708_v12, %v4611_v16 }
  0xff   : > { %6770 = vst [vmem:[#allocation23_spill] sm:$0xff] %v4615_v17 }
 0x103   : > { %v2706_v21 = vpop.permute.xlu0 %2705 }
 0x104   : > { %v4622_v22 = vsel %vm1166_vm5, %v2706_v21, %v2708_v12  ;;  %v4625_v23 = vsel %vm1166_vm5, %v2704_v3, %v2706_v21  ;;  %v4657_v12 = vpop.f32.mrf.mxu2  ;;  %vm1958_vm5 = vcmask 880064  }
 0x105   : > { %6771 = vst [vmem:[#allocation24_spill] sm:$0xff] %v4622_v22  ;;  %v2879_v26 = vpop.permute.xlu1 %2878  ;;  %v1396_v22 = vsel %vm365_vm0, %v4467_v2, 0 }
 0x106   : > { %6772 = vst [vmem:[#allocation25_spill] sm:$0xff] %v4625_v23  ;;  %v4636_v49 = vsel %vm1370_vm6, %v2879_v26, %v4601_v11  ;;  %v1372_v11 = vsel %vm1370_vm6, %v4520_v31, %v4510_v28 }
 0x107   : > { %6773 = vst [vmem:[#allocation26_spill] sm:$0xff] %v4636_v49  ;;  %v1390_v51 = vsel %vm365_vm0, %v1372_v11, 0  ;;  %v4724_v11 = vpop.permute.xlu2 %294 }
 0x108   : > { %6782 = vst [vmem:[#allocation35_spill] sm:$0xff] %v4724_v11 }
 0x109   : > { %3675 = vmatmul.msk.bf16.gmra.mxu2 %vm352_vm1, %v3935_v25 }
 0x10a   : > { %3679 = vmatmul.msk.bf16.gmra.mxu3 %vm352_vm1, %v3935_v25 }
 0x10b   : > { %3667 = vmatmul.msk.bf16.gmra.mxu0 %vm352_vm1, %v3935_v25  ;;  %v2875_v55 = vpop.permute.xlu0 %2874 }
 0x10c   : > { %3671 = vmatmul.msk.bf16.gmra.mxu1 %vm352_vm1, %v3935_v25 }
 0x10d   : > { %v2877_v58 = vpop.permute.xlu1 %2876 }
 0x10e   : > { %v4650_v62 = vsel %vm1370_vm6, %v2875_v55, %v2877_v58  ;;  %v4653_v3 = vsel %vm1370_vm6, %v2877_v58, %v2879_v26  ;;  %v4668_v55 = vpop.f32.mrf.mxu0  ;;  %v4677_v58 = vpop.f32.mrf.mxu3 }
 0x10f   : > { %6775 = vst [vmem:[#allocation28_spill] sm:$0xff] %v4650_v62  ;;  %v4670_v62 = vpop.f32.mrf.mxu1  ;;  %v4759_v32 = vpop.permute.xlu2 %304 }
 0x110   : > { %6776 = vst [vmem:[#allocation29_spill] sm:$0xff] %v4653_v3  ;;  %v3937_v3 = vld [vmem:[%s6715_s1 + $0x60] sm:$0xff] }
 0x111   : > { %6784 = vst [vmem:[#allocation37_spill] sm:$0xff] %v4759_v32 }
 0x113   : > { %v4659_v21 = vpop.permute.xlu0 %3051 }
 0x114   : > { %6777 = vst [vmem:[#allocation30_spill] sm:$0xff] %v4659_v21  ;;  %v4663_v25 = vsel %vm1574_vm7, %v3050_v20, %v4659_v21  ;;  %v4679_v20 = vpop.f32.mrf.mxu2 }
 0x115   : > { %6778 = vst [vmem:[#allocation31_spill] sm:$0xff] %v4663_v25  ;;  %v3046_v49 = vpop.permute.xlu1 %3045 }
 0x116   : > { %v4673_v26 = vsel %vm1574_vm7, %v3046_v49, %v3048_v57  ;;  %v4683_v25 = vpop.f32.mrf.mxu0  ;;  %v1373_v49 = vsel %vm1370_vm6, %v4510_v28, %v4467_v2  ;;  %v4690_v57 = vpop.f32.mrf.mxu3 }
 0x117   : > { %6779 = vst [vmem:[#allocation32_spill] sm:$0xff] %v4673_v26  ;;  %v4685_v21 = vpop.f32.mrf.mxu1  ;;  %v1393_v23 = vsel %vm365_vm0, %v1373_v49, 0 }
 0x118   : > { %6780 = vst [vmem:[#allocation33_spill] sm:$0xff] %v4690_v57 }
 0x119   : > { %3676 = vmatmul.msk.bf16.gmra.mxu2 %vm352_vm1, %v3936_v61 }
 0x11a   : > { %3680 = vmatmul.msk.bf16.gmra.mxu3 %vm352_vm1, %v3936_v61 }
 0x11b   : > { %3668 = vmatmul.msk.bf16.gmra.mxu0 %vm352_vm1, %v3936_v61 }
 0x11c   : > { %3672 = vmatmul.msk.bf16.gmra.mxu1 %vm352_vm1, %v3936_v61  ;;  %v4692_v26 = vpop.f32.mrf.mxu2  ;;  %v1371_v61 = vsel %vm1370_vm6, %v4518_v30, %v4520_v31  ;;  %vm1996_vm6 = vcmask 1044320  }
 0x11d   : > { %6781 = vst [vmem:[#allocation34_spill] sm:$0xff] %v4692_v26  ;;  %v1387_v8 = vsel %vm365_vm0, %v1371_v61, 0  ;;  %v4827_v26 = vpop.permute.xlu0 %284 }
 0x11e   : > { %6790 = vst [vmem:[#allocation43_spill] sm:$0xff] %v4827_v26 }
 0x128   : > { %v4706_v17 = vpop.f32.mrf.mxu0 }
 0x129   : > { %v4708_v16 = vpop.f32.mrf.mxu1  ;;  %3705 = vmatmul.msk.bf16.vlgmr.msrb.gmra.mxu2 %vm352_vm1, %v3937_v3 }
 0x12a   : > { %3709 = vmatmul.msk.bf16.vlgmr.msrb.gmra.mxu3 %vm352_vm1, %v3937_v3  ;;  %1463 = vmatpush.bf16.msrb.mxu2 %v1393_v23 }
 0x12b   : > { %1492 = vmatpush.bf16.msrb.mxu3 %v1396_v22  ;;  %3697 = vmatmul.msk.bf16.vlgmr.msrb.gmra.mxu0 %vm352_vm1, %v3937_v3  ;;  %v3938_v22 = vld [vmem:[%s6715_s1 + $0x68] sm:$0xff] }
 0x12c   : > { %3701 = vmatmul.msk.bf16.vlgmr.msrb.gmra.mxu1 %vm352_vm1, %v3937_v3  ;;  %v4718_v2 = vpop.f32.mrf.mxu2  ;;  %1405 = vmatpush.bf16.msrb.mxu0 %v1387_v8  ;;  %v502_v3 = vadd.f32 %v4582_v0, %v4724_v11  ;;  %v505_v0 = vadd.f32 %v4586_v4, %v4724_v11 }
 0x12d   : > { %v4716_v28 = vpop.f32.mrf.mxu3  ;;  %1434 = vmatpush.bf16.msrb.mxu1 %v1390_v51  ;;  %v503_v51 = vadd.f32 %v4584_v1, %v4724_v11  ;;  %v504_v1 = vadd.f32 %v4588_v5, %v4724_v11  ;;  %v3939_v5 = vld [vmem:[%s6715_s1 + $0x70] sm:$0xff] }
 0x130   : > { %v4720_v30 = vpop.f32.mrf.mxu0 }
 0x131   : > { %v4722_v31 = vpop.f32.mrf.mxu1 }
 0x134   : > { %v4728_v23 = vpop.f32.mrf.mxu2 }
 0x135   : > { %v4726_v49 = vpop.f32.mrf.mxu3 }
 0x138   : > { %v596_v8 = vpop.f32.mrf.mxu0 }
 0x139   : > { %v625_v61 = vpop.f32.mrf.mxu1  ;;  %v4737_v42 = vadd.f32 %v596_v8, %v502_v3  ;;  %3706 = vmatmul.msk.bf16.gmra.mxu2 %vm352_vm1, %v3938_v22  ;;  %v4753_v8 = vpop.permute.xlu1 %289 }
 0x13a   : > { %v4739_v6 = vadd.f32 %v625_v61, %v503_v51  ;;  %3710 = vmatmul.msk.bf16.gmra.mxu3 %vm352_vm1, %v3938_v22  ;;  %6783 = vst [vmem:[#allocation36_spill] sm:$0xff] %v4753_v8 }
 0x13b   : > { %3698 = vmatmul.msk.bf16.gmra.mxu0 %vm352_vm1, %v3938_v22 }
 0x13c   : > { %3702 = vmatmul.msk.bf16.gmra.mxu1 %vm352_vm1, %v3938_v22  ;;  %v654_v63 = vpop.f32.mrf.mxu2 }
 0x13d   : > { %v683_v53 = vpop.f32.mrf.mxu3  ;;  %v4751_v51 = vadd.f32 %v654_v63, %v504_v1  ;;  %v511_v63 = vadd.f32 %v4619_v19, %v4759_v32  ;;  %v512_v19 = vadd.f32 %v4632_v37, %v4759_v32 }
 0x13e   : > { %v4749_v3 = vadd.f32 %v683_v53, %v505_v0  ;;  %v510_v53 = vadd.f32 %v4617_v18, %v4759_v32  ;;  %v513_v18 = vadd.f32 %v4630_v27, %v4759_v32  ;;  %v3940_v27 = vld [vmem:[%s6715_s1 + $0x78] sm:$0xff] }
 0x140   : > { %v4755_v61 = vpop.f32.mrf.mxu0 }
 0x141   : > { %v4757_v54 = vpop.f32.mrf.mxu1  ;;  %v4772_v11 = vpop.permute.xlu1 %299 }
 0x142   : > { %6785 = vst [vmem:[#allocation38_spill] sm:$0xff] %v4772_v11 }
 0x144   : > { %v4763_v4 = vpop.f32.mrf.mxu2 }
 0x145   : > { %v4761_v22 = vpop.f32.mrf.mxu3 }
 0x148   : > { %v601_v0 = vpop.f32.mrf.mxu0 }
 0x149   : > { %v630_v1 = vpop.f32.mrf.mxu1  ;;  %v4774_v34 = vadd.f32 %v601_v0, %v510_v53  ;;  %3707 = vmatmul.msk.bf16.gmra.mxu2 %vm352_vm1, %v3939_v5  ;;  %v4794_v36 = vpop.permute.xlu1 %314 }
 0x14a   : > { %v4776_v39 = vadd.f32 %v630_v1, %v511_v63  ;;  %3711 = vmatmul.msk.bf16.gmra.mxu3 %vm352_vm1, %v3939_v5  ;;  %6786 = vst [vmem:[#allocation39_spill] sm:$0xff] %v4794_v36 }
 0x14b   : > { %3699 = vmatmul.msk.bf16.gmra.mxu0 %vm352_vm1, %v3939_v5 }
 0x14c   : > { %3703 = vmatmul.msk.bf16.gmra.mxu1 %vm352_vm1, %v3939_v5  ;;  %v659_v29 = vpop.f32.mrf.mxu2 }
 0x14d   : > { %v688_v35 = vpop.f32.mrf.mxu3  ;;  %v4788_v63 = vadd.f32 %v659_v29, %v512_v19  ;;  %v519_v29 = vadd.f32 %v4670_v62, %v4794_v36  ;;  %v520_v62 = vadd.f32 %v4679_v20, %v4794_v36  ;;  %v495_v20 = vadd.f32 %v4535_v41, %v4827_v26 }
 0x14e   : > { %v4786_v53 = vadd.f32 %v688_v35, %v513_v18  ;;  %v518_v35 = vadd.f32 %v4668_v55, %v4794_v36  ;;  %v521_v55 = vadd.f32 %v4677_v58, %v4794_v36  ;;  %v1600_v36 = vsel %vm365_vm0, %v4524_v33, 0 }
 0x14f   : > { %v497_v41 = vadd.f32 %v4545_v45, %v4827_v26 }
 0x150   : > { %v4790_v0 = vpop.f32.mrf.mxu0 }
 0x151   : > { %v4792_v1 = vpop.f32.mrf.mxu1 }
 0x154   : > { %v4798_v5 = vpop.f32.mrf.mxu2 }
 0x155   : > { %v4796_v47 = vpop.f32.mrf.mxu3 }
 0x158   : > { %v606_v37 = vpop.f32.mrf.mxu0 }
 0x159   : > { %v635_v18 = vpop.f32.mrf.mxu1  ;;  %v4807_v19 = vadd.f32 %v606_v37, %v518_v35  ;;  %3708 = vmatmul.msk.bf16.gmra.mxu2 %vm352_vm1, %v3940_v27 }
 0x15a   : > { %v4809_v32 = vadd.f32 %v635_v18, %v519_v29  ;;  %3712 = vmatmul.msk.bf16.gmra.mxu3 %vm352_vm1, %v3940_v27 }
 0x15b   : > { %3700 = vmatmul.msk.bf16.gmra.mxu0 %vm352_vm1, %v3940_v27 }
 0x15c   : > { %3704 = vmatmul.msk.bf16.gmra.mxu1 %vm352_vm1, %v3940_v27  ;;  %v664_v44 = vpop.f32.mrf.mxu2  ;;  %v1577_v27 = vsel %vm1574_vm7, %v4486_v15, %v4524_v33 }
 0x15d   : > { %v693_v43 = vpop.f32.mrf.mxu3  ;;  %v4821_v29 = vadd.f32 %v664_v44, %v520_v62  ;;  %v494_v44 = vadd.f32 %v4533_v40, %v4827_v26  ;;  %v1575_v62 = vsel %vm1574_vm7, %v4529_v38, %v4505_v24  ;;  %v699_v40 = vadd.f32 %v4708_v16, %v495_v20 }
 0x15e   : > { %v4819_v35 = vadd.f32 %v693_v43, %v521_v55  ;;  %v1576_v43 = vsel %vm1574_vm7, %v4505_v24, %v4486_v15  ;;  %v3941_v55 = vld [vmem:[%s6715_s1 + $0x80] sm:$0xff]  ;;  %v496_v24 = vadd.f32 %v4547_v46, %v4827_v26  ;;  %v701_v16 = vadd.f32 %v4716_v28, %v497_v41 }
 0x15f   : > { %6787 = vst [vmem:[#allocation40_spill] sm:$0xff] %v4821_v29  ;;  %v698_v15 = vadd.f32 %v4706_v17, %v494_v44  ;;  %v1591_v29 = vsel %vm365_vm0, %v1575_v62, 0  ;;  %vm1997_vm7 = vcmask 261124  }
 0x160   : > { %v4823_v37 = vpop.f32.mrf.mxu0  ;;  %v700_v45 = vadd.f32 %v4718_v2, %v496_v24  ;;  %v506_v24 = vadd.f32 %v4597_v9, %v4772_v11  ;;  %v508_v9 = vadd.f32 %v4609_v14, %v4772_v11 }
 0x161   : > { %6788 = vst [vmem:[#allocation41_spill] sm:$0xff] %v4823_v37  ;;  %v4825_v18 = vpop.f32.mrf.mxu1 }
 0x162   : > { %6789 = vst [vmem:[#allocation42_spill] sm:$0xff] %v4825_v18 }
 0x164   : > { %v4834_v57 = vpop.f32.mrf.mxu2 }
 0x165   : > { %v4832_v58 = vpop.f32.mrf.mxu3  ;;  %6792 = vst [vmem:[#allocation45_spill] sm:$0xff] %v4834_v57  ;;  %v1597_v57 = vsel %vm365_vm0, %v1577_v27, 0 }
 0x166   : > { %6791 = vst [vmem:[#allocation44_spill] sm:$0xff] %v4832_v58  ;;  %v1594_v58 = vsel %vm365_vm0, %v1576_v43, 0 }
 0x168   : > { %v795_v18 = vpop.f32.mrf.mxu0 }
 0x169   : > { %v824_v37 = vpop.f32.mrf.mxu1  ;;  %v4860_v38 = vadd.f32 %v795_v18, %v698_v15  ;;  %3737 = vmatmul.msk.bf16.vlgmr.msra.gmra.mxu2 %vm352_vm1, %v3941_v55  ;;  %v499_v18 = vadd.f32 %v4554_v50, %v4753_v8 }
 0x16a   : > { %v4862_v33 = vadd.f32 %v824_v37, %v699_v40  ;;  %3741 = vmatmul.msk.bf16.vlgmr.msra.gmra.mxu3 %vm352_vm1, %v3941_v55  ;;  %1667 = vmatpush.bf16.msra.mxu2 %v1597_v57  ;;  %v498_v37 = vadd.f32 %v4551_v48, %v4753_v8 }
 0x16b   : > { %1696 = vmatpush.bf16.msra.mxu3 %v1600_v36  ;;  %3729 = vmatmul.msk.bf16.vlgmr.msra.gmra.mxu0 %vm352_vm1, %v3941_v55  ;;  %v703_v2 = vadd.f32 %v4722_v31, %v499_v18  ;;  %v509_v18 = vadd.f32 %v4607_v13, %v4772_v11  ;;  %v3943_v13 = vld [vmem:[%s6715_s1 + $0x90] sm:$0xff] }
 0x16c   : > { %3733 = vmatmul.msk.bf16.vlgmr.msra.gmra.mxu1 %vm352_vm1, %v3941_v55  ;;  %v853_v46 = vpop.f32.mrf.mxu2  ;;  %1609 = vmatpush.bf16.msra.mxu0 %v1591_v29  ;;  %v702_v28 = vadd.f32 %v4720_v30, %v498_v37  ;;  %v500_v29 = vadd.f32 %v4570_v60, %v4753_v8 }
 0x16d   : > { %v882_v17 = vpop.f32.mrf.mxu3  ;;  %1638 = vmatpush.bf16.msra.mxu1 %v1594_v58  ;;  %v4876_v36 = vadd.f32 %v853_v46, %v700_v45  ;;  %v501_v58 = vadd.f32 %v4568_v59, %v4753_v8  ;;  %v3942_v59 = vld [vmem:[%s6715_s1 + $0x88] sm:$0xff]  ;;  %v710_v45 = vadd.f32 %v4755_v61, %v506_v24 }
 0x16e   : > { %v4874_v57 = vadd.f32 %v882_v17, %v701_v16  ;;  %v704_v20 = vadd.f32 %v4728_v23, %v500_v29 }
 0x16f   : > { %v705_v50 = vadd.f32 %v4726_v49, %v501_v58 }
 0x170   : > { %v797_v27 = vpop.f32.mrf.mxu0 }
 0x171   : > { %v826_v43 = vpop.f32.mrf.mxu1  ;;  %v4884_v48 = vadd.f32 %v797_v27, %v702_v28 }
 0x172   : > { %v4886_v44 = vadd.f32 %v826_v43, %v703_v2 }
 0x174   : > { %v855_v30 = vpop.f32.mrf.mxu2 }
 0x175   : > { %v884_v55 = vpop.f32.mrf.mxu3  ;;  %v4892_v31 = vadd.f32 %v855_v30, %v704_v20 }
 0x176   : > { %v4890_v62 = vadd.f32 %v884_v55, %v705_v50 }
 0x178   : > { %v800_v15 = vpop.f32.mrf.mxu0 }
 0x179   : > { %v829_v60 = vpop.f32.mrf.mxu1  ;;  %v4898_v40 = vadd.f32 %v800_v15, %v4737_v42  ;;  %3738 = vmatmul.msk.bf16.gmra.mxu2 %vm352_vm1, %v3942_v59  ;;  %v507_v42 = vadd.f32 %v4599_v10, %v4772_v11 }
 0x17a   : > { %v4901_v41 = vadd.f32 %v829_v60, %v4739_v6  ;;  %3742 = vmatmul.msk.bf16.gmra.mxu3 %vm352_vm1, %v3942_v59 }
 0x17b   : > { %3730 = vmatmul.msk.bf16.gmra.mxu0 %vm352_vm1, %v3942_v59  ;;  %v711_v17 = vadd.f32 %v4757_v54, %v507_v42 }
 0x17c   : > { %3734 = vmatmul.msk.bf16.gmra.mxu1 %vm352_vm1, %v3942_v59  ;;  %v858_v23 = vpop.f32.mrf.mxu2 }
 0x17d   : > { %v887_v49 = vpop.f32.mrf.mxu3  ;;  %v4915_v6 = vadd.f32 %v858_v23, %v4751_v51  ;;  %v712_v51 = vadd.f32 %v4763_v4, %v508_v9  ;;  %v6795_v9 = vld [vmem:[#allocation40_spill] sm:$0xff] }
 0x17e   : > { %v4912_v16 = vadd.f32 %v887_v49, %v4749_v3  ;;  %v713_v3 = vadd.f32 %v4761_v22, %v509_v18  ;;  %v4944_v22 = vpop.permute.xlu0 %309 }
 0x17f   : > { %6793 = vst [vmem:[#allocation46_spill] sm:$0xff] %v4944_v22  ;;  %v514_v20 = vadd.f32 %v4642_v52, %v4944_v22  ;;  %v517_v49 = vadd.f32 %v4655_v7, %v4944_v22  ;;  %v516_v52 = vadd.f32 %v4657_v12, %v4944_v22  ;;  %v3944_v7 = vld [vmem:[%s6715_s1 + $0x98] sm:$0xff] }
 0x180   : > { %v802_v46 = vpop.f32.mrf.mxu0 }
 0x181   : > { %v831_v37 = vpop.f32.mrf.mxu1  ;;  %v4923_v28 = vadd.f32 %v802_v46, %v710_v45  ;;  %v718_v30 = vadd.f32 %v4790_v0, %v514_v20 }
 0x182   : > { %v4925_v10 = vadd.f32 %v831_v37, %v711_v17 }
 0x184   : > { %v860_v61 = vpop.f32.mrf.mxu2 }
 0x185   : > { %v889_v2 = vpop.f32.mrf.mxu3  ;;  %v4931_v54 = vadd.f32 %v860_v61, %v712_v51  ;;  %v6796_v51 = vld [vmem:[#allocation41_spill] sm:$0xff]  ;;  %v6797_v61 = vld [vmem:[#allocation42_spill] sm:$0xff] }
 0x186   : > { %v4929_v27 = vadd.f32 %v889_v2, %v713_v3 }
 0x188   : > { %v805_v43 = vpop.f32.mrf.mxu0 }
 0x189   : > { %v834_v14 = vpop.f32.mrf.mxu1  ;;  %v4937_v58 = vadd.f32 %v805_v43, %v4774_v34  ;;  %3739 = vmatmul.msk.bf16.gmra.mxu2 %vm352_vm1, %v3943_v13  ;;  %v515_v34 = vadd.f32 %v4644_v56, %v4944_v22 }
 0x18a   : > { %v4940_v29 = vadd.f32 %v834_v14, %v4776_v39  ;;  %3743 = vmatmul.msk.bf16.gmra.mxu3 %vm352_vm1, %v3943_v13 }
 0x18b   : > { %3731 = vmatmul.msk.bf16.gmra.mxu0 %vm352_vm1, %v3943_v13  ;;  %v719_v59 = vadd.f32 %v4792_v1, %v515_v34 }
 0x18c   : > { %3735 = vmatmul.msk.bf16.gmra.mxu1 %vm352_vm1, %v3943_v13  ;;  %v863_v50 = vpop.f32.mrf.mxu2 }
 0x18d   : > { %v892_v4 = vpop.f32.mrf.mxu3  ;;  %v4956_v55 = vadd.f32 %v863_v50, %v4788_v63  ;;  %v720_v63 = vadd.f32 %v4798_v5, %v516_v52 }
 0x18e   : > { %v4953_v39 = vadd.f32 %v892_v4, %v4786_v53  ;;  %v721_v53 = vadd.f32 %v4796_v47, %v517_v49  ;;  %v4985_v47 = vpop.permute.xlu2 %319  ;;  %v6798_v4 = vld [vmem:[#allocation33_spill] sm:$0xff] }
 0x18f   : > { %6794 = vst [vmem:[#allocation47_spill] sm:$0xff] %v4985_v47  ;;  %v522_v18 = vadd.f32 %v4683_v25, %v4985_v47  ;;  %v525_v50 = vadd.f32 %v6798_v4, %v4985_v47  ;;  %v6799_v25 = vld [vmem:[#allocation34_spill] sm:$0xff] }
 0x190   : > { %v807_v15 = vpop.f32.mrf.mxu0  ;;  %v524_v20 = vadd.f32 %v6799_v25, %v4985_v47 }
 0x191   : > { %v836_v60 = vpop.f32.mrf.mxu1  ;;  %v4964_v23 = vadd.f32 %v807_v15, %v718_v30  ;;  %v726_v2 = vadd.f32 %v6796_v51, %v522_v18 }
 0x192   : > { %v4966_v56 = vadd.f32 %v836_v60, %v719_v59  ;;  %v6801_v59 = vld [vmem:[#allocation45_spill] sm:$0xff] }
 0x193   : > { %v728_v15 = vadd.f32 %v6801_v59, %v524_v20 }
 0x194   : > { %v865_v0 = vpop.f32.mrf.mxu2 }
 0x195   : > { %v894_v24 = vpop.f32.mrf.mxu3  ;;  %v4972_v1 = vadd.f32 %v865_v0, %v720_v63  ;;  %v3945_v63 = vld [vmem:[%s6715_s1 + $0xa0] sm:$0xff] }
 0x196   : > { %v4970_v42 = vadd.f32 %v894_v24, %v721_v53 }
 0x198   : > { %v810_v45 = vpop.f32.mrf.mxu0 }
 0x199   : > { %v839_v12 = vpop.f32.mrf.mxu1  ;;  %v4978_v17 = vadd.f32 %v810_v45, %v4807_v19  ;;  %3740 = vmatmul.msk.bf16.gmra.mxu2 %vm352_vm1, %v3944_v7  ;;  %v523_v19 = vadd.f32 %v4685_v21, %v4985_v47 }
 0x19a   : > { %v4981_v46 = vadd.f32 %v839_v12, %v4809_v32  ;;  %3744 = vmatmul.msk.bf16.gmra.mxu3 %vm352_vm1, %v3944_v7 }
 0x19b   : > { %3732 = vmatmul.msk.bf16.gmra.mxu0 %vm352_vm1, %v3944_v7  ;;  %v727_v13 = vadd.f32 %v6797_v61, %v523_v19 }
 0x19c   : > { %3736 = vmatmul.msk.bf16.gmra.mxu1 %vm352_vm1, %v3944_v7  ;;  %v868_v37 = vpop.f32.mrf.mxu2 }
 0x19d   : > { %v897_v5 = vpop.f32.mrf.mxu3  ;;  %v4997_v3 = vadd.f32 %v868_v37, %v6795_v9 }
 0x19e   : > { %v4994_v32 = vadd.f32 %v897_v5, %v4819_v35  ;;  %v6800_v35 = vld [vmem:[#allocation44_spill] sm:$0xff] }
 0x19f   : > { %v729_v30 = vadd.f32 %v6800_v35, %v525_v50 }
 0x1a0   : > { %v812_v43 = vpop.f32.mrf.mxu0 }
 0x1a1   : > { %v841_v14 = vpop.f32.mrf.mxu1  ;;  %v5005_v34 = vadd.f32 %v812_v43, %v726_v2 }
 0x1a2   : > { %v5007_v21 = vadd.f32 %v841_v14, %v727_v13 }
 0x1a4   : > { %v870_v49 = vpop.f32.mrf.mxu2 }
 0x1a5   : > { %v899_v60 = vpop.f32.mrf.mxu3  ;;  %v5013_v53 = vadd.f32 %v870_v49, %v728_v15 }
 0x1a6   : > { %v5011_v52 = vadd.f32 %v899_v60, %v729_v30 }
 0x1a8   : > { %v999_v24 = vpop.f32.mrf.mxu0 }
 0x1a9   : > { %v1028_v0 = vpop.f32.mrf.mxu1  ;;  %v5019_v7 = vadd.f32 %v999_v24, %v4860_v38  ;;  %3769 = vmatmul.msk.bf16.vlgmr.msrb.gmra.mxu2 %vm352_vm1, %v3945_v63 }
 0x1aa   : > { %v5022_v45 = vadd.f32 %v1028_v0, %v4862_v33  ;;  %3773 = vmatmul.msk.bf16.vlgmr.msrb.gmra.mxu3 %vm352_vm1, %v3945_v63 }
 0x1ab   : > { %3761 = vmatmul.msk.bf16.vlgmr.msrb.gmra.mxu0 %vm352_vm1, %v3945_v63 }
 0x1ac   : > { %3765 = vmatmul.msk.bf16.vlgmr.msrb.gmra.mxu1 %vm352_vm1, %v3945_v63  ;;  %v1057_v5 = vpop.f32.mrf.mxu2 }
 0x1ad   : > { %v1086_v12 = vpop.f32.mrf.mxu3  ;;  %v5032_v18 = vadd.f32 %v1057_v5, %v4876_v36 }
 0x1ae   : > { %v5029_v37 = vadd.f32 %v1086_v12, %v4874_v57  ;;  %v3946_v57 = vld [vmem:[%s6715_s1 + $0xa8] sm:$0xff] }
 0x1b0   : > { %v1001_v38 = vpop.f32.mrf.mxu0 }
 0x1b1   : > { %v1030_v19 = vpop.f32.mrf.mxu1  ;;  %v5035_v33 = vadd.f32 %v1001_v38, %v4884_v48 }
 0x1b2   : > { %v5038_v9 = vadd.f32 %v1030_v19, %v4886_v44 }
 0x1b4   : > { %v1059_v2 = vpop.f32.mrf.mxu2 }
 0x1b5   : > { %v1088_v51 = vpop.f32.mrf.mxu3  ;;  %v5044_v13 = vadd.f32 %v1059_v2, %v4892_v31 }
 0x1b6   : > { %v5041_v61 = vadd.f32 %v1088_v51, %v4890_v62 }
 0x1b8   : > { %v1004_v36 = vpop.f32.mrf.mxu0 }
 0x1b9   : > { %v1033_v43 = vpop.f32.mrf.mxu1  ;;  %v5050_v48 = vadd.f32 %v1004_v36, %v4898_v40  ;;  %3770 = vmatmul.msk.bf16.gmra.mxu2 %vm352_vm1, %v3946_v57 }
 0x1ba   : > { %v5053_v44 = vadd.f32 %v1033_v43, %v4901_v41  ;;  %3774 = vmatmul.msk.bf16.gmra.mxu3 %vm352_vm1, %v3946_v57 }
 0x1bb   : > { %3762 = vmatmul.msk.bf16.gmra.mxu0 %vm352_vm1, %v3946_v57 }
 0x1bc   : > { %3766 = vmatmul.msk.bf16.gmra.mxu1 %vm352_vm1, %v3946_v57  ;;  %v1062_v31 = vpop.f32.mrf.mxu2 }
 0x1bd   : > { %v1091_v62 = vpop.f32.mrf.mxu3  ;;  %v5063_v4 = vadd.f32 %v1062_v31, %v4915_v6 }
 0x1be   : > { %v5060_v14 = vadd.f32 %v1091_v62, %v4912_v16  ;;  %v3947_v16 = vld [vmem:[%s6715_s1 + $0xb0] sm:$0xff] }
 0x1c0   : > { %v1006_v40 = vpop.f32.mrf.mxu0 }
 0x1c1   : > { %v1035_v50 = vpop.f32.mrf.mxu1  ;;  %v5066_v41 = vadd.f32 %v1006_v40, %v4923_v28 }
 0x1c2   : > { %v5069_v25 = vadd.f32 %v1035_v50, %v4925_v10 }
 0x1c4   : > { %v1064_v35 = vpop.f32.mrf.mxu2 }
 0x1c5   : > { %v1093_v20 = vpop.f32.mrf.mxu3  ;;  %v5075_v59 = vadd.f32 %v1064_v35, %v4931_v54 }
 0x1c6   : > { %v5072_v30 = vadd.f32 %v1093_v20, %v4929_v27 }
 0x1c8   : > { %v1009_v6 = vpop.f32.mrf.mxu0 }
 0x1c9   : > { %v1038_v15 = vpop.f32.mrf.mxu1  ;;  %v5081_v28 = vadd.f32 %v1009_v6, %v4937_v58  ;;  %3771 = vmatmul.msk.bf16.gmra.mxu2 %vm352_vm1, %v3947_v16 }
 0x1ca   : > { %v5084_v10 = vadd.f32 %v1038_v15, %v4940_v29  ;;  %3775 = vmatmul.msk.bf16.gmra.mxu3 %vm352_vm1, %v3947_v16 }
 0x1cb   : > { %3763 = vmatmul.msk.bf16.gmra.mxu0 %vm352_vm1, %v3947_v16 }
 0x1cc   : > { %3767 = vmatmul.msk.bf16.gmra.mxu1 %vm352_vm1, %v3947_v16  ;;  %v1067_v54 = vpop.f32.mrf.mxu2 }
 0x1cd   : > { %v1096_v27 = vpop.f32.mrf.mxu3  ;;  %v5094_v49 = vadd.f32 %v1067_v54, %v4956_v55 }
 0x1ce   : > { %v5091_v60 = vadd.f32 %v1096_v27, %v4953_v39  ;;  %v3948_v39 = vld [vmem:[%s6715_s1 + $0xb8] sm:$0xff] }
 0x1d0   : > { %v1011_v58 = vpop.f32.mrf.mxu0 }
 0x1d1   : > { %v1040_v63 = vpop.f32.mrf.mxu1  ;;  %v5097_v29 = vadd.f32 %v1011_v58, %v4964_v23 }
 0x1d2   : > { %v5100_v24 = vadd.f32 %v1040_v63, %v4966_v56 }
 0x1d4   : > { %v1069_v12 = vpop.f32.mrf.mxu2 }
 0x1d5   : > { %v1098_v0 = vpop.f32.mrf.mxu3  ;;  %v5106_v38 = vadd.f32 %v1069_v12, %v4972_v1 }
 0x1d6   : > { %v5103_v5 = vadd.f32 %v1098_v0, %v4970_v42 }
 0x1d8   : > { %v1014_v55 = vpop.f32.mrf.mxu0 }
 0x1d9   : > { %v1043_v19 = vpop.f32.mrf.mxu1  ;;  %v5112_v23 = vadd.f32 %v1014_v55, %v4978_v17  ;;  %3772 = vmatmul.msk.bf16.gmra.mxu2 %vm352_vm1, %v3948_v39 }
 0x1da   : > { %v5115_v56 = vadd.f32 %v1043_v19, %v4981_v46  ;;  %3776 = vmatmul.msk.bf16.gmra.mxu3 %vm352_vm1, %v3948_v39  ;;  %v6802_v19 = vld [vmem:[#allocation13_spill] sm:$0xff] }
 0x1db   : > { %3764 = vmatmul.msk.bf16.gmra.mxu0 %vm352_vm1, %v3948_v39 }
 0x1dc   : > { %3768 = vmatmul.msk.bf16.gmra.mxu1 %vm352_vm1, %v3948_v39  ;;  %v1072_v1 = vpop.f32.mrf.mxu2 }
 0x1dd   : > { %v1101_v42 = vpop.f32.mrf.mxu3  ;;  %v5125_v2 = vadd.f32 %v1072_v1, %v4997_v3 }
 0x1de   : > { %v5122_v51 = vadd.f32 %v1101_v42, %v4994_v32  ;;  %v3949_v32 = vld [vmem:[%s6715_s1 + $0xc0] sm:$0xff]  ;;  %v2211_v42 = vsel %vm365_vm0, %v6802_v19, 0 }
 0x1e0   : > { %v1016_v17 = vpop.f32.mrf.mxu0 }
 0x1e1   : > { %v1045_v57 = vpop.f32.mrf.mxu1  ;;  %v5128_v46 = vadd.f32 %v1016_v17, %v5005_v34 }
 0x1e2   : > { %v5131_v36 = vadd.f32 %v1045_v57, %v5007_v21  ;;  %v6803_v57 = vld [vmem:[#allocation12_spill] sm:$0xff] }
 0x1e4   : > { %v1074_v62 = vpop.f32.mrf.mxu2 }
 0x1e5   : > { %v1103_v43 = vpop.f32.mrf.mxu3  ;;  %v5137_v40 = vadd.f32 %v1074_v62, %v5013_v53 }
 0x1e6   : > { %v5134_v31 = vadd.f32 %v1103_v43, %v5011_v52  ;;  %v6804_v43 = vld [vmem:[#allocation14_spill] sm:$0xff] }
 0x1e8   : > { %v1203_v3 = vpop.f32.mrf.mxu0 }
 0x1e9   : > { %v1232_v50 = vpop.f32.mrf.mxu1  ;;  %v5143_v34 = vadd.f32 %v1203_v3, %v5019_v7  ;;  %3801 = vmatmul.msk.bf16.vlgmr.msra.gmra.mxu2 %vm352_vm1, %v3949_v32  ;;  %v2200_v3 = vsel %vm554_vm3, %v6803_v57, %v6802_v19 }
 0x1ea   : > { %v5146_v21 = vadd.f32 %v1232_v50, %v5022_v45  ;;  %3805 = vmatmul.msk.bf16.vlgmr.msra.gmra.mxu3 %vm352_vm1, %v3949_v32  ;;  %v6806_v50 = vld [vmem:[#allocation9_spill] sm:$0xff] }
 0x1eb   : > { %3793 = vmatmul.msk.bf16.vlgmr.msra.gmra.mxu0 %vm352_vm1, %v3949_v32 }
 0x1ec   : > { %3797 = vmatmul.msk.bf16.vlgmr.msra.gmra.mxu1 %vm352_vm1, %v3949_v32  ;;  %v1261_v53 = vpop.f32.mrf.mxu2 }
 0x1ed   : > { %v1290_v52 = vpop.f32.mrf.mxu3  ;;  %v5156_v35 = vadd.f32 %v1261_v53, %v5032_v18 }
 0x1ee   : > { %v5153_v20 = vadd.f32 %v1290_v52, %v5029_v37  ;;  %v3950_v37 = vld [vmem:[%s6715_s1 + $0xc8] sm:$0xff] }
 0x1f0   : > { %v1205_v7 = vpop.f32.mrf.mxu0 }
 0x1f1   : > { %v1234_v16 = vpop.f32.mrf.mxu1  ;;  %v5159_v45 = vadd.f32 %v1205_v7, %v5035_v33 }
 0x1f2   : > { %v5162_v6 = vadd.f32 %v1234_v16, %v5038_v9 }
 0x1f4   : > { %v1263_v27 = vpop.f32.mrf.mxu2 }
 0x1f5   : > { %v1292_v15 = vpop.f32.mrf.mxu3  ;;  %v5168_v58 = vadd.f32 %v1263_v27, %v5044_v13 }
 0x1f6   : > { %v5165_v54 = vadd.f32 %v1292_v15, %v5041_v61  ;;  %v6807_v15 = vld [vmem:[#allocation6_spill] sm:$0xff] }
 0x1f7   : > { %v2031_v27 = vsel %vm365_vm0, %v6807_v15, 0 }
 0x1f8   : > { %v1208_v18 = vpop.f32.mrf.mxu0  ;;  %2049 = vmatpush.bf16.msrb.mxu0 %v2031_v27 }
 0x1f9   : > { %v1237_v63 = vpop.f32.mrf.mxu1  ;;  %v5174_v33 = vadd.f32 %v1208_v18, %v5050_v48  ;;  %3802 = vmatmul.msk.bf16.gmra.mxu2 %vm352_vm1, %v3950_v37 }
 0x1fa   : > { %v5177_v9 = vadd.f32 %v1237_v63, %v5053_v44  ;;  %3806 = vmatmul.msk.bf16.gmra.mxu3 %vm352_vm1, %v3950_v37  ;;  %v2208_v63 = vsel %vm365_vm0, %v2200_v3, 0 }
 0x1fb   : > { %3794 = vmatmul.msk.bf16.gmra.mxu0 %vm352_vm1, %v3950_v37 }
 0x1fc   : > { %3798 = vmatmul.msk.bf16.gmra.mxu1 %vm352_vm1, %v3950_v37  ;;  %v1266_v13 = vpop.f32.mrf.mxu2  ;;  %v6808_v37 = vld [vmem:[#allocation8_spill] sm:$0xff] }
 0x1fd   : > { %v1295_v61 = vpop.f32.mrf.mxu3  ;;  %v5187_v12 = vadd.f32 %v1266_v13, %v5063_v4  ;;  %v2034_v18 = vsel %vm365_vm0, %v6808_v37, 0 }
 0x1fe   : > { %v5184_v0 = vadd.f32 %v1295_v61, %v5060_v14  ;;  %v2199_v14 = vsel %vm554_vm3, %v6804_v43, %v6803_v57  ;;  %2078 = vmatpush.bf16.msrb.mxu1 %v2034_v18  ;;  %v6812_v18 = vld [vmem:[#allocation18_spill] sm:$0xff] }
 0x200   : > { %v1210_v48 = vpop.f32.mrf.mxu0 }
 0x201   : > { %v1239_v39 = vpop.f32.mrf.mxu1  ;;  %v5190_v44 = vadd.f32 %v1210_v48, %v5066_v41  ;;  %v3951_v41 = vld [vmem:[%s6715_s1 + $0xd0] sm:$0xff] }
 0x202   : > { %v5193_v55 = vadd.f32 %v1239_v39, %v5069_v25  ;;  %v6805_v25 = vld [vmem:[#allocation7_spill] sm:$0xff] }
 0x203   : > { %v2040_v32 = vsel %vm365_vm0, %v6805_v25, 0 }
 0x204   : > { %v1268_v17 = vpop.f32.mrf.mxu2  ;;  %2136 = vmatpush.bf16.msrb.mxu3 %v2040_v32 }
 0x205   : > { %v1297_v1 = vpop.f32.mrf.mxu3  ;;  %v5204_v62 = vadd.f32 %v1268_v17, %v5075_v59  ;;  %v2205_v59 = vsel %vm365_vm0, %v2199_v14, 0 }
 0x206   : > { %v5201_v4 = vadd.f32 %v1297_v1, %v5072_v30  ;;  %v2198_v30 = vsel %vm554_vm3, %v6806_v50, %v6804_v43  ;;  %2249 = vmatpush.bf16.msra.mxu1 %v2205_v59  ;;  %vm1909_vm3 = vcmask 654336  }
 0x207   : > { %v2202_v61 = vsel %vm365_vm0, %v2198_v30, 0 }
 0x208   : > { %2307 = vmatpush.bf16.msra.mxu3 %v2211_v42  ;;  %v1213_v52 = vpop.f32.mrf.mxu0  ;;  %2220 = vmatpush.bf16.msra.mxu0 %v2202_v61 }
 0x209   : > { %v1242_v53 = vpop.f32.mrf.mxu1  ;;  %v5219_v7 = vadd.f32 %v1213_v52, %v5081_v28  ;;  %3803 = vmatmul.msk.bf16.gmra.mxu2 %vm352_vm1, %v3951_v41  ;;  %v6809_v28 = vld [vmem:[#allocation5_spill] sm:$0xff]  ;;  %v6810_v52 = vld [vmem:[#allocation10_spill] sm:$0xff] }
 0x20a   : > { %v5222_v16 = vadd.f32 %v1242_v53, %v5084_v10  ;;  %3807 = vmatmul.msk.bf16.gmra.mxu3 %vm352_vm1, %v3951_v41  ;;  %v2037_v10 = vsel %vm365_vm0, %v6809_v28, 0  ;;  %v6811_v53 = vld [vmem:[#allocation16_spill] sm:$0xff]  ;;  %v2382_v28 = vsel %vm365_vm0, %v6810_v52, 0 }
 0x20b   : > { %3795 = vmatmul.msk.bf16.gmra.mxu0 %vm352_vm1, %v3951_v41  ;;  %2107 = vmatpush.bf16.msrb.mxu2 %v2037_v10  ;;  %v2371_v15 = vsel %vm758_vm2, %v6811_v53, %v6810_v52 }
 0x20c   : > { %3799 = vmatmul.msk.bf16.gmra.mxu1 %vm352_vm1, %v3951_v41  ;;  %v1271_v48 = vpop.f32.mrf.mxu2  ;;  %v2379_v61 = vsel %vm365_vm0, %v2371_v15, 0 }
 0x20d   : > { %v1300_v13 = vpop.f32.mrf.mxu3  ;;  %v5240_v19 = vadd.f32 %v1271_v48, %v5094_v49  ;;  %v3952_v49 = vld [vmem:[%s6715_s1 + $0xd8] sm:$0xff] }
 0x20e   : > { %v5237_v39 = vadd.f32 %v1300_v13, %v5091_v60 }
 0x20f   : > { %2278 = vmatpush.bf16.msra.mxu2 %v2208_v63  ;;  %v6813_v63 = vld [vmem:[#allocation17_spill] sm:$0xff] }
 0x210   : > { %v1215_v42 = vpop.f32.mrf.mxu0 }
 0x211   : > { %v1244_v1 = vpop.f32.mrf.mxu1  ;;  %v5243_v17 = vadd.f32 %v1215_v42, %v5097_v29 }
 0x212   : > { %v5246_v57 = vadd.f32 %v1244_v1, %v5100_v24  ;;  %v4100_v1 = vld [vmem:[%s6715_s1] sm:$0xff] }
 0x214   : > { %v1273_v14 = vpop.f32.mrf.mxu2 }
 0x215   : > { %v1302_v43 = vpop.f32.mrf.mxu3  ;;  %v5252_v60 = vadd.f32 %v1273_v14, %v5106_v38 }
 0x216   : > { %v5249_v41 = vadd.f32 %v1302_v43, %v5103_v5 }
 0x218   : > { %v1218_v25 = vpop.f32.mrf.mxu0 }
 0x219   : > { %v1247_v32 = vpop.f32.mrf.mxu1  ;;  %v5258_v29 = vadd.f32 %v1218_v25, %v5112_v23  ;;  %3804 = vmatmul.msk.bf16.gmra.mxu2 %vm352_vm1, %v3952_v49 }
 0x21a   : > { %v5261_v24 = vadd.f32 %v1247_v32, %v5115_v56  ;;  %3808 = vmatmul.msk.bf16.gmra.mxu3 %vm352_vm1, %v3952_v49 }
 0x21b   : > { %3796 = vmatmul.msk.bf16.gmra.mxu0 %vm352_vm1, %v3952_v49 }
 0x21c   : > { %3800 = vmatmul.msk.bf16.gmra.mxu1 %vm352_vm1, %v3952_v49  ;;  %v1276_v38 = vpop.f32.mrf.mxu2 }
 0x21d   : > { %v1305_v5 = vpop.f32.mrf.mxu3  ;;  %v5271_v50 = vadd.f32 %v1276_v38, %v5125_v2 }
 0x21e   : > { %v5268_v3 = vadd.f32 %v1305_v5, %v5122_v51 }
 0x220   : > { %v1220_v23 = vpop.f32.mrf.mxu0 }
 0x221   : > { %v1249_v30 = vpop.f32.mrf.mxu1  ;;  %v5274_v56 = vadd.f32 %v1220_v23, %v5128_v46  ;;  %v2369_v46 = vsel %vm758_vm2, %v6813_v63, %v6812_v18 }
 0x222   : > { %v5277_v59 = vadd.f32 %v1249_v30, %v5131_v36  ;;  %v2370_v36 = vsel %vm758_vm2, %v6812_v18, %v6811_v53  ;;  %vm6060_vm2 = vmor %vm1919_vm15, %vm1918_vm14  ;;  %vm3337_vm14 = vcmask 486464   ;;  %vm3387_vm15 = vcmask 916480  }
 0x224   : > { %v1278_v37 = vpop.f32.mrf.mxu2 }
 0x225   : > { %v1307_v27 = vpop.f32.mrf.mxu3  ;;  %v5286_v2 = vadd.f32 %v1278_v37, %v5137_v40  ;;  %v2376_v40 = vsel %vm365_vm0, %v2370_v36, 0 }
 0x226   : > { %v5283_v51 = vadd.f32 %v1307_v27, %v5134_v31  ;;  %v2373_v31 = vsel %vm365_vm0, %v2369_v46, 0 }
 0x228   : > { %v1407_v10 = vpop.f32.mrf.mxu0 }
 0x229   : > { %v1436_v13 = vpop.f32.mrf.mxu1  ;;  %v5300_v48 = vadd.f32 %v1407_v10, %v5143_v34  ;;  %3817 = vmatmul.msk.bf16.vlgmr.msrb.gmra.mxu2 %vm352_vm1, %v4100_v1 }
 0x22a   : > { %v5303_v42 = vadd.f32 %v1436_v13, %v5146_v21  ;;  %3821 = vmatmul.msk.bf16.vlgmr.msrb.gmra.mxu3 %vm352_vm1, %v4100_v1  ;;  %2449 = vmatpush.bf16.msrb.mxu2 %v2379_v61 }
 0x22b   : > { %2478 = vmatpush.bf16.msrb.mxu3 %v2382_v28  ;;  %3809 = vmatmul.msk.bf16.vlgmr.msrb.gmra.mxu0 %vm352_vm1, %v4100_v1 }
 0x22c   : > { %3813 = vmatmul.msk.bf16.vlgmr.msrb.gmra.mxu1 %vm352_vm1, %v4100_v1  ;;  %v1465_v34 = vpop.f32.mrf.mxu2  ;;  %2391 = vmatpush.bf16.msrb.mxu0 %v2373_v31 }
 0x22d   : > { %v1494_v43 = vpop.f32.mrf.mxu3  ;;  %2420 = vmatpush.bf16.msrb.mxu1 %v2376_v40  ;;  %v5316_v14 = vadd.f32 %v1465_v34, %v5156_v35  ;;  %v4103_v34 = vld [vmem:[%s6715_s1 + $0x18] sm:$0xff] }
 0x22e   : > { %v5313_v21 = vadd.f32 %v1494_v43, %v5153_v20 }
 0x230   : > { %v1409_v49 = vpop.f32.mrf.mxu0 }
 0x231   : > { %v1438_v25 = vpop.f32.mrf.mxu1  ;;  %v5319_v32 = vadd.f32 %v1409_v49, %v5159_v45  ;;  %v4101_v45 = vld [vmem:[%s6715_s1 + $0x8] sm:$0xff] }
 0x232   : > { %v5322_v5 = vadd.f32 %v1438_v25, %v5162_v6 }
 0x234   : > { %v1467_v23 = vpop.f32.mrf.mxu2 }
 0x235   : > { %v1496_v38 = vpop.f32.mrf.mxu3  ;;  %v5328_v52 = vadd.f32 %v1467_v23, %v5168_v58 }
 0x236   : > { %v5325_v30 = vadd.f32 %v1496_v38, %v5165_v54 }
 0x238   : > { %v1412_v20 = vpop.f32.mrf.mxu0 }
 0x239   : > { %v1441_v53 = vpop.f32.mrf.mxu1  ;;  %v5331_v35 = vadd.f32 %v1412_v20, %v5174_v33  ;;  %3818 = vmatmul.msk.bf16.gmra.mxu2 %vm352_vm1, %v4101_v45  ;;  %v6814_v20 = vld [vmem:[#allocation19_spill] sm:$0xff] }
 0x23a   : > { %v5334_v15 = vadd.f32 %v1441_v53, %v5177_v9  ;;  %3822 = vmatmul.msk.bf16.gmra.mxu3 %vm352_vm1, %v4101_v45  ;;  %v6815_v53 = vld [vmem:[#allocation11_spill] sm:$0xff] }
 0x23b   : > { %3810 = vmatmul.msk.bf16.gmra.mxu0 %vm352_vm1, %v4101_v45 }
 0x23c   : > { %3814 = vmatmul.msk.bf16.gmra.mxu1 %vm352_vm1, %v4101_v45  ;;  %v1470_v54 = vpop.f32.mrf.mxu2  ;;  %v2542_v45 = vsel %vm962_vm4, %v6815_v53, %v6814_v20 }
 0x23d   : > { %v1499_v6 = vpop.f32.mrf.mxu3  ;;  %v5347_v33 = vadd.f32 %v1470_v54, %v5187_v12 }
 0x23e   : > { %v5344_v58 = vadd.f32 %v1499_v6, %v5184_v0 }
 0x240   : > { %v1414_v9 = vpop.f32.mrf.mxu0 }
 0x241   : > { %v1443_v27 = vpop.f32.mrf.mxu1  ;;  %v5350_v37 = vadd.f32 %v1414_v9, %v5190_v44  ;;  %v4102_v44 = vld [vmem:[%s6715_s1 + $0x10] sm:$0xff] }
 0x242   : > { %v5353_v18 = vadd.f32 %v1443_v27, %v5193_v55 }
 0x244   : > { %v1472_v46 = vpop.f32.mrf.mxu2 }
 0x245   : > { %v1501_v63 = vpop.f32.mrf.mxu3  ;;  %v5359_v61 = vadd.f32 %v1472_v46, %v5204_v62 }
 0x246   : > { %v5356_v36 = vadd.f32 %v1501_v63, %v5201_v4  ;;  %v6819_v63 = vld [vmem:[#allocation20_spill] sm:$0xff] }
 0x248   : > { %v5361_v0 = vpop.f32.mrf.mxu0 }
 0x249   : > { %v5363_v12 = vpop.f32.mrf.mxu1  ;;  %3819 = vmatmul.msk.bf16.gmra.mxu2 %vm352_vm1, %v4102_v44  ;;  %v1530_v11 = vadd.f32 %v5361_v0, %v5219_v7 }
 0x24a   : > { %3823 = vmatmul.msk.bf16.gmra.mxu3 %vm352_vm1, %v4102_v44 }
 0x24b   : > { %3811 = vmatmul.msk.bf16.gmra.mxu0 %vm352_vm1, %v4102_v44 }
 0x24c   : > { %3815 = vmatmul.msk.bf16.gmra.mxu1 %vm352_vm1, %v4102_v44  ;;  %v5374_v4 = vpop.f32.mrf.mxu2  ;;  %v2553_v44 = vsel %vm365_vm0, %v6814_v20, 0 }
 0x24d   : > { %v5372_v55 = vpop.f32.mrf.mxu3  ;;  %v1532_v7 = vadd.f32 %v5374_v4, %v5240_v19 }
 0x250   : > { %v5376_v62 = vpop.f32.mrf.mxu0 }
 0x251   : > { %v5378_v28 = vpop.f32.mrf.mxu1 }
 0x252   : > { %v1535_v19 = vadd.f32 %v5378_v28, %v5246_v57 }
 0x254   : > { %v1477_v13 = vpop.f32.mrf.mxu2 }
 0x255   : > { %v1506_v10 = vpop.f32.mrf.mxu3  ;;  %v5384_v40 = vadd.f32 %v1477_v13, %v5252_v60 }
 0x256   : > { %v5381_v31 = vadd.f32 %v1506_v10, %v5249_v41  ;;  %v2550_v10 = vsel %vm365_vm0, %v2542_v45, 0 }
 0x258   : > { %v5386_v1 = vpop.f32.mrf.mxu0 }
 0x259   : > { %v5388_v43 = vpop.f32.mrf.mxu1  ;;  %3820 = vmatmul.msk.bf16.gmra.mxu2 %vm352_vm1, %v4103_v34 }
 0x25a   : > { %3824 = vmatmul.msk.bf16.gmra.mxu3 %vm352_vm1, %v4103_v34 }
 0x25b   : > { %3812 = vmatmul.msk.bf16.gmra.mxu0 %vm352_vm1, %v4103_v34 }
 0x25c   : > { %3816 = vmatmul.msk.bf16.gmra.mxu1 %vm352_vm1, %v4103_v34  ;;  %v1480_v49 = vpop.f32.mrf.mxu2 }
 0x25d   : > { %v1509_v41 = vpop.f32.mrf.mxu3  ;;  %v5401_v25 = vadd.f32 %v1480_v49, %v5271_v50 }
 0x25e   : > { %v5398_v60 = vadd.f32 %v1509_v41, %v5268_v3  ;;  %v6818_v3 = vld [vmem:[#allocation15_spill] sm:$0xff]  ;;  %v4104_v41 = vld [vmem:[%s6715_s1 + $0x20] sm:$0xff] }
 0x25f   : > { %v2540_v50 = vsel %vm962_vm4, %v6819_v63, %v6818_v3  ;;  %v2541_v46 = vsel %vm962_vm4, %v6818_v3, %v6815_v53  ;;  %vm1937_vm4 = vcmask 453664  }
 0x260   : > { %v5403_v38 = vpop.f32.mrf.mxu0 }
 0x261   : > { %v5405_v23 = vpop.f32.mrf.mxu1 }
 0x264   : > { %v1482_v54 = vpop.f32.mrf.mxu2 }
 0x265   : > { %v1511_v6 = vpop.f32.mrf.mxu3  ;;  %v5414_v27 = vadd.f32 %v1482_v54, %v5286_v2  ;;  %v2547_v2 = vsel %vm365_vm0, %v2541_v46, 0 }
 0x266   : > { %v5411_v9 = vadd.f32 %v1511_v6, %v5283_v51  ;;  %v2544_v51 = vsel %vm365_vm0, %v2540_v50, 0  ;;  %v4105_v50 = vld [vmem:[%s6715_s1 + $0x28] sm:$0xff] }
 0x267   : > { %6817 = vst [vmem:[#allocation41_spill] sm:$0xff] %v5414_v27 }
 0x268   : > { %6816 = vst [vmem:[#allocation40_spill] sm:$0xff] %v5411_v9  ;;  %v1611_v13 = vpop.f32.mrf.mxu0 }
 0x269   : > { %v1640_v34 = vpop.f32.mrf.mxu1  ;;  %3833 = vmatmul.msk.bf16.vlgmr.msra.gmra.mxu2 %vm352_vm1, %v4104_v41 }
 0x26a   : > { %3837 = vmatmul.msk.bf16.vlgmr.msra.gmra.mxu3 %vm352_vm1, %v4104_v41  ;;  %2620 = vmatpush.bf16.msra.mxu2 %v2550_v10 }
 0x26b   : > { %2649 = vmatpush.bf16.msra.mxu3 %v2553_v44  ;;  %3825 = vmatmul.msk.bf16.vlgmr.msra.gmra.mxu0 %vm352_vm1, %v4104_v41 }
 0x26c   : > { %3829 = vmatmul.msk.bf16.vlgmr.msra.gmra.mxu1 %vm352_vm1, %v4104_v41  ;;  %v1669_v20 = vpop.f32.mrf.mxu2  ;;  %2562 = vmatpush.bf16.msra.mxu0 %v2544_v51 }
 0x26d   : > { %v1698_v49 = vpop.f32.mrf.mxu3  ;;  %2591 = vmatpush.bf16.msra.mxu1 %v2547_v2 }
 0x270   : > { %v1613_v53 = vpop.f32.mrf.mxu0 }
 0x271   : > { %v5434_v45 = vpop.f32.mrf.mxu1  ;;  %v1722_v28 = vadd.f32 %v1613_v53, %v5319_v32  ;;  %v1539_v32 = vadd.f32 %v5388_v43, %v5261_v24 }
 0x274   : > { %v5438_v54 = vpop.f32.mrf.mxu2 }
 0x275   : > { %v5436_v6 = vpop.f32.mrf.mxu3  ;;  %v1724_v24 = vadd.f32 %v5438_v54, %v5328_v52 }
 0x278   : > { %v5440_v3 = vpop.f32.mrf.mxu0 }
 0x279   : > { %v5442_v63 = vpop.f32.mrf.mxu1  ;;  %3834 = vmatmul.msk.bf16.gmra.mxu2 %vm352_vm1, %v4105_v50 }
 0x27a   : > { %3838 = vmatmul.msk.bf16.gmra.mxu3 %vm352_vm1, %v4105_v50 }
 0x27b   : > { %3826 = vmatmul.msk.bf16.gmra.mxu0 %vm352_vm1, %v4105_v50 }
 0x27c   : > { %3830 = vmatmul.msk.bf16.gmra.mxu1 %vm352_vm1, %v4105_v50  ;;  %v5453_v44 = vpop.f32.mrf.mxu2  ;;  %v1531_v50 = vadd.f32 %v5363_v12, %v5222_v16  ;;  %v1719_v16 = vadd.f32 %v1640_v34, %v5303_v42  ;;  %v1721_v12 = vadd.f32 %v1698_v49, %v5313_v21 }
 0x27d   : > { %v5451_v46 = vpop.f32.mrf.mxu3 }
 0x280   : > { %v5455_v10 = vpop.f32.mrf.mxu0 }
 0x281   : > { %v5457_v51 = vpop.f32.mrf.mxu1 }
 0x282   : > { %6820 = vst [vmem:[#allocation42_spill] sm:$0xff] %v5457_v51  ;;  %v4106_v51 = vld [vmem:[%s6715_s1 + $0x30] sm:$0xff] }
 0x284   : > { %v1676_v41 = vpop.f32.mrf.mxu2 }
 0x285   : > { %v1705_v2 = vpop.f32.mrf.mxu3  ;;  %v5463_v22 = vadd.f32 %v1676_v41, %v5359_v61 }
 0x286   : > { %v5460_v47 = vadd.f32 %v1705_v2, %v5356_v36  ;;  %v1533_v36 = vadd.f32 %v5372_v55, %v5237_v39  ;;  %v1534_v39 = vadd.f32 %v5376_v62, %v5243_v17  ;;  %v1723_v2 = vadd.f32 %v5434_v45, %v5322_v5 }
 0x288   : > { %v1621_v8 = vpop.f32.mrf.mxu0  ;;  %v1755_v45 = vmax.f32 %v1723_v2, 0.0 }
 0x289   : > { %v1650_v26 = vpop.f32.mrf.mxu1  ;;  %v1734_v27 = vadd.f32 %v1621_v8, %v1530_v11  ;;  %3835 = vmatmul.msk.bf16.gmra.mxu2 %vm352_vm1, %v4106_v51 }
 0x28a   : > { %v1735_v9 = vadd.f32 %v1650_v26, %v1531_v50  ;;  %3839 = vmatmul.msk.bf16.gmra.mxu3 %vm352_vm1, %v4106_v51  ;;  %v1718_v26 = vadd.f32 %v1611_v13, %v5300_v48  ;;  %v1720_v48 = vadd.f32 %v1669_v20, %v5316_v14 }
 0x28b   : > { %4036 = vtanh.f32 %v1734_v27  ;;  %3827 = vmatmul.msk.bf16.gmra.mxu0 %vm352_vm1, %v4106_v51  ;;  %v1751_v27 = vmax.f32 %v1719_v16, 0.0 }
 0x28c   : > { %3831 = vmatmul.msk.bf16.gmra.mxu1 %vm352_vm1, %v4106_v51  ;;  %4038 = vtanh.f32 %v1735_v9  ;;  %v1679_v8 = vpop.f32.mrf.mxu2  ;;  %v1750_v55 = vmax.f32 %v1718_v26, 0.0  ;;  %v1753_v51 = vmax.f32 %v1721_v12, 0.0  ;;  %v1752_v21 = vmax.f32 %v1720_v48, 0.0 }
 0x28d   : > { %v1708_v11 = vpop.f32.mrf.mxu3  ;;  %v1736_v0 = vadd.f32 %v1679_v8, %v1532_v7  ;;  %v1538_v26 = vadd.f32 %v5386_v1, %v5258_v29  ;;  %v1725_v29 = vadd.f32 %v5436_v6, %v5325_v30 }
 0x28e   : > { %v1737_v61 = vadd.f32 %v1708_v11, %v1533_v36 }
 0x290   : > { %4040 = vtanh.f32 %v1737_v61  ;;  %v1623_v4 = vpop.f32.mrf.mxu0  ;;  %v4107_v61 = vld [vmem:[%s6715_s1 + $0x38] sm:$0xff] }
 0x291   : > { %4042 = vtanh.f32 %v1736_v0  ;;  %v1652_v9 = vpop.f32.mrf.mxu1  ;;  %v4037_v42 = vpop.eup %4036  ;;  %v1738_v13 = vadd.f32 %v1623_v4, %v1534_v39  ;;  %v1757_v0 = vmax.f32 %v1725_v29, 0.0  ;;  %v1756_v39 = vmax.f32 %v1724_v24, 0.0 }
 0x292   : > { %v1739_v34 = vadd.f32 %v1652_v9, %v1535_v19  ;;  %v4039_v17 = vpop.eup %4038  ;;  %v1782_v62 = vmul.f32 %v4037_v42, %v1750_v55  ;;  %v1727_v19 = vadd.f32 %v5442_v63, %v5334_v15  ;;  %v1726_v4 = vadd.f32 %v5440_v3, %v5331_v35 }
 0x293   : > { %v1783_v57 = vmul.f32 %v4039_v17, %v1751_v27  ;;  %4044 = vtanh.f32 %v1738_v13  ;;  %v1543_v15 = vadd.f32 %v5405_v23, %v5277_v59  ;;  %v1729_v63 = vadd.f32 %v5451_v46, %v5344_v58 }
 0x294   : > { %4046 = vtanh.f32 %v1739_v34  ;;  %v1681_v49 = vpop.f32.mrf.mxu2  ;;  %v1542_v34 = vadd.f32 %v5403_v38, %v5274_v56  ;;  %v1728_v35 = vadd.f32 %v5453_v44, %v5347_v33  ;;  %v1759_v56 = vmax.f32 %v1727_v19, 0.0 }
 0x295   : > { %v1710_v14 = vpop.f32.mrf.mxu3  ;;  %v1740_v50 = vadd.f32 %v1681_v49, %v5384_v40  ;;  %v1798_v36 = vpack.c.bf16 %v1783_v57, %v1782_v62  ;;  %v1761_v62 = vmax.f32 %v1729_v63, 0.0 }
 0x296   : > { %v4041_v20 = vpop.eup %4040  ;;  %v1741_v41 = vadd.f32 %v1710_v14, %v5381_v31  ;;  %v1754_v31 = vmax.f32 %v1722_v28, 0.0  ;;  %v6821_v28 = vld [vmem:[#allocation42_spill] sm:$0xff] }
 0x297   : > { %v4043_v7 = vpop.eup %4042  ;;  %v1785_v11 = vmul.f32 %v4041_v20, %v1753_v51  ;;  %1864 = vrot.lane.b32.xlu2 %v1798_v36, %s4215_s28  ;;  %1815 = vrot.lane.b32.xlu0 %v1798_v36, %s4213_s19  ;;  %v1832_v5 = vrot.slane %v1798_v36, 4  ;;  %1807 = vst.msk [vmem:[%s5505_s29] sm:$0xf] %vm1806_vm8, %v1798_v36  ;;  %v1760_v51 = vmax.f32 %v1728_v35, 0.0  ;;  %v1731_v14 = vadd.f32 %v6821_v28, %v5353_v18  ;;  %v6822_v36 = vld [vmem:[#allocation40_spill] sm:$0xff] }
 0x298   : > { %v1784_v53 = vmul.f32 %v4043_v7, %v1752_v21  ;;  %4048 = vtanh.f32 %v1741_v41  ;;  %v1626_v1 = vpop.f32.mrf.mxu0  ;;  %v1730_v21 = vadd.f32 %v5455_v10, %v5350_v37  ;;  %v6824_v10 = vld [vmem:[#allocation22_spill] sm:$0xff] }
 0x299   : > { %4050 = vtanh.f32 %v1740_v50  ;;  %v1655_v40 = vpop.f32.mrf.mxu1  ;;  %v4045_v43 = vpop.eup %4044  ;;  %1836 = vrot.lane.b32.xlu1 %v1832_v5, %s4216_s30  ;;  %v1742_v16 = vadd.f32 %v1626_v1, %v1538_v26  ;;  %3836 = vmatmul.msk.bf16.gmra.mxu2 %vm352_vm1, %v4107_v61  ;;  %v6823_v26 = vld [vmem:[#allocation41_spill] sm:$0xff]  ;;  %v2724_v18 = vsel %vm365_vm0, %v6824_v10, 0  ;;  %v6825_v1 = vld [vmem:[#allocation23_spill] sm:$0xff] }
 0x29a   : > { %v1743_v8 = vadd.f32 %v1655_v40, %v1539_v32  ;;  %3840 = vmatmul.msk.bf16.gmra.mxu3 %vm352_vm1, %v4107_v61  ;;  %v5518_v30 = vpack.c.bf16 %v1785_v11, %v1784_v53  ;;  %v4047_v6 = vpop.eup %4046  ;;  %v1786_v52 = vmul.f32 %v4045_v43, %v1754_v31  ;;  %v1763_v31 = vmax.f32 %v1731_v14, 0.0 }
 0x29b   : > { %v1787_v54 = vmul.f32 %v4047_v6, %v1755_v45  ;;  %3828 = vmatmul.msk.bf16.gmra.mxu0 %vm352_vm1, %v4107_v61  ;;  %v2721_v43 = vsel %vm365_vm0, %v6825_v1, 0  ;;  %v6826_v45 = vld [vmem:[#allocation24_spill] sm:$0xff] }
 0x29c   : > { %4052 = vtanh.f32 %v1743_v8  ;;  %3832 = vmatmul.msk.bf16.gmra.mxu1 %vm352_vm1, %v4107_v61  ;;  %v1684_v55 = vpop.f32.mrf.mxu2  ;;  %v1942_v2 = vrot.slane %v5518_v30, 4  ;;  %v2718_v8 = vsel %vm365_vm0, %v6826_v45, 0  ;;  %v4108_v61 = vld [vmem:[%s6715_s1 + $0x40] sm:$0xff] }
 0x29d   : > { %4054 = vtanh.f32 %v1742_v16  ;;  %v1713_v12 = vpop.f32.mrf.mxu3  ;;  %v1744_v42 = vadd.f32 %v1684_v55, %v5401_v25  ;;  %v5529_v27 = vpack.c.bf16 %v1787_v54, %v1786_v52  ;;  %v1758_v25 = vmax.f32 %v1726_v4, 0.0  ;;  %v6827_v54 = vld [vmem:[#allocation25_spill] sm:$0xff] }
 0x29e   : > { %v4049_v48 = vpop.eup %4048  ;;  %v1745_v9 = vadd.f32 %v1713_v12, %v5398_v60  ;;  %v1762_v16 = vmax.f32 %v1730_v21, 0.0  ;;  %v1764_v4 = vmax.f32 %v5463_v22, 0.0 }
 0x29f   : > { %v4051_v13 = vpop.eup %4050  ;;  %v1789_v17 = vmul.f32 %v4049_v48, %v1757_v0  ;;  %1925 = vrot.lane.b32.xlu2 %v5518_v30, %s4217_s6  ;;  %1866 = vrot.lane.b32.xlu0 %v5529_v27, %s4215_s28  ;;  %1808 = vst.msk [vmem:[%s5505_s29 + $0x1c] sm:$0xf] %vm1806_vm8, %v5529_v27  ;;  %v1833_v32 = vrot.slane %v5529_v27, 4  ;;  %v2715_v0 = vsel %vm365_vm0, %v6827_v54, 0 }
 0x2a0   : > { %v1788_v3 = vmul.f32 %v4051_v13, %v1756_v39  ;;  %4056 = vtanh.f32 %v1745_v9  ;;  %v1628_v58 = vpop.f32.mrf.mxu0 }
 0x2a1   : > { %4058 = vtanh.f32 %v1744_v42  ;;  %v1657_v59 = vpop.f32.mrf.mxu1  ;;  %1897 = vrot.lane.b32.xlu1 %v5518_v30, %s4218_s7  ;;  %v1746_v33 = vadd.f32 %v1628_v58, %v1542_v34 }
 0x2a2   : > { %v4053_v60 = vpop.eup %4052  ;;  %v1747_v38 = vadd.f32 %v1657_v59, %v1543_v15  ;;  %v5548_v23 = vpack.c.bf16 %v1789_v17, %v1788_v3 }
 0x2a3   : > { %v4055_v46 = vpop.eup %4054  ;;  %v1791_v44 = vmul.f32 %v4053_v60, %v1759_v56 }
 0x2a4   : > { %v1790_v57 = vmul.f32 %v4055_v46, %v1758_v25  ;;  %4060 = vtanh.f32 %v1747_v38  ;;  %v1686_v20 = vpop.f32.mrf.mxu2  ;;  %v1943_v60 = vrot.slane %v5548_v23, 4 }
 0x2a5   : > { %4062 = vtanh.f32 %v1746_v33  ;;  %v1715_v49 = vpop.f32.mrf.mxu3  ;;  %v1748_v11 = vadd.f32 %v1686_v20, %v6823_v26 }
 0x2a6   : > { %v4057_v41 = vpop.eup %4056  ;;  %v5555_v50 = vpack.c.bf16 %v1791_v44, %v1790_v57  ;;  %v1749_v7 = vadd.f32 %v1715_v49, %v6822_v36 }
 0x2a7   : > { %v4059_v53 = vpop.eup %4058  ;;  %v1793_v37 = vmul.f32 %v4057_v41, %v1761_v62  ;;  %1946 = vrot.lane.b32.xlu0 %v1942_v2, %s4219_s8  ;;  %1838 = vrot.lane.b32.xlu2 %v1833_v32, %s4216_s30 }
 0x2a8   : > { %v1792_v5 = vmul.f32 %v4059_v53, %v1760_v51  ;;  %4064 = vtanh.f32 %v1749_v7  ;;  %1809 = vst.msk [vmem:[%s5505_s29 + $0x38] sm:$0xf] %vm1806_vm8, %v5555_v50  ;;  %v5569_v24 = vpop.f32.mrf.mxu0  ;;  %v1834_v35 = vrot.slane %v5555_v50, 4  ;;  %v4111_v7 = vld [vmem:[%s6715_s1 + $0x58] sm:$0xff] }
 0x2a9   : > { %4066 = vtanh.f32 %v1748_v11  ;;  %v5567_v29 = vpop.f32.mrf.mxu1  ;;  %1963 = vrot.lane.b32.xlu1 %v5518_v30, %s4215_s28  ;;  %3849 = vmatmul.msk.bf16.vlgmr.msrb.gmra.mxu2 %vm352_vm1, %v4108_v61  ;;  %v1765_v30 = vmax.f32 %v5460_v47, 0.0 }
 0x2aa   : > { %v4061_v40 = vpop.eup %4060  ;;  %3853 = vmatmul.msk.bf16.vlgmr.msrb.gmra.mxu3 %vm352_vm1, %v4108_v61  ;;  %v5581_v6 = vpack.c.bf16 %v1793_v37, %v1792_v5  ;;  %2791 = vmatpush.bf16.msrb.mxu2 %v2721_v43 }
 0x2ab   : > { %v4063_v52 = vpop.eup %4062  ;;  %v1795_v39 = vmul.f32 %v4061_v40, %v1763_v31  ;;  %2820 = vmatpush.bf16.msrb.mxu3 %v2724_v18  ;;  %3841 = vmatmul.msk.bf16.vlgmr.msrb.gmra.mxu0 %vm352_vm1, %v4108_v61  ;;  %v6828_v18 = vld [vmem:[#allocation21_spill] sm:$0xff]  ;;  %v6829_v31 = vld [vmem:[#allocation43_spill] sm:$0xff] }
 0x2ac   : > { %v1794_v19 = vmul.f32 %v4063_v52, %v1762_v16  ;;  %3845 = vmatmul.msk.bf16.vlgmr.msrb.gmra.mxu1 %vm352_vm1, %v4108_v61  ;;  %v5591_v55 = vpop.f32.mrf.mxu2  ;;  %2733 = vmatpush.bf16.msrb.mxu0 %v2715_v0  ;;  %v1944_v21 = vrot.slane %v5581_v6, 4  ;;  %v2895_v5 = vsel %vm365_vm0, %v6828_v18, 0  ;;  %v2159_v40 = vadd.f32 %v5567_v29, %v6829_v31  ;;  %v6831_v61 = vld [vmem:[#allocation26_spill] sm:$0xff]  ;;  %v4112_v0 = vld [vmem:[%s6715_s1 + $0x60] sm:$0xff] }
 0x2ad   : > { %v5589_v12 = vpop.f32.mrf.mxu3  ;;  %2762 = vmatpush.bf16.msrb.mxu1 %v2718_v8  ;;  %v2158_v1 = vadd.f32 %v5569_v24, %v6829_v31  ;;  %v6830_v8 = vld [vmem:[#allocation29_spill] sm:$0xff]  ;;  %v6832_v29 = vld [vmem:[#allocation28_spill] sm:$0xff] }
 0x2ae   : > { %v4065_v48 = vpop.eup %4064  ;;  %v1804_v9 = vpack.c.bf16 %v1795_v39, %v1794_v19  ;;  %v2889_v16 = vsel %vm365_vm0, %v6830_v8, 0  ;;  %v2886_v24 = vsel %vm365_vm0, %v6832_v29, 0  ;;  %v2161_v39 = vadd.f32 %v5589_v12, %v6829_v31 }
 0x2af   : > { %v4067_v42 = vpop.eup %4066  ;;  %v1797_v13 = vmul.f32 %v4065_v48, %v1765_v30  ;;  %1927 = vrot.lane.b32.xlu0 %v5548_v23, %s4217_s6  ;;  %1899 = vrot.lane.b32.xlu2 %v5548_v23, %s4218_s7  ;;  %v2160_v19 = vadd.f32 %v5591_v55, %v6829_v31 }
 0x2b0   : > { %v1796_v34 = vmul.f32 %v4067_v42, %v1764_v4  ;;  %1810 = vst.msk [vmem:[%s5505_s29 + $0x54] sm:$0xf] %vm1806_vm8, %v1804_v9  ;;  %v5602_v15 = vpop.f32.mrf.mxu0  ;;  %v1835_v28 = vrot.slane %v1804_v9, 4  ;;  %v6833_v42 = vld [vmem:[#allocation36_spill] sm:$0xff]  ;;  %vm1987_vm8 = vcmask 883712  }
 0x2b1   : > { %v5600_v47 = vpop.f32.mrf.mxu1  ;;  %1817 = vrot.lane.b32.xlu1 %v5529_v27, %s4213_s19  ;;  %v4109_v27 = vld [vmem:[%s6715_s1 + $0x48] sm:$0xff]  ;;  %v2162_v12 = vadd.f32 %v5602_v15, %v6833_v42 }
 0x2b2   : > { %v1805_v22 = vpack.c.bf16 %v1797_v13, %v1796_v34  ;;  %v2163_v13 = vadd.f32 %v5600_v47, %v6833_v42 }
 0x2b4   : > { %v5608_v17 = vpop.f32.mrf.mxu2  ;;  %v1945_v41 = vrot.slane %v1805_v22, 4 }
 0x2b5   : > { %v5606_v63 = vpop.f32.mrf.mxu3 }
 0x2b7   : > { %1965 = vrot.lane.b32.xlu2 %v5548_v23, %s4215_s28  ;;  %1840 = vrot.lane.b32.xlu0 %v1834_v35, %s4216_s30  ;;  %v4110_v23 = vld [vmem:[%s6715_s1 + $0x50] sm:$0xff] }
 0x2b8   : > { %v5616_v56 = vpop.f32.mrf.mxu0 }
 0x2b9   : > { %v5614_v3 = vpop.f32.mrf.mxu1  ;;  %1868 = vrot.lane.b32.xlu1 %v5555_v50, %s4215_s28  ;;  %3850 = vmatmul.msk.bf16.gmra.mxu2 %vm352_vm1, %v4109_v27 }
 0x2ba   : > { %3854 = vmatmul.msk.bf16.gmra.mxu3 %vm352_vm1, %v4109_v27 }
 0x2bb   : > { %3842 = vmatmul.msk.bf16.gmra.mxu0 %vm352_vm1, %v4109_v27 }
 0x2bc   : > { %3846 = vmatmul.msk.bf16.gmra.mxu1 %vm352_vm1, %v4109_v27  ;;  %v5629_v58 = vpop.f32.mrf.mxu2 }
 0x2bd   : > { %v5627_v59 = vpop.f32.mrf.mxu3 }
 0x2bf   : > { %1819 = vrot.lane.b32.xlu2 %v5555_v50, %s4213_s19  ;;  %1901 = vrot.lane.b32.xlu0 %v5581_v6, %s4218_s7 }
 0x2c0   : > { %v5638_v38 = vpop.f32.mrf.mxu0 }
 0x2c1   : > { %v5636_v25 = vpop.f32.mrf.mxu1  ;;  %1948 = vrot.lane.b32.xlu1 %v1943_v60, %s4219_s8 }
 0x2c4   : > { %v5643_v46 = vpop.f32.mrf.mxu2 }
 0x2c5   : > { %v5641_v33 = vpop.f32.mrf.mxu3 }
 0x2c7   : > { %1967 = vrot.lane.b32.xlu0 %v5581_v6, %s4215_s28  ;;  %1870 = vrot.lane.b32.xlu2 %v1804_v9, %s4215_s28 }
 0x2c8   : > { %v5650_v62 = vpop.f32.mrf.mxu0 }
 0x2c9   : > { %v5648_v44 = vpop.f32.mrf.mxu1  ;;  %1929 = vrot.lane.b32.xlu1 %v5581_v6, %s4217_s6  ;;  %3851 = vmatmul.msk.bf16.gmra.mxu2 %vm352_vm1, %v4110_v23  ;;  %v2892_v6 = vsel %vm365_vm0, %v6831_v61, 0 }
 0x2ca   : > { %3855 = vmatmul.msk.bf16.gmra.mxu3 %vm352_vm1, %v4110_v23 }
 0x2cb   : > { %3843 = vmatmul.msk.bf16.gmra.mxu0 %vm352_vm1, %v4110_v23 }
 0x2cc   : > { %3847 = vmatmul.msk.bf16.gmra.mxu1 %vm352_vm1, %v4110_v23  ;;  %v5663_v57 = vpop.f32.mrf.mxu2  ;;  %v2165_v23 = vadd.f32 %v5606_v63, %v6833_v42 }
 0x2cd   : > { %v5661_v51 = vpop.f32.mrf.mxu3 }
 0x2cf   : > { %1950 = vrot.lane.b32.xlu2 %v1944_v21, %s4219_s8  ;;  %1821 = vrot.lane.b32.xlu0 %v1804_v9, %s4213_s19  ;;  %v2164_v21 = vadd.f32 %v5608_v17, %v6833_v42  ;;  %s4226_s19 = smov 88  }
 0x2d0   : > { %v5668_v14 = vpop.f32.mrf.mxu0 }
 0x2d1   : > { %v5670_v49 = vpop.f32.mrf.mxu1  ;;  %1842 = vrot.lane.b32.xlu1 %v1835_v28, %s4216_s30  ;;  %s4229_s30 = smov 12  }
 0x2d4   : > { %v5675_v2 = vpop.f32.mrf.mxu2 }
 0x2d5   : > { %v5673_v20 = vpop.f32.mrf.mxu3 }
 0x2d7   : > { %1931 = vrot.lane.b32.xlu2 %v1805_v22, %s4217_s6  ;;  %1952 = vrot.lane.b32.xlu0 %v1945_v41, %s4219_s8  ;;  %s3495_s8 = scalar_lea.hbm %s6717_s3, %s3954_s4 }
 0x2d8   : > { %v5679_v50 = vpop.f32.mrf.mxu0 }
 0x2d9   : > { %v5681_v36 = vpop.f32.mrf.mxu1  ;;  %1903 = vrot.lane.b32.xlu1 %v1805_v22, %s4218_s7  ;;  %3852 = vmatmul.msk.bf16.gmra.mxu2 %vm352_vm1, %v4111_v7 }
 0x2da   : > { %3856 = vmatmul.msk.bf16.gmra.mxu3 %vm352_vm1, %v4111_v7 }
 0x2db   : > { %3844 = vmatmul.msk.bf16.gmra.mxu0 %vm352_vm1, %v4111_v7 }
 0x2dc   : > { %3848 = vmatmul.msk.bf16.gmra.mxu1 %vm352_vm1, %v4111_v7  ;;  %v5693_v11 = vpop.f32.mrf.mxu2  ;;  %v6834_v7 = vld [vmem:[#allocation35_spill] sm:$0xff] }
 0x2dd   : > { %v5691_v26 = vpop.f32.mrf.mxu3  ;;  %v2167_v18 = vadd.f32 %v5614_v3, %v6834_v7  ;;  %v2169_v3 = vadd.f32 %v5627_v59, %v6834_v7 }
 0x2e0   : > { %v5695_v32 = vpop.f32.mrf.mxu0 }
 0x2e1   : > { %v5697_v53 = vpop.f32.mrf.mxu1  ;;  %1969 = vrot.lane.b32.xlu1 %v1805_v22, %s4215_s28 }
 0x2e4   : > { %v5702_v10 = vpop.f32.mrf.mxu2 }
 0x2e5   : > { %v5700_v37 = vpop.f32.mrf.mxu3 }
 0x2e8   : > { %v2222_v43 = vpop.f32.mrf.mxu0 }
 0x2e9   : > { %v2251_v45 = vpop.f32.mrf.mxu1  ;;  %v5714_v52 = vadd.f32 %v2222_v43, %v2158_v1  ;;  %3865 = vmatmul.msk.bf16.vlgmr.msra.gmra.mxu2 %vm352_vm1, %v4112_v0  ;;  %v4113_v43 = vld [vmem:[%s6715_s1 + $0x68] sm:$0xff] }
 0x2ea   : > { %v5716_v54 = vadd.f32 %v2251_v45, %v2159_v40  ;;  %3869 = vmatmul.msk.bf16.vlgmr.msra.gmra.mxu3 %vm352_vm1, %v4112_v0  ;;  %2962 = vmatpush.bf16.msra.mxu2 %v2892_v6  ;;  %v6835_v6 = vld [vmem:[#allocation38_spill] sm:$0xff] }
 0x2eb   : > { %2991 = vmatpush.bf16.msra.mxu3 %v2895_v5  ;;  %3857 = vmatmul.msk.bf16.vlgmr.msra.gmra.mxu0 %vm352_vm1, %v4112_v0  ;;  %v2166_v5 = vadd.f32 %v5616_v56, %v6834_v7  ;;  %v2168_v56 = vadd.f32 %v5629_v58, %v6834_v7  ;;  %v2170_v29 = vadd.f32 %v5638_v38, %v6835_v6 }
 0x2ec   : > { %3861 = vmatmul.msk.bf16.vlgmr.msra.gmra.mxu1 %vm352_vm1, %v4112_v0  ;;  %v2280_v48 = vpop.f32.mrf.mxu2  ;;  %2904 = vmatpush.bf16.msra.mxu0 %v2886_v24  ;;  %v2171_v0 = vadd.f32 %v5636_v25, %v6835_v6 }
 0x2ed   : > { %v2309_v30 = vpop.f32.mrf.mxu3  ;;  %2933 = vmatpush.bf16.msra.mxu1 %v2889_v16  ;;  %v5733_v9 = vadd.f32 %v2280_v48, %v2160_v19  ;;  %v2172_v48 = vadd.f32 %v5643_v46, %v6835_v6 }
 0x2ee   : > { %v5731_v4 = vadd.f32 %v2309_v30, %v2161_v39  ;;  %v2173_v30 = vadd.f32 %v5641_v33, %v6835_v6 }
 0x2f0   : > { %v2224_v34 = vpop.f32.mrf.mxu0 }
 0x2f1   : > { %v2253_v55 = vpop.f32.mrf.mxu1  ;;  %v1865_v35 = vpop.permute.xlu2 %1864  ;;  %v5741_v27 = vadd.f32 %v2224_v34, %v2162_v12  ;;  %v6836_v12 = vld [vmem:[#allocation37_spill] sm:$0xff] }
 0x2f2   : > { %v5739_v22 = vadd.f32 %v2253_v55, %v2163_v13  ;;  %v1872_v60 = vrot.slane %v1865_v35, 4  ;;  %v2175_v55 = vadd.f32 %v5648_v44, %v6836_v12  ;;  %v2174_v34 = vadd.f32 %v5650_v62, %v6836_v12 }
 0x2f3   : > { %v2177_v44 = vadd.f32 %v5661_v51, %v6836_v12  ;;  %v2176_v62 = vadd.f32 %v5663_v57, %v6836_v12  ;;  %v6839_v57 = vld [vmem:[#allocation46_spill] sm:$0xff] }
 0x2f4   : > { %1876 = vrot.lane.b32.xlu0 %v1872_v60, %s4220_s5  ;;  %v2282_v28 = vpop.f32.mrf.mxu2 }
 0x2f5   : > { %v2311_v47 = vpop.f32.mrf.mxu3  ;;  %v5750_v41 = vadd.f32 %v2282_v28, %v2164_v21 }
 0x2f6   : > { %v5748_v15 = vadd.f32 %v2311_v47, %v2165_v23  ;;  %v4114_v47 = vld [vmem:[%s6715_s1 + $0x70] sm:$0xff] }
 0x2f8   : > { %v2227_v63 = vpop.f32.mrf.mxu0 }
 0x2f9   : > { %v2256_v31 = vpop.f32.mrf.mxu1  ;;  %v5758_v17 = vpop.permute.xlu2 %1925  ;;  %v5760_v1 = vadd.f32 %v2227_v63, %v2166_v5  ;;  %3866 = vmatmul.msk.bf16.gmra.mxu2 %vm352_vm1, %v4113_v43 }
 0x2fa   : > { %v5756_v40 = vadd.f32 %v2256_v31, %v2167_v18  ;;  %3870 = vmatmul.msk.bf16.gmra.mxu3 %vm352_vm1, %v4113_v43 }
 0x2fb   : > { %3858 = vmatmul.msk.bf16.gmra.mxu0 %vm352_vm1, %v4113_v43 }
 0x2fc   : > { %3862 = vmatmul.msk.bf16.gmra.mxu1 %vm352_vm1, %v4113_v43  ;;  %v2285_v8 = vpop.f32.mrf.mxu2 }
 0x2fd   : > { %v2314_v45 = vpop.f32.mrf.mxu3  ;;  %v5775_v61 = vadd.f32 %v2285_v8, %v2168_v56  ;;  %v2179_v56 = vadd.f32 %v5670_v49, %v6839_v57 }
 0x2fe   : > { %v5773_v16 = vadd.f32 %v2314_v45, %v2169_v3  ;;  %v2178_v3 = vadd.f32 %v5668_v14, %v6839_v57  ;;  %v2180_v14 = vadd.f32 %v5675_v2, %v6839_v57 }
 0x300   : > { %v2229_v24 = vpop.f32.mrf.mxu0 }
 0x301   : > { %v2258_v59 = vpop.f32.mrf.mxu1  ;;  %v5783_v58 = vpop.permute.xlu2 %1838  ;;  %v5785_v19 = vadd.f32 %v2229_v24, %v2170_v29 }
 0x302   : > { %v5781_v39 = vadd.f32 %v2258_v59, %v2171_v0 }
 0x304   : > { %v2287_v13 = vpop.f32.mrf.mxu2 }
 0x305   : > { %v2316_v42 = vpop.f32.mrf.mxu3  ;;  %v5793_v38 = vadd.f32 %v2287_v13, %v2172_v48  ;;  %v2181_v48 = vadd.f32 %v5673_v20, %v6839_v57 }
 0x306   : > { %v5791_v25 = vadd.f32 %v2316_v42, %v2173_v30 }
 0x308   : > { %v2232_v60 = vpop.f32.mrf.mxu0 }
 0x309   : > { %v2261_v35 = vpop.f32.mrf.mxu1  ;;  %v1816_v23 = vpop.permute.xlu0 %1815  ;;  %v5803_v21 = vadd.f32 %v2232_v60, %v2174_v34  ;;  %3867 = vmatmul.msk.bf16.gmra.mxu2 %vm352_vm1, %v4114_v47  ;;  %v6840_v34 = vld [vmem:[#allocation39_spill] sm:$0xff] }
 0x30a   : > { %v5799_v33 = vadd.f32 %v2261_v35, %v2175_v55  ;;  %v5801_v46 = vpop.permute.xlu2 %1899  ;;  %3871 = vmatmul.msk.bf16.gmra.mxu3 %vm352_vm1, %v4114_v47  ;;  %1828 = vst.msk [vmem:[%s5505_s29] sm:$0xf] %vm1827_vm9, %v1816_v23  ;;  %v2182_v20 = vadd.f32 %v5679_v50, %v6840_v34  ;;  %v2183_v2 = vadd.f32 %v5681_v36, %v6840_v34 }
 0x30b   : > { %v1837_v28 = vpop.permute.xlu1 %1836  ;;  %3859 = vmatmul.msk.bf16.gmra.mxu0 %vm352_vm1, %v4114_v47  ;;  %v2185_v50 = vadd.f32 %v5691_v26, %v6840_v34 }
 0x30c   : > { %3863 = vmatmul.msk.bf16.gmra.mxu1 %vm352_vm1, %v4114_v47  ;;  %v1844_v18 = vrot.slane %v1837_v28, 4  ;;  %v2290_v31 = vpop.f32.mrf.mxu2 }
 0x30d   : > { %v2319_v5 = vpop.f32.mrf.mxu3  ;;  %v5824_v43 = vadd.f32 %v2290_v31, %v2176_v62 }
 0x30e   : > { %v5822_v63 = vadd.f32 %v2319_v5, %v2177_v44  ;;  %v1849_v51 = vsel %vm1848_vm13, %v1844_v18, %v1837_v28  ;;  %v4115_v28 = vld [vmem:[%s6715_s1 + $0x78] sm:$0xff]  ;;  %v2184_v18 = vadd.f32 %v5693_v11, %v6840_v34 }
 0x30f   : > { %1860 = vst.msk [vmem:[%s5505_s29] sm:$0xff] %vm5818_vm12, %v1849_v51 }
 0x310   : > { %v2234_v8 = vpop.f32.mrf.mxu0 }
 0x311   : > { %v2263_v45 = vpop.f32.mrf.mxu1  ;;  %v1867_v0 = vpop.permute.xlu0 %1866  ;;  %v5836_v59 = vadd.f32 %v2234_v8, %v2178_v3  ;;  %v1845_v8 = vrot.slane %v5783_v58, 4 }
 0x312   : > { %v5834_v6 = vadd.f32 %v2263_v45, %v2179_v56  ;;  %v1966_v29 = vpop.permute.xlu2 %1965  ;;  %v1873_v24 = vrot.slane %v1867_v0, 4  ;;  %v6841_v56 = vld [vmem:[#allocation47_spill] sm:$0xff] }
 0x313   : > { %v1972_v30 = vrot.slane %v1966_v29, 4  ;;  %v5842_v49 = vpop.permute.xlu1 %1897  ;;  %v2186_v26 = vadd.f32 %v5695_v32, %v6841_v56  ;;  %v2187_v45 = vadd.f32 %v5697_v53, %v6841_v56  ;;  %v2188_v53 = vadd.f32 %v5702_v10, %v6841_v56 }
 0x314   : > { %1878 = vrot.lane.b32.xlu1 %v1873_v24, %s4220_s5  ;;  %v2292_v13 = vpop.f32.mrf.mxu2 }
 0x315   : > { %1977 = vrot.lane.b32.xlu0 %v1972_v30, %s4221_s10  ;;  %v2321_v42 = vpop.f32.mrf.mxu3  ;;  %v5848_v55 = vadd.f32 %v2292_v13, %v2180_v14  ;;  %v1850_v13 = vsel %vm1848_vm13, %v1845_v8, %v5783_v58 }
 0x316   : > { %v5846_v12 = vadd.f32 %v2321_v42, %v2181_v48  ;;  %v2189_v42 = vadd.f32 %v5700_v37, %v6841_v56  ;;  %v6842_v37 = vld [vmem:[#allocation30_spill] sm:$0xff]  ;;  %v6845_v56 = vld [vmem:[#allocation32_spill] sm:$0xff] }
 0x318   : > { %v2237_v60 = vpop.f32.mrf.mxu0 }
 0x319   : > { %v2266_v35 = vpop.f32.mrf.mxu1  ;;  %v5856_v47 = vpop.permute.xlu0 %1946  ;;  %v5858_v62 = vadd.f32 %v2237_v60, %v2182_v20  ;;  %3868 = vmatmul.msk.bf16.gmra.mxu2 %vm352_vm1, %v4115_v28  ;;  %v3066_v60 = vsel %vm365_vm0, %v6842_v37, 0 }
 0x31a   : > { %v5854_v23 = vadd.f32 %v2266_v35, %v2183_v2  ;;  %v1820_v44 = vpop.permute.xlu2 %1819  ;;  %3872 = vmatmul.msk.bf16.gmra.mxu3 %vm352_vm1, %v4115_v28 }
 0x31b   : > { %1830 = vst.msk [vmem:[%s5505_s29 + $0x38] sm:$0xf] %vm1827_vm9, %v1820_v44  ;;  %v1964_v36 = vpop.permute.xlu1 %1963  ;;  %3860 = vmatmul.msk.bf16.gmra.mxu0 %vm352_vm1, %v4115_v28 }
 0x31c   : > { %3864 = vmatmul.msk.bf16.gmra.mxu1 %vm352_vm1, %v4115_v28  ;;  %v1971_v5 = vrot.slane %v1964_v36, 4  ;;  %v2295_v57 = vpop.f32.mrf.mxu2  ;;  %v6843_v28 = vld [vmem:[#allocation31_spill] sm:$0xff] }
 0x31d   : > { %v2324_v31 = vpop.f32.mrf.mxu3  ;;  %v5876_v3 = vadd.f32 %v2295_v57, %v2184_v18  ;;  %v3063_v58 = vsel %vm365_vm0, %v6843_v28, 0  ;;  %v4116_v57 = vld [vmem:[%s6715_s1 + $0x80] sm:$0xff] }
 0x31e   : > { %v5873_v51 = vadd.f32 %v2324_v31, %v2185_v50  ;;  %1975 = vrot.lane.b32.xlu2 %v1971_v5, %s4221_s10  ;;  %v6844_v50 = vld [vmem:[#allocation27_spill] sm:$0xff] }
 0x31f   : > { %v3060_v36 = vsel %vm365_vm0, %v6844_v50, 0 }
 0x320   : > { %v2239_v0 = vpop.f32.mrf.mxu0 }
 0x321   : > { %v2268_v11 = vpop.f32.mrf.mxu1  ;;  %v5885_v24 = vpop.permute.xlu0 %1927  ;;  %v5887_v30 = vadd.f32 %v2239_v0, %v2186_v26  ;;  %v3057_v26 = vsel %vm365_vm0, %v6845_v56, 0  ;;  %vm1888_vm0 = vcmask 650464  }
 0x322   : > { %v5883_v29 = vadd.f32 %v2268_v11, %v2187_v45  ;;  %v1871_v48 = vpop.permute.xlu2 %1870 }
 0x323   : > { %v1875_v14 = vrot.slane %v1871_v48, 4  ;;  %v1818_v32 = vpop.permute.xlu1 %1817 }
 0x324   : > { %1829 = vst.msk [vmem:[%s5505_s29 + $0x1c] sm:$0xf] %vm1827_vm9, %v1818_v32  ;;  %v2297_v2 = vpop.f32.mrf.mxu2 }
 0x325   : > { %1882 = vrot.lane.b32.xlu0 %v1875_v14, %s4220_s5  ;;  %v2326_v34 = vpop.f32.mrf.mxu3  ;;  %1861 = vst.msk [vmem:[%s5505_s29 + $0x1c] sm:$0xff] %vm5818_vm12, %v1850_v13  ;;  %v5903_v35 = vadd.f32 %v2297_v2, %v2188_v53 }
 0x326   : > { %v5901_v20 = vadd.f32 %v2326_v34, %v2189_v42 }
 0x328   : > { %v2393_v44 = vpop.f32.mrf.mxu0 }
 0x329   : > { %v2422_v10 = vpop.f32.mrf.mxu1  ;;  %v1841_v5 = vpop.permute.xlu0 %1840  ;;  %v5915_v31 = vadd.f32 %v2393_v44, %v5714_v52  ;;  %3881 = vmatmul.msk.bf16.vlgmr.msrb.gmra.mxu2 %vm352_vm1, %v4116_v57 }
 0x32a   : > { %v5912_v18 = vadd.f32 %v2422_v10, %v5716_v54  ;;  %3885 = vmatmul.msk.bf16.vlgmr.msrb.gmra.mxu3 %vm352_vm1, %v4116_v57  ;;  %v1846_v45 = vrot.slane %v1841_v5, 4  ;;  %3133 = vmatpush.bf16.msrb.mxu2 %v3063_v58 }
 0x32b   : > { %3162 = vmatpush.bf16.msrb.mxu3 %v3066_v60  ;;  %v1869_v54 = vpop.permute.xlu1 %1868  ;;  %3873 = vmatmul.msk.bf16.vlgmr.msrb.gmra.mxu0 %vm352_vm1, %v4116_v57 }
 0x32c   : > { %3877 = vmatmul.msk.bf16.vlgmr.msrb.gmra.mxu1 %vm352_vm1, %v4116_v57  ;;  %v1851_v52 = vsel %vm1848_vm13, %v1846_v45, %v1841_v5  ;;  %v1874_v8 = vrot.slane %v1869_v54, 4  ;;  %v2451_v48 = vpop.f32.mrf.mxu2  ;;  %3075 = vmatpush.bf16.msrb.mxu0 %v3057_v26 }
 0x32d   : > { %v2480_v11 = vpop.f32.mrf.mxu3  ;;  %3104 = vmatpush.bf16.msrb.mxu1 %v3060_v36  ;;  %1862 = vst.msk [vmem:[%s5505_s29 + $0x38] sm:$0xff] %vm5818_vm12, %v1851_v52  ;;  %v5935_v14 = vadd.f32 %v2451_v48, %v5733_v9 }
 0x32e   : > { %v5931_v0 = vadd.f32 %v2480_v11, %v5731_v4  ;;  %1880 = vrot.lane.b32.xlu2 %v1874_v8, %s4220_s5 }
 0x330   : > { %v2395_v32 = vpop.f32.mrf.mxu0 }
 0x331   : > { %v2424_v42 = vpop.f32.mrf.mxu1  ;;  %v5940_v13 = vpop.permute.xlu0 %1901  ;;  %v5943_v34 = vadd.f32 %v2395_v32, %v5741_v27  ;;  %v4117_v27 = vld [vmem:[%s6715_s1 + $0x88] sm:$0xff] }
 0x332   : > { %v5938_v53 = vadd.f32 %v2424_v42, %v5739_v22 }
 0x333   : > { %v5945_v2 = vpop.permute.xlu1 %1948 }
 0x334   : > { %v2453_v60 = vpop.f32.mrf.mxu2 }
 0x335   : > { %v2482_v4 = vpop.f32.mrf.mxu3  ;;  %v5951_v9 = vadd.f32 %v2453_v60, %v5750_v41 }
 0x336   : > { %v5948_v37 = vadd.f32 %v2482_v4, %v5748_v15 }
 0x338   : > { %v2398_v44 = vpop.f32.mrf.mxu0 }
 0x339   : > { %v2427_v10 = vpop.f32.mrf.mxu1  ;;  %v1968_v28 = vpop.permute.xlu0 %1967  ;;  %v5957_v58 = vadd.f32 %v2398_v44, %v5760_v1  ;;  %3882 = vmatmul.msk.bf16.gmra.mxu2 %vm352_vm1, %v4117_v27 }
 0x33a   : > { %v5954_v22 = vadd.f32 %v2427_v10, %v5756_v40  ;;  %3886 = vmatmul.msk.bf16.gmra.mxu3 %vm352_vm1, %v4117_v27  ;;  %v1973_v15 = vrot.slane %v1968_v28, 4 }
 0x33b   : > { %v5964_v41 = vpop.permute.xlu1 %1929  ;;  %3874 = vmatmul.msk.bf16.gmra.mxu0 %vm352_vm1, %v4117_v27 }
 0x33c   : > { %3878 = vmatmul.msk.bf16.gmra.mxu1 %vm352_vm1, %v4117_v27  ;;  %1979 = vrot.lane.b32.xlu1 %v1973_v15, %s4221_s10  ;;  %v2456_v50 = vpop.f32.mrf.mxu2 }
 0x33d   : > { %v2485_v40 = vpop.f32.mrf.mxu3  ;;  %v5973_v36 = vadd.f32 %v2456_v50, %v5775_v61 }
 0x33e   : > { %v5970_v1 = vadd.f32 %v2485_v40, %v5773_v16 }
 0x340   : > { %v2400_v5 = vpop.f32.mrf.mxu0 }
 0x341   : > { %v2429_v57 = vpop.f32.mrf.mxu1  ;;  %v5976_v56 = vadd.f32 %v2400_v5, %v5785_v19  ;;  %v1822_v45 = vpop.permute.xlu0 %1821 }
 0x342   : > { %v5979_v26 = vadd.f32 %v2429_v57, %v5781_v39  ;;  %1831 = vst.msk [vmem:[%s5505_s29 + $0x54] sm:$0xf] %vm1827_vm9, %v1822_v45  ;;  %v4119_v45 = vld [vmem:[%s6715_s1 + $0x98] sm:$0xff]  ;;  %vm6113_vm9 = vmor %vm1997_vm7, %vm1996_vm6  ;;  %vm3446_vm6 = vcmask 97284  }
 0x343   : > { %v1843_v54 = vpop.permute.xlu1 %1842 }
 0x344   : > { %v1847_v52 = vrot.slane %v1843_v54, 4  ;;  %v2458_v11 = vpop.f32.mrf.mxu2 }
 0x345   : > { %v2487_v16 = vpop.f32.mrf.mxu3  ;;  %v5988_v48 = vadd.f32 %v2458_v11, %v5793_v38 }
 0x346   : > { %v5984_v8 = vadd.f32 %v2487_v16, %v5791_v25  ;;  %v1852_v61 = vsel %vm1848_vm13, %v1847_v52, %v1843_v54  ;;  %v4118_v25 = vld [vmem:[%s6715_s1 + $0x90] sm:$0xff]  ;;  %vm3305_vm13 = vcmask 162816  }
 0x347   : > { %1863 = vst.msk [vmem:[%s5505_s29 + $0x54] sm:$0xff] %vm5818_vm12, %v1852_v61  ;;  %vm6560_vm12 = vmor %vm3315_vm11, %vm3314_vm10 }
 0x348   : > { %v2403_v39 = vpop.f32.mrf.mxu0 }
 0x349   : > { %v2432_v19 = vpop.f32.mrf.mxu1  ;;  %v5994_v42 = vadd.f32 %v2403_v39, %v5803_v21  ;;  %3883 = vmatmul.msk.bf16.gmra.mxu2 %vm352_vm1, %v4118_v25  ;;  %v6043_v54 = vpop.permute.xlu0 %1952 }
 0x34a   : > { %v5997_v32 = vadd.f32 %v2432_v19, %v5799_v33  ;;  %3887 = vmatmul.msk.bf16.gmra.mxu3 %vm352_vm1, %v4118_v25  ;;  %v6055_v19 = vpop.permute.xlu2 %1950 }
 0x34b   : > { %v6004_v38 = vpop.permute.xlu1 %1903  ;;  %3875 = vmatmul.msk.bf16.gmra.mxu0 %vm352_vm1, %v4118_v25 }
 0x34c   : > { %3879 = vmatmul.msk.bf16.gmra.mxu1 %vm352_vm1, %v4118_v25  ;;  %v2461_v33 = vpop.f32.mrf.mxu2 }
 0x34d   : > { %v2490_v7 = vpop.f32.mrf.mxu3  ;;  %v6012_v4 = vadd.f32 %v2461_v33, %v5824_v43 }
 0x34e   : > { %v6009_v21 = vadd.f32 %v2490_v7, %v5822_v63 }
 0x350   : > { %v2405_v60 = vpop.f32.mrf.mxu0 }
 0x351   : > { %v2434_v10 = vpop.f32.mrf.mxu1  ;;  %v6015_v44 = vadd.f32 %v2405_v60, %v5836_v59 }
 0x352   : > { %v6018_v28 = vadd.f32 %v2434_v10, %v5834_v6 }
 0x353   : > { %v1970_v27 = vpop.permute.xlu1 %1969 }
 0x354   : > { %v1974_v15 = vrot.slane %v1970_v27, 4  ;;  %v2463_v63 = vpop.f32.mrf.mxu2 }
 0x355   : > { %v2492_v40 = vpop.f32.mrf.mxu3  ;;  %v6025_v43 = vadd.f32 %v2463_v63, %v5848_v55 }
 0x356   : > { %v6021_v50 = vadd.f32 %v2492_v40, %v5846_v12  ;;  %1981 = vrot.lane.b32.xlu2 %v1974_v15, %s4221_s10  ;;  %v6099_v15 = vpop.permute.xlu2 %1931  ;;  %s3498_s10 = sshll.u32 %s3495_s8, 4  ;;  %s3499_s10 = int_to_ptr.hbm [resolvable:$true] %s3498_s10 }
 0x358   : > { %v2408_v5 = vpop.f32.mrf.mxu0 }
 0x359   : > { %v2437_v57 = vpop.f32.mrf.mxu1  ;;  %v6028_v59 = vadd.f32 %v2408_v5, %v5858_v62  ;;  %3884 = vmatmul.msk.bf16.gmra.mxu2 %vm352_vm1, %v4119_v45 }
 0x35a   : > { %v6031_v6 = vadd.f32 %v2437_v57, %v5854_v23  ;;  %3888 = vmatmul.msk.bf16.gmra.mxu3 %vm352_vm1, %v4119_v45 }
 0x35b   : > { %3876 = vmatmul.msk.bf16.gmra.mxu0 %vm352_vm1, %v4119_v45 }
 0x35c   : > { %3880 = vmatmul.msk.bf16.gmra.mxu1 %vm352_vm1, %v4119_v45  ;;  %v2466_v62 = vpop.f32.mrf.mxu2 }
 0x35d   : > { %v2495_v12 = vpop.f32.mrf.mxu3  ;;  %v6046_v23 = vadd.f32 %v2466_v62, %v5876_v3 }
 0x35e   : > { %v6041_v55 = vadd.f32 %v2495_v12, %v5873_v51  ;;  %v1905_v51 = vrot.slane %v5842_v49, 4 }
 0x360   : > { %v2410_v52 = vpop.f32.mrf.mxu0  ;;  %v1910_v33 = vsel %vm1909_vm3, %v1905_v51, %v5842_v49  ;;  %v4120_v49 = vld [vmem:[%s6715_s1 + $0xa0] sm:$0xff] }
 0x361   : > { %v2439_v16 = vpop.f32.mrf.mxu1  ;;  %v6049_v11 = vadd.f32 %v2410_v52, %v5887_v30 }
 0x362   : > { %v6052_v61 = vadd.f32 %v2439_v16, %v5883_v29 }
 0x364   : > { %v2468_v25 = vpop.f32.mrf.mxu2 }
 0x365   : > { %v2497_v39 = vpop.f32.mrf.mxu3  ;;  %v6065_v7 = vadd.f32 %v2468_v25, %v5903_v35 }
 0x366   : > { %v6058_v3 = vadd.f32 %v2497_v39, %v5901_v20  ;;  %v1877_v29 = vpop.permute.xlu0 %1876 }
 0x367   : > { %1889 = vst.msk [vmem:[%s5505_s29 + $0x4] sm:$0xf] %vm1888_vm0, %v1877_v29 }
 0x368   : > { %1921 = vst.msk [vmem:[%s5505_s29 + $0x4] sm:$0xff] %vm6060_vm2, %v1910_v33  ;;  %v2564_v20 = vpop.f32.mrf.mxu0 }
 0x369   : > { %v2593_v60 = vpop.f32.mrf.mxu1  ;;  %1938 = vst.msk [vmem:[%s5505_s29 + $0x8] sm:$0xf] %vm1937_vm4, %v5758_v17  ;;  %v6078_v10 = vadd.f32 %v2564_v20, %v5915_v31  ;;  %3897 = vmatmul.msk.bf16.vlgmr.msra.gmra.mxu2 %vm352_vm1, %v4120_v49 }
 0x36a   : > { %v6081_v35 = vadd.f32 %v2593_v60, %v5912_v18  ;;  %3901 = vmatmul.msk.bf16.vlgmr.msra.gmra.mxu3 %vm352_vm1, %v4120_v49  ;;  %1959 = vst.msk [vmem:[%s5505_s29 + $0x8] sm:$0xf] %vm1958_vm5, %v5856_v47 }
 0x36b   : > { %3889 = vmatmul.msk.bf16.vlgmr.msra.gmra.mxu0 %vm352_vm1, %v4120_v49 }
 0x36c   : > { %3893 = vmatmul.msk.bf16.vlgmr.msra.gmra.mxu1 %vm352_vm1, %v4120_v49  ;;  %v2622_v18 = vpop.f32.mrf.mxu2  ;;  %v1906_v49 = vrot.slane %v5801_v46, 4 }
 0x36d   : > { %v2651_v17 = vpop.f32.mrf.mxu3  ;;  %v6097_v27 = vadd.f32 %v2622_v18, %v5935_v14 }
 0x36e   : > { %v6094_v31 = vadd.f32 %v2651_v17, %v5931_v0 }
 0x370   : > { %v2566_v40 = vpop.f32.mrf.mxu0 }
 0x371   : > { %v2595_v63 = vpop.f32.mrf.mxu1  ;;  %v6102_v5 = vadd.f32 %v2566_v40, %v5943_v34 }
 0x372   : > { %v6105_v47 = vadd.f32 %v2595_v63, %v5938_v53 }
 0x374   : > { %v2624_v0 = vpop.f32.mrf.mxu2 }
 0x375   : > { %v2653_v57 = vpop.f32.mrf.mxu3  ;;  %v6111_v12 = vadd.f32 %v2624_v0, %v5951_v9  ;;  %v4121_v9 = vld [vmem:[%s6715_s1 + $0xa8] sm:$0xff] }
 0x376   : > { %v6108_v45 = vadd.f32 %v2653_v57, %v5948_v37 }
 0x378   : > { %v1976_v14 = vpop.permute.xlu2 %1975  ;;  %v2569_v62 = vpop.f32.mrf.mxu0 }
 0x379   : > { %v1983_v53 = vrot.slane %v1976_v14, 4  ;;  %v6118_v52 = vadd.f32 %v2569_v62, %v5957_v58  ;;  %v2598_v37 = vpop.f32.mrf.mxu1  ;;  %3898 = vmatmul.msk.bf16.gmra.mxu2 %vm352_vm1, %v4121_v9  ;;  %v4122_v62 = vld [vmem:[%s6715_s1 + $0xb0] sm:$0xff] }
 0x37a   : > { %3902 = vmatmul.msk.bf16.gmra.mxu3 %vm352_vm1, %v4121_v9  ;;  %v6125_v16 = vadd.f32 %v2598_v37, %v5954_v22 }
 0x37b   : > { %v1988_v51 = vsel %vm1987_vm8, %v1983_v53, %v1976_v14  ;;  %3890 = vmatmul.msk.bf16.gmra.mxu0 %vm352_vm1, %v4121_v9 }
 0x37c   : > { %3894 = vmatmul.msk.bf16.gmra.mxu1 %vm352_vm1, %v4121_v9  ;;  %1999 = vst.msk [vmem:[%s5505_s29 + $0x8] sm:$0xff] %vm6113_vm9, %v1988_v51  ;;  %v2627_v25 = vpop.f32.mrf.mxu2 }
 0x37d   : > { %v2656_v58 = vpop.f32.mrf.mxu3  ;;  %v6138_v22 = vadd.f32 %v2627_v25, %v5973_v36 }
 0x37e   : > { %v6135_v39 = vadd.f32 %v2656_v58, %v5970_v1  ;;  %v1908_v58 = vrot.slane %v6004_v38, 4 }
 0x380   : > { %v2571_v29 = vpop.f32.mrf.mxu0 }
 0x381   : > { %v6141_v33 = vadd.f32 %v2571_v29, %v5976_v56  ;;  %v2600_v20 = vpop.f32.mrf.mxu1  ;;  %v1911_v56 = vsel %vm1909_vm3, %v1906_v49, %v5801_v46 }
 0x382   : > { %v6144_v60 = vadd.f32 %v2600_v20, %v5979_v26  ;;  %v1907_v26 = vrot.slane %v5940_v13, 4 }
 0x384   : > { %v2629_v18 = vpop.f32.mrf.mxu2 }
 0x385   : > { %v2658_v17 = vpop.f32.mrf.mxu3  ;;  %v6151_v63 = vadd.f32 %v2629_v18, %v5988_v48 }
 0x386   : > { %v6148_v1 = vadd.f32 %v2658_v17, %v5984_v8  ;;  %v1879_v36 = vpop.permute.xlu1 %1878 }
 0x387   : > { %v1978_v40 = vpop.permute.xlu0 %1977  ;;  %1890 = vst.msk [vmem:[%s5505_s29 + $0x20] sm:$0xf] %vm1888_vm0, %v1879_v36 }
 0x388   : > { %v1984_v57 = vrot.slane %v1978_v40, 4  ;;  %1922 = vst.msk [vmem:[%s5505_s29 + $0x20] sm:$0xff] %vm6060_vm2, %v1911_v56  ;;  %v2574_v8 = vpop.f32.mrf.mxu0  ;;  %v1881_v48 = vpop.permute.xlu2 %1880 }
 0x389   : > { %1939 = vst.msk [vmem:[%s5505_s29 + $0x24] sm:$0xf] %vm1937_vm4, %v5885_v24  ;;  %v6166_v46 = vadd.f32 %v2574_v8, %v5994_v42  ;;  %v2603_v14 = vpop.f32.mrf.mxu1  ;;  %3899 = vmatmul.msk.bf16.gmra.mxu2 %vm352_vm1, %v4122_v62  ;;  %v1912_v24 = vsel %vm1909_vm3, %v1907_v26, %v5940_v13 }
 0x38a   : > { %v1989_v0 = vsel %vm1987_vm8, %v1984_v57, %v1978_v40  ;;  %3903 = vmatmul.msk.bf16.gmra.mxu3 %vm352_vm1, %v4122_v62  ;;  %1960 = vst.msk [vmem:[%s5505_s29 + $0x24] sm:$0xf] %vm1958_vm5, %v5945_v2  ;;  %v6176_v53 = vadd.f32 %v2603_v14, %v5997_v32 }
 0x38b   : > { %2000 = vst.msk [vmem:[%s5505_s29 + $0x24] sm:$0xff] %vm6113_vm9, %v1989_v0  ;;  %3891 = vmatmul.msk.bf16.gmra.mxu0 %vm352_vm1, %v4122_v62 }
 0x38c   : > { %3895 = vmatmul.msk.bf16.gmra.mxu1 %vm352_vm1, %v4122_v62  ;;  %1891 = vst.msk [vmem:[%s5505_s29 + $0x3c] sm:$0xf] %vm1888_vm0, %v1881_v48  ;;  %v2632_v32 = vpop.f32.mrf.mxu2 }
 0x38d   : > { %v2661_v42 = vpop.f32.mrf.mxu3  ;;  %1923 = vst.msk [vmem:[%s5505_s29 + $0x3c] sm:$0xff] %vm6060_vm2, %v1912_v24  ;;  %v6198_v37 = vadd.f32 %v2632_v32, %v6012_v4 }
 0x38e   : > { %v6192_v2 = vadd.f32 %v2661_v42, %v6009_v21  ;;  %1940 = vst.msk [vmem:[%s5505_s29 + $0x40] sm:$0xf] %vm1937_vm4, %v5964_v41 }
 0x38f   : > { %1961 = vst.msk [vmem:[%s5505_s29 + $0x40] sm:$0xf] %vm1958_vm5, %v6055_v19 }
 0x390   : > { %v2576_v13 = vpop.f32.mrf.mxu0 }
 0x391   : > { %v6204_v9 = vadd.f32 %v2576_v13, %v6015_v44  ;;  %v2605_v51 = vpop.f32.mrf.mxu1  ;;  %v1913_v44 = vsel %vm1909_vm3, %v1908_v58, %v6004_v38  ;;  %vm3397_vm3 = vcmask 293892  }
 0x392   : > { %v6207_v21 = vadd.f32 %v2605_v51, %v6018_v28 }
 0x394   : > { %v2634_v4 = vpop.f32.mrf.mxu2 }
 0x395   : > { %v2663_v25 = vpop.f32.mrf.mxu3  ;;  %v6214_v20 = vadd.f32 %v2634_v4, %v6025_v43  ;;  %v4123_v43 = vld [vmem:[%s6715_s1 + $0xb8] sm:$0xff] }
 0x396   : > { %v6211_v41 = vadd.f32 %v2663_v25, %v6021_v50 }
 0x397   : > { %v1883_v29 = vpop.permute.xlu0 %1882 }
 0x398   : > { %1892 = vst.msk [vmem:[%s5505_s29 + $0x58] sm:$0xf] %vm1888_vm0, %v1883_v29  ;;  %v2579_v28 = vpop.f32.mrf.mxu0  ;;  %vm3436_vm0 = vcmask 719872  }
 0x399   : > { %1924 = vst.msk [vmem:[%s5505_s29 + $0x58] sm:$0xff] %vm6060_vm2, %v1913_v44  ;;  %v6227_v50 = vadd.f32 %v2579_v28, %v6028_v59  ;;  %v2608_v19 = vpop.f32.mrf.mxu1  ;;  %3900 = vmatmul.msk.bf16.gmra.mxu2 %vm352_vm1, %v4123_v43  ;;  %vm3396_vm2 = vcmask 1044352  }
 0x39a   : > { %1941 = vst.msk [vmem:[%s5505_s29 + $0x5c] sm:$0xf] %vm1937_vm4, %v6099_v15  ;;  %3904 = vmatmul.msk.bf16.gmra.mxu3 %vm352_vm1, %v4123_v43  ;;  %v6237_v38 = vadd.f32 %v2608_v19, %v6031_v6  ;;  %vm3366_vm4 = vcmask 912864   ;;  %vm6610_vm7 = vmor %vm3397_vm3, %vm3396_vm2 }
 0x39b   : > { %1962 = vst.msk [vmem:[%s5505_s29 + $0x5c] sm:$0xf] %vm1958_vm5, %v6043_v54  ;;  %3892 = vmatmul.msk.bf16.gmra.mxu0 %vm352_vm1, %v4123_v43  ;;  %vm3445_vm5 = vcmask 1044160  }
 0x39c   : > { %3896 = vmatmul.msk.bf16.gmra.mxu1 %vm352_vm1, %v4123_v43  ;;  %v2637_v15 = vpop.f32.mrf.mxu2 }
 0x39d   : > { %v2666_v59 = vpop.f32.mrf.mxu3  ;;  %v6246_v49 = vadd.f32 %v2637_v15, %v6046_v23 }
 0x39e   : > { %v6243_v30 = vadd.f32 %v2666_v59, %v6041_v55 }
 0x3a0   : > { %v2581_v17 = vpop.f32.mrf.mxu0 }
 0x3a1   : > { %v6249_v54 = vadd.f32 %v2581_v17, %v6049_v11  ;;  %v2610_v6 = vpop.f32.mrf.mxu1  ;;  %v4124_v11 = vld [vmem:[%s6715_s1 + $0xc0] sm:$0xff] }
 0x3a2   : > { %v6252_v18 = vadd.f32 %v2610_v6, %v6052_v61 }
 0x3a4   : > { %v2639_v56 = vpop.f32.mrf.mxu2 }
 0x3a5   : > { %v2668_v40 = vpop.f32.mrf.mxu3  ;;  %v6258_v55 = vadd.f32 %v2639_v56, %v6065_v7 }
 0x3a6   : > { %v6255_v36 = vadd.f32 %v2668_v40, %v6058_v3 }
 0x3a8   : > { %v2735_v57 = vpop.f32.mrf.mxu0 }
 0x3a9   : > { %v6261_v23 = vadd.f32 %v2735_v57, %v6078_v10  ;;  %v2764_v26 = vpop.f32.mrf.mxu1  ;;  %3913 = vmatmul.msk.bf16.vlgmr.msrb.gmra.mxu2 %vm352_vm1, %v4124_v11 }
 0x3aa   : > { %3917 = vmatmul.msk.bf16.vlgmr.msrb.gmra.mxu3 %vm352_vm1, %v4124_v11  ;;  %v6268_v61 = vadd.f32 %v2764_v26, %v6081_v35 }
 0x3ab   : > { %3905 = vmatmul.msk.bf16.vlgmr.msrb.gmra.mxu0 %vm352_vm1, %v4124_v11 }
 0x3ac   : > { %3909 = vmatmul.msk.bf16.vlgmr.msrb.gmra.mxu1 %vm352_vm1, %v4124_v11  ;;  %v2793_v10 = vpop.f32.mrf.mxu2 }
 0x3ad   : > { %v2822_v3 = vpop.f32.mrf.mxu3  ;;  %v6277_v0 = vadd.f32 %v2793_v10, %v6097_v27 }
 0x3ae   : > { %v6274_v7 = vadd.f32 %v2822_v3, %v6094_v31  ;;  %v1980_v8 = vpop.permute.xlu1 %1979 }
 0x3af   : > { %v1985_v48 = vrot.slane %v1980_v8, 4 }
 0x3b0   : > { %v1982_v35 = vpop.permute.xlu2 %1981  ;;  %v2737_v14 = vpop.f32.mrf.mxu0 }
 0x3b1   : > { %v1990_v62 = vsel %vm1987_vm8, %v1985_v48, %v1980_v8  ;;  %v1986_v24 = vrot.slane %v1982_v35, 4  ;;  %v6281_v42 = vadd.f32 %v2737_v14, %v6102_v5  ;;  %v2766_v32 = vpop.f32.mrf.mxu1 }
 0x3b2   : > { %2001 = vst.msk [vmem:[%s5505_s29 + $0x40] sm:$0xff] %vm6113_vm9, %v1990_v62  ;;  %v6287_v31 = vadd.f32 %v2766_v32, %v6105_v47  ;;  %v4125_v47 = vld [vmem:[%s6715_s1 + $0xc8] sm:$0xff] }
 0x3b3   : > { %v1991_v13 = vsel %vm1987_vm8, %v1986_v24, %v1982_v35  ;;  %vm3415_vm8 = vcmask 716064  }
 0x3b4   : > { %2002 = vst.msk [vmem:[%s5505_s29 + $0x5c] sm:$0xff] %vm6113_vm9, %v1991_v13  ;;  %v2795_v58 = vpop.f32.mrf.mxu2  ;;  %vm6617_vm9 = vmor %vm3446_vm6, %vm3445_vm5 }
 0x3b5   : > { %v2824_v27 = vpop.f32.mrf.mxu3  ;;  %v6297_v5 = vadd.f32 %v2795_v58, %v6111_v12 }
 0x3b6   : > { %v6294_v51 = vadd.f32 %v2824_v27, %v6108_v45 }
 0x3b8   : > { %v2740_v25 = vpop.f32.mrf.mxu0 }
 0x3b9   : > { %v6300_v4 = vadd.f32 %v2740_v25, %v6118_v52  ;;  %v2769_v29 = vpop.f32.mrf.mxu1  ;;  %3914 = vmatmul.msk.bf16.gmra.mxu2 %vm352_vm1, %v4125_v47 }
 0x3ba   : > { %3918 = vmatmul.msk.bf16.gmra.mxu3 %vm352_vm1, %v4125_v47  ;;  %v6307_v34 = vadd.f32 %v2769_v29, %v6125_v16 }
 0x3bb   : > { %3906 = vmatmul.msk.bf16.gmra.mxu0 %vm352_vm1, %v4125_v47 }
 0x3bc   : > { %3910 = vmatmul.msk.bf16.gmra.mxu1 %vm352_vm1, %v4125_v47  ;;  %v2798_v52 = vpop.f32.mrf.mxu2 }
 0x3bd   : > { %v2827_v45 = vpop.f32.mrf.mxu3  ;;  %v6316_v44 = vadd.f32 %v2798_v52, %v6138_v22 }
 0x3be   : > { %v6313_v12 = vadd.f32 %v2827_v45, %v6135_v39 }
 0x3c0   : > { %v2742_v28 = vpop.f32.mrf.mxu0 }
 0x3c1   : > { %v6319_v19 = vadd.f32 %v2742_v28, %v6141_v33  ;;  %v2771_v16 = vpop.f32.mrf.mxu1  ;;  %v4126_v33 = vld [vmem:[%s6715_s1 + $0xd0] sm:$0xff] }
 0x3c2   : > { %v6322_v43 = vadd.f32 %v2771_v16, %v6144_v60 }
 0x3c4   : > { %v2800_v17 = vpop.f32.mrf.mxu2 }
 0x3c5   : > { %v2829_v59 = vpop.f32.mrf.mxu3  ;;  %v6328_v39 = vadd.f32 %v2800_v17, %v6151_v63 }
 0x3c6   : > { %v6325_v15 = vadd.f32 %v2829_v59, %v6148_v1 }
 0x3c8   : > { %v2745_v6 = vpop.f32.mrf.mxu0 }
 0x3c9   : > { %v6331_v22 = vadd.f32 %v2745_v6, %v6166_v46  ;;  %v2774_v40 = vpop.f32.mrf.mxu1  ;;  %3915 = vmatmul.msk.bf16.gmra.mxu2 %vm352_vm1, %v4126_v33 }
 0x3ca   : > { %3919 = vmatmul.msk.bf16.gmra.mxu3 %vm352_vm1, %v4126_v33  ;;  %v6338_v60 = vadd.f32 %v2774_v40, %v6176_v53 }
 0x3cb   : > { %3907 = vmatmul.msk.bf16.gmra.mxu0 %vm352_vm1, %v4126_v33 }
 0x3cc   : > { %3911 = vmatmul.msk.bf16.gmra.mxu1 %vm352_vm1, %v4126_v33  ;;  %v2803_v46 = vpop.f32.mrf.mxu2 }
 0x3cd   : > { %v2832_v1 = vpop.f32.mrf.mxu3  ;;  %v6347_v56 = vadd.f32 %v2803_v46, %v6198_v37 }
 0x3ce   : > { %v6344_v63 = vadd.f32 %v2832_v1, %v6192_v2 }
 0x3d0   : > { %v2747_v57 = vpop.f32.mrf.mxu0 }
 0x3d1   : > { %v6350_v26 = vadd.f32 %v2747_v57, %v6204_v9  ;;  %v2776_v53 = vpop.f32.mrf.mxu1  ;;  %v4127_v9 = vld [vmem:[%s6715_s1 + $0xd8] sm:$0xff] }
 0x3d2   : > { %v6353_v11 = vadd.f32 %v2776_v53, %v6207_v21 }
 0x3d4   : > { %v2805_v8 = vpop.f32.mrf.mxu2 }
 0x3d5   : > { %v2834_v3 = vpop.f32.mrf.mxu3  ;;  %v6359_v2 = vadd.f32 %v2805_v8, %v6214_v20 }
 0x3d6   : > { %v6356_v10 = vadd.f32 %v2834_v3, %v6211_v41 }
 0x3d8   : > { %v2750_v48 = vpop.f32.mrf.mxu0 }
 0x3d9   : > { %v6362_v37 = vadd.f32 %v2750_v48, %v6227_v50  ;;  %v2779_v35 = vpop.f32.mrf.mxu1  ;;  %3916 = vmatmul.msk.bf16.gmra.mxu2 %vm352_vm1, %v4127_v9 }
 0x3da   : > { %3920 = vmatmul.msk.bf16.gmra.mxu3 %vm352_vm1, %v4127_v9  ;;  %v2867_v21 = vadd.f32 %v2779_v35, %v6237_v38 }
 0x3db   : > { %3908 = vmatmul.msk.bf16.gmra.mxu0 %vm352_vm1, %v4127_v9 }
 0x3dc   : > { %3912 = vmatmul.msk.bf16.gmra.mxu1 %vm352_vm1, %v4127_v9  ;;  %v2808_v50 = vpop.f32.mrf.mxu2  ;;  %vm3288_vm1 = vcmask 683264  }
 0x3dd   : > { %v2837_v41 = vpop.f32.mrf.mxu3  ;;  %v2868_v14 = vadd.f32 %v2808_v50, %v6246_v49 }
 0x3de   : > { %v2869_v20 = vadd.f32 %v2837_v41, %v6243_v30 }
 0x3e0   : > { %v2752_v62 = vpop.f32.mrf.mxu0 }
 0x3e1   : > { %v2870_v24 = vadd.f32 %v2752_v62, %v6249_v54  ;;  %v2781_v32 = vpop.f32.mrf.mxu1 }
 0x3e2   : > { %v2871_v13 = vadd.f32 %v2781_v32, %v6252_v18 }
 0x3e4   : > { %v2810_v58 = vpop.f32.mrf.mxu2 }
 0x3e5   : > { %v2839_v27 = vpop.f32.mrf.mxu3  ;;  %v2872_v25 = vadd.f32 %v2810_v58, %v6258_v55 }
 0x3e6   : > { %v2873_v38 = vadd.f32 %v2839_v27, %v6255_v36 }
 0x3e8   : > { %v2906_v29 = vpop.f32.mrf.mxu0 }
 0x3e9   : > { %v6379_v47 = vadd.f32 %v2906_v29, %v6261_v23  ;;  %v2935_v30 = vpop.f32.mrf.mxu1 }
 0x3ea   : > { %v6382_v45 = vadd.f32 %v2935_v30, %v6268_v61 }
 0x3ec   : > { %v2964_v52 = vpop.f32.mrf.mxu2 }
 0x3ed   : > { %v2993_v49 = vpop.f32.mrf.mxu3  ;;  %v6388_v18 = vadd.f32 %v2964_v52, %v6277_v0 }
 0x3ee   : > { %v6385_v54 = vadd.f32 %v2993_v49, %v6274_v7 }
 0x3f0   : > { %v2908_v36 = vpop.f32.mrf.mxu0 }
 0x3f1   : > { %v6391_v28 = vadd.f32 %v2908_v36, %v6281_v42  ;;  %v2937_v55 = vpop.f32.mrf.mxu1 }
 0x3f2   : > { %v6394_v23 = vadd.f32 %v2937_v55, %v6287_v31 }
 0x3f4   : > { %v2966_v59 = vpop.f32.mrf.mxu2 }
 0x3f5   : > { %v2995_v16 = vpop.f32.mrf.mxu3  ;;  %v6400_v7 = vadd.f32 %v2966_v59, %v6297_v5 }
 0x3f6   : > { %v6397_v61 = vadd.f32 %v2995_v16, %v6294_v51 }
 0x3f8   : > { %v2911_v17 = vpop.f32.mrf.mxu0 }
 0x3f9   : > { %v6403_v0 = vadd.f32 %v2911_v17, %v6300_v4  ;;  %v2940_v6 = vpop.f32.mrf.mxu1 }
 0x3fa   : > { %v6406_v42 = vadd.f32 %v2940_v6, %v6307_v34 }
 0x3fc   : > { %v2969_v33 = vpop.f32.mrf.mxu2 }
 0x3fd   : > { %v2998_v40 = vpop.f32.mrf.mxu3  ;;  %v6412_v51 = vadd.f32 %v2969_v33, %v6316_v44 }
 0x3fe   : > { %v6409_v31 = vadd.f32 %v2998_v40, %v6313_v12 }
 0x400   : > { %v2913_v1 = vpop.f32.mrf.mxu0 }
 0x401   : > { %v6415_v5 = vadd.f32 %v2913_v1, %v6319_v19  ;;  %v2942_v46 = vpop.f32.mrf.mxu1 }
 0x402   : > { %v6418_v4 = vadd.f32 %v2942_v46, %v6322_v43 }
 0x404   : > { %v2971_v53 = vpop.f32.mrf.mxu2 }
 0x405   : > { %v3000_v57 = vpop.f32.mrf.mxu3  ;;  %v6424_v12 = vadd.f32 %v2971_v53, %v6328_v39 }
 0x406   : > { %v6421_v34 = vadd.f32 %v3000_v57, %v6325_v15 }
 0x407   : > { %6850 = vst [vmem:[#allocation33_spill] sm:$0xff] %v6424_v12 }
 0x408   : > { %v2916_v3 = vpop.f32.mrf.mxu0 }
 0x409   : > { %v2945_v8 = vpop.f32.mrf.mxu1 }
 0x40c   : > { %v2974_v48 = vpop.f32.mrf.mxu2 }
 0x40d   : > { %v3003_v44 = vpop.f32.mrf.mxu3 }
 0x410   : > { %v2918_v35 = vpop.f32.mrf.mxu0 }
 0x411   : > { %v2947_v9 = vpop.f32.mrf.mxu1 }
 0x414   : > { %v2976_v43 = vpop.f32.mrf.mxu2 }
 0x415   : > { %v3005_v19 = vpop.f32.mrf.mxu3  ;;  %v6430_v50 = vadd.f32 %v2976_v43, %v6359_v2  ;;  %v3030_v43 = vadd.f32 %v2945_v8, %v6338_v60  ;;  %v3033_v60 = vadd.f32 %v2918_v35, %v6350_v26 }
 0x416   : > { %v6427_v41 = vadd.f32 %v3005_v19, %v6356_v10  ;;  %v3029_v19 = vadd.f32 %v2916_v3, %v6331_v22  ;;  %v3034_v3 = vadd.f32 %v2947_v9, %v6353_v11 }
 0x418   : > { %v2921_v15 = vpop.f32.mrf.mxu0 }
 0x419   : > { %v6433_v62 = vadd.f32 %v2921_v15, %v6362_v37  ;;  %v2950_v39 = vpop.f32.mrf.mxu1 }
 0x41a   : > { %v6435_v32 = vadd.f32 %v2950_v39, %v2867_v21 }
 0x41c   : > { %v2979_v29 = vpop.f32.mrf.mxu2 }
 0x41d   : > { %v3008_v27 = vpop.f32.mrf.mxu3  ;;  %v6439_v30 = vadd.f32 %v2979_v29, %v2868_v14 }
 0x41e   : > { %v6437_v58 = vadd.f32 %v3008_v27, %v2869_v20 }
 0x420   : > { %v2923_v49 = vpop.f32.mrf.mxu0 }
 0x421   : > { %v6441_v10 = vadd.f32 %v2923_v49, %v2870_v24  ;;  %v2952_v52 = vpop.f32.mrf.mxu1  ;;  %v3032_v49 = vadd.f32 %v3003_v44, %v6344_v63 }
 0x422   : > { %v6443_v36 = vadd.f32 %v2952_v52, %v2871_v13  ;;  %v3031_v52 = vadd.f32 %v2974_v48, %v6347_v56 }
 0x424   : > { %v2981_v37 = vpop.f32.mrf.mxu2 }
 0x425   : > { %v3010_v2 = vpop.f32.mrf.mxu3  ;;  %v6447_v16 = vadd.f32 %v2981_v37, %v2872_v25 }
 0x426   : > { %v6445_v55 = vadd.f32 %v3010_v2, %v2873_v38 }
 0x428   : > { %v3077_v21 = vpop.f32.mrf.mxu0 }
 0x429   : > { %v3106_v59 = vpop.f32.mrf.mxu1  ;;  %v3184_v2 = vadd.f32 %v3077_v21, %v6379_v47 }
 0x42a   : > { %v3185_v12 = vadd.f32 %v3106_v59, %v6382_v45 }
 0x42b   : > { %v3216_v8 = vmax.f32 %v3184_v2, 0.0 }
 0x42c   : > { %v3135_v20 = vpop.f32.mrf.mxu2  ;;  %v3217_v48 = vmax.f32 %v3185_v12, 0.0 }
 0x42d   : > { %v3164_v17 = vpop.f32.mrf.mxu3  ;;  %v3186_v47 = vadd.f32 %v3135_v20, %v6388_v18 }
 0x42e   : > { %v3187_v63 = vadd.f32 %v3164_v17, %v6385_v54 }
 0x42f   : > { %v3218_v54 = vmax.f32 %v3186_v47, 0.0 }
 0x430   : > { %v3079_v6 = vpop.f32.mrf.mxu0  ;;  %v3219_v26 = vmax.f32 %v3187_v63, 0.0 }
 0x431   : > { %v3108_v40 = vpop.f32.mrf.mxu1  ;;  %v3188_v35 = vadd.f32 %v3079_v6, %v6391_v28 }
 0x432   : > { %v3189_v17 = vadd.f32 %v3108_v40, %v6394_v23 }
 0x433   : > { %v3220_v28 = vmax.f32 %v3188_v35, 0.0 }
 0x434   : > { %v6451_v33 = vpop.f32.mrf.mxu2  ;;  %v3221_v40 = vmax.f32 %v3189_v17, 0.0 }
 0x435   : > { %v6449_v14 = vpop.f32.mrf.mxu3 }
 0x436   : > { %v3191_v23 = vadd.f32 %v6449_v14, %v6397_v61 }
 0x438   : > { %v6453_v24 = vpop.f32.mrf.mxu0  ;;  %v3223_v61 = vmax.f32 %v3191_v23, 0.0 }
 0x439   : > { %v6455_v13 = vpop.f32.mrf.mxu1  ;;  %v3192_v14 = vadd.f32 %v6453_v24, %v6403_v0 }
 0x43b   : > { %v3224_v0 = vmax.f32 %v3192_v14, 0.0 }
 0x43c   : > { %v6459_v38 = vpop.f32.mrf.mxu2 }
 0x43d   : > { %v6457_v1 = vpop.f32.mrf.mxu3 }
 0x440   : > { %v6461_v25 = vpop.f32.mrf.mxu0 }
 0x441   : > { %v6463_v46 = vpop.f32.mrf.mxu1 }
 0x444   : > { %v6467_v53 = vpop.f32.mrf.mxu2 }
 0x445   : > { %v6465_v57 = vpop.f32.mrf.mxu3  ;;  %6852 = vst [vmem:[#allocation44_spill] sm:$0xff] %v6467_v53 }
 0x446   : > { %6851 = vst [vmem:[#allocation34_spill] sm:$0xff] %v6465_v57 }
 0x448   : > { %v3087_v15 = vpop.f32.mrf.mxu0 }
 0x449   : > { %v3200_v39 = vadd.f32 %v3087_v15, %v3029_v19  ;;  %v3116_v27 = vpop.f32.mrf.mxu1 }
 0x44a   : > { %v3201_v29 = vadd.f32 %v3116_v27, %v3030_v43 }
 0x44b   : > { %4068 = vtanh.f32 %v3200_v39 }
 0x44c   : > { %4070 = vtanh.f32 %v3201_v29  ;;  %v3145_v57 = vpop.f32.mrf.mxu2 }
 0x44d   : > { %v3174_v37 = vpop.f32.mrf.mxu3  ;;  %v3202_v22 = vadd.f32 %v3145_v57, %v3031_v52 }
 0x44e   : > { %v3203_v53 = vadd.f32 %v3174_v37, %v3032_v49 }
 0x450   : > { %4072 = vtanh.f32 %v3203_v53  ;;  %v3089_v44 = vpop.f32.mrf.mxu0 }
 0x451   : > { %4074 = vtanh.f32 %v3202_v22  ;;  %v4069_v56 = vpop.eup %4068  ;;  %v3204_v21 = vadd.f32 %v3089_v44, %v3033_v60  ;;  %v3118_v19 = vpop.f32.mrf.mxu1 }
 0x452   : > { %v4071_v45 = vpop.eup %4070  ;;  %v3248_v59 = vmul.f32 %v4069_v56, %v3216_v8  ;;  %v3205_v43 = vadd.f32 %v3118_v19, %v3034_v3 }
 0x453   : > { %v3249_v57 = vmul.f32 %v4071_v45, %v3217_v48  ;;  %4076 = vtanh.f32 %v3204_v21 }
 0x454   : > { %4078 = vtanh.f32 %v3205_v43  ;;  %v3147_v53 = vpop.f32.mrf.mxu2 }
 0x455   : > { %v3176_v11 = vpop.f32.mrf.mxu3  ;;  %v3264_v18 = vpack.c.bf16 %v3249_v57, %v3248_v59  ;;  %v3206_v39 = vadd.f32 %v3147_v53, %v6430_v50  ;;  %v3190_v50 = vadd.f32 %v6451_v33, %v6400_v7  ;;  %v3193_v7 = vadd.f32 %v6455_v13, %v6406_v42 }
 0x456   : > { %v4073_v9 = vpop.eup %4072  ;;  %v3207_v12 = vadd.f32 %v3176_v11, %v6427_v41  ;;  %v3195_v42 = vadd.f32 %v6457_v1, %v6409_v31 }
 0x457   : > { %v4075_v20 = vpop.eup %4074  ;;  %v3251_v15 = vmul.f32 %v4073_v9, %v3219_v26  ;;  %3276 = vrot.lane.b32.xlu0 %v3264_v18, %s4222_s11  ;;  %3293 = vrot.lane.b32.xlu1 %v3264_v18, %s4223_s18  ;;  %v3222_v63 = vmax.f32 %v3190_v50, 0.0  ;;  %v3321_v47 = vrot.slane %v3264_v18, 4  ;;  %v3225_v13 = vmax.f32 %v3193_v7, 0.0 }
 0x458   : > { %v3250_v27 = vmul.f32 %v4075_v20, %v3218_v54  ;;  %4080 = vtanh.f32 %v3207_v12  ;;  %3342 = vrot.lane.b32.xlu2 %v3264_v18, %s4215_s28  ;;  %v3092_v41 = vpop.f32.mrf.mxu0  ;;  %v3227_v1 = vmax.f32 %v3195_v42, 0.0 }
 0x459   : > { %4082 = vtanh.f32 %v3206_v39  ;;  %v4077_v6 = vpop.eup %4076  ;;  %v3208_v29 = vadd.f32 %v3092_v41, %v6433_v62  ;;  %v3121_v49 = vpop.f32.mrf.mxu1 }
 0x45a   : > { %v6491_v52 = vpack.c.bf16 %v3251_v15, %v3250_v27  ;;  %v4079_v2 = vpop.eup %4078  ;;  %v3252_v37 = vmul.f32 %v4077_v6, %v3220_v28  ;;  %v3209_v22 = vadd.f32 %v3121_v49, %v6435_v32  ;;  %v6855_v15 = vld [vmem:[#allocation44_spill] sm:$0xff] }
 0x45b   : > { %v3253_v60 = vmul.f32 %v4079_v2, %v3221_v40  ;;  %4084 = vtanh.f32 %v3208_v29 }
 0x45c   : > { %4086 = vtanh.f32 %v3209_v22  ;;  %v3150_v33 = vpop.f32.mrf.mxu2  ;;  %v3420_v17 = vrot.slane %v6491_v52, 4 }
 0x45d   : > { %v3179_v3 = vpop.f32.mrf.mxu3  ;;  %v6499_v44 = vpack.c.bf16 %v3253_v60, %v3252_v37  ;;  %v3210_v48 = vadd.f32 %v3150_v33, %v6439_v30 }
 0x45e   : > { %v4081_v8 = vpop.eup %4080  ;;  %v3211_v62 = vadd.f32 %v3179_v3, %v6437_v58  ;;  %v3194_v58 = vadd.f32 %v6459_v38, %v6412_v51  ;;  %v3196_v38 = vadd.f32 %v6461_v25, %v6415_v5 }
 0x45f   : > { %v4083_v56 = vpop.eup %4082  ;;  %v3255_v32 = vmul.f32 %v4081_v8, %v3223_v61  ;;  %3452 = vrot.lane.b32.xlu0 %v6491_v52, %s4215_s28  ;;  %3278 = vrot.lane.b32.xlu1 %v6499_v44, %s4222_s11  ;;  %v3322_v22 = vrot.slane %v6499_v44, 4 }
 0x460   : > { %v3254_v21 = vmul.f32 %v4083_v56, %v3222_v63  ;;  %4088 = vtanh.f32 %v3211_v62  ;;  %3325 = vrot.lane.b32.xlu2 %v3321_v47, %s4224_s21  ;;  %v3094_v30 = vpop.f32.mrf.mxu0  ;;  %v3226_v51 = vmax.f32 %v3194_v58, 0.0  ;;  %v3228_v5 = vmax.f32 %v3196_v38, 0.0 }
 0x461   : > { %4090 = vtanh.f32 %v3210_v48  ;;  %v4085_v24 = vpop.eup %4084  ;;  %v3212_v19 = vadd.f32 %v3094_v30, %v6441_v10  ;;  %v3123_v45 = vpop.f32.mrf.mxu1  ;;  %v3197_v10 = vadd.f32 %v6463_v46, %v6418_v4  ;;  %v6853_v4 = vld [vmem:[#allocation34_spill] sm:$0xff] }
 0x462   : > { %v6512_v59 = vpack.c.bf16 %v3255_v32, %v3254_v21  ;;  %v4087_v43 = vpop.eup %4086  ;;  %v3256_v57 = vmul.f32 %v4085_v24, %v3224_v0  ;;  %v3213_v26 = vadd.f32 %v3123_v45, %v6443_v36 }
 0x463   : > { %v3257_v31 = vmul.f32 %v4087_v43, %v3225_v13  ;;  %4092 = vtanh.f32 %v3212_v19  ;;  %v3229_v46 = vmax.f32 %v3197_v10, 0.0 }
 0x464   : > { %4094 = vtanh.f32 %v3213_v26  ;;  %v3152_v54 = vpop.f32.mrf.mxu2  ;;  %v3421_v61 = vrot.slane %v6512_v59, 4 }
 0x465   : > { %v3181_v35 = vpop.f32.mrf.mxu3  ;;  %v3268_v12 = vpack.c.bf16 %v3257_v31, %v3256_v57  ;;  %v3214_v18 = vadd.f32 %v3152_v54, %v6447_v16  ;;  %v6854_v16 = vld [vmem:[#allocation33_spill] sm:$0xff] }
 0x466   : > { %v4089_v11 = vpop.eup %4088  ;;  %v3215_v9 = vadd.f32 %v3181_v35, %v6445_v55  ;;  %v3199_v55 = vadd.f32 %v6853_v4, %v6421_v34  ;;  %v3198_v39 = vadd.f32 %v6855_v15, %v6854_v16 }
 0x467   : > { %v4091_v36 = vpop.eup %4090  ;;  %v3259_v53 = vmul.f32 %v4089_v11, %v3227_v1  ;;  %3375 = vrot.lane.b32.xlu0 %v6491_v52, %s4225_s23  ;;  %3424 = vrot.lane.b32.xlu1 %v3420_v17, %s4226_s19  ;;  %v3323_v60 = vrot.slane %v3268_v12, 4 }
 0x468   : > { %v3258_v20 = vmul.f32 %v4091_v36, %v3226_v51  ;;  %4096 = vtanh.f32 %v3215_v9  ;;  %3295 = vrot.lane.b32.xlu2 %v6499_v44, %s4223_s18  ;;  %v3231_v6 = vmax.f32 %v3199_v55, 0.0  ;;  %v3230_v50 = vmax.f32 %v3198_v39, 0.0 }
 0x469   : > { %4098 = vtanh.f32 %v3214_v18  ;;  %v4093_v25 = vpop.eup %4092 }
 0x46a   : > { %v3269_v27 = vpack.c.bf16 %v3259_v53, %v3258_v20  ;;  %v4095_v28 = vpop.eup %4094  ;;  %v3260_v23 = vmul.f32 %v4093_v25, %v3228_v5 }
 0x46b   : > { %v3261_v41 = vmul.f32 %v4095_v28, %v3229_v46 }
 0x46c   : > { %v3422_v14 = vrot.slane %v3269_v27, 4 }
 0x46d   : > { %v3270_v29 = vpack.c.bf16 %v3261_v41, %v3260_v23 }
 0x46e   : > { %v4097_v40 = vpop.eup %4096 }
 0x46f   : > { %v4099_v49 = vpop.eup %4098  ;;  %v3263_v2 = vmul.f32 %v4097_v40, %v3231_v6  ;;  %3344 = vrot.lane.b32.xlu0 %v6499_v44, %s4215_s28  ;;  %3454 = vrot.lane.b32.xlu1 %v6512_v59, %s4215_s28  ;;  %v3324_v3 = vrot.slane %v3270_v29, 4 }
 0x470   : > { %v3262_v34 = vmul.f32 %v4099_v49, %v3230_v50  ;;  %3280 = vrot.lane.b32.xlu2 %v3268_v12, %s4222_s11 }
 0x472   : > { %v3271_v37 = vpack.c.bf16 %v3263_v2, %v3262_v34 }
 0x474   : > { %v3423_v8 = vrot.slane %v3271_v37, 4 }
 0x477   : > { %3327 = vrot.lane.b32.xlu0 %v3322_v22, %s4224_s21  ;;  %3377 = vrot.lane.b32.xlu1 %v6512_v59, %s4225_s23 }
 0x478   : > { %3456 = vrot.lane.b32.xlu2 %v3269_v27, %s4215_s28 }
 0x47f   : > { %3297 = vrot.lane.b32.xlu0 %v3268_v12, %s4223_s18  ;;  %3346 = vrot.lane.b32.xlu1 %v3268_v12, %s4215_s28 }
 0x480   : > { %3379 = vrot.lane.b32.xlu2 %v3269_v27, %s4225_s23 }
 0x487   : > { %3282 = vrot.lane.b32.xlu0 %v3270_v29, %s4222_s11  ;;  %3329 = vrot.lane.b32.xlu1 %v3323_v60, %s4224_s21  ;;  %s3482_s11 = scalar_lea.sflag [#allocation3], %s186_s26 }
 0x488   : > { %3348 = vrot.lane.b32.xlu2 %v3270_v29, %s4215_s28 }
 0x48f   : > { %3458 = vrot.lane.b32.xlu0 %v3271_v37, %s4215_s28  ;;  %3299 = vrot.lane.b32.xlu1 %v3270_v29, %s4223_s18  ;;  %s4228_s28 = smov 60   ;;  %s4142_s18 = sshra.s32 %s3499_s10, 4  ;;  %s4143_s18 = int_to_ptr.hbm [resolvable:$true] %s4142_s18 }
 0x490   : > { %3426 = vrot.lane.b32.xlu2 %v3421_v61, %s4226_s19  ;;  %p4149_p1 = scmp.lt.s32.totalorder %s4143_s18, %s6717_s3 }
 0x497   : > { %3428 = vrot.lane.b32.xlu0 %v3422_v14, %s4226_s19  ;;  %3331 = vrot.lane.b32.xlu1 %v3324_v3, %s4224_s21  ;;  %s4144_s21 = scalar_lea.hbm %s4143_s18, 112 }
 0x498   : > { %3403 = vrot.lane.b32.xlu2 %v6491_v52, %s4227_s27  ;;  %p4145_p12 = scmp.ne.s32.totalorder %s4143_s18, %s4144_s21 }
 0x49a   : > { %p4146_p13 = pnand %p4145_p12, %p4291_p4 }
 0x49c   : > { %p4147_p0 = pneg %p4146_p13 }
 0x49f   : > { %3405 = vrot.lane.b32.xlu0 %v6512_v59, %s4227_s27  ;;  %3407 = vrot.lane.b32.xlu1 %v3269_v27, %s4227_s27 }
 0x4a0   : > { %3409 = vrot.lane.b32.xlu2 %v3271_v37, %s4227_s27 }
 0x4a7   : > { %3381 = vrot.lane.b32.xlu0 %v3271_v37, %s4225_s23  ;;  %3430 = vrot.lane.b32.xlu1 %v3423_v8, %s4226_s19  ;;  %s4148_s19 = scalar_lea.hbm %s6717_s3, 224 }
 0x4a8   : > { %p4150_p2 = scmp.lt.s32.totalorder %s4148_s19, %s4144_s21 }
 0x4aa   : > { %p4151_p3 = por %p4150_p2, %p4149_p1 }
 0x4ac   : > { %p4152_p5 = pnand %p4151_p3, %p4147_p0 }
 0x4b2   : > { %v3343_v63 = vpop.permute.xlu2 %3342 }
 0x4b3   : > { %v3350_v7 = vrot.slane %v3343_v63, 4 }
 0x4b5   : > { %3354 = vrot.lane.b32.xlu2 %v3350_v7, %s4228_s28 }
 0x4ba   : > { %v3326_v62 = vpop.permute.xlu2 %3325 }
 0x4c2   : > { %v3296_v33 = vpop.permute.xlu2 %3295 }
 0x4c3   : > { %v3302_v21 = vrot.slane %v3296_v33, 4 }
 0x4c5   : > { %v3307_v58 = vsel %vm3305_vm13, %v3302_v21, %v3296_v33 }
 0x4c9   : > { %v3277_v52 = vpop.permute.xlu0 %3276  ;;  %v3294_v44 = vpop.permute.xlu1 %3293 }
 0x4ca   : > { %3289 = vst.msk [vmem:[%s5505_s29 + $0xc] sm:$0xf] %vm3288_vm1, %v3277_v52  ;;  %v3281_v56 = vpop.permute.xlu2 %3280  ;;  %v3301_v48 = vrot.slane %v3294_v44, 4 }
 0x4cb   : > { %3291 = vst.msk [vmem:[%s5505_s29 + $0x44] sm:$0xf] %vm3288_vm1, %v3281_v56 }
 0x4cc   : > { %v3306_v47 = vsel %vm3305_vm13, %v3301_v48, %v3294_v44 }
 0x4cd   : > { %3317 = vst.msk [vmem:[%s5505_s29 + $0xc] sm:$0xff] %vm6560_vm12, %v3306_v47 }
 0x4ce   : > { %3338 = vst.msk [vmem:[%s5505_s29 + $0x10] sm:$0xf] %vm3337_vm14, %v3326_v62 }
 0x4d1   : > { %v3453_v0 = vpop.permute.xlu0 %3452  ;;  %v3279_v42 = vpop.permute.xlu1 %3278 }
 0x4d2   : > { %v3460_v30 = vrot.slane %v3453_v0, 4  ;;  %v3457_v24 = vpop.permute.xlu2 %3456  ;;  %3290 = vst.msk [vmem:[%s5505_s29 + $0x28] sm:$0xf] %vm3288_vm1, %v3279_v42 }
 0x4d3   : > { %3318 = vst.msk [vmem:[%s5505_s29 + $0x28] sm:$0xff] %vm6560_vm12, %v3307_v58  ;;  %v3462_v9 = vrot.slane %v3457_v24, 4 }
 0x4d4   : > { %3464 = vrot.lane.b32.xlu0 %v3460_v30, %s4229_s30 }
 0x4d9   : > { %v3376_v13 = vpop.permute.xlu0 %3375  ;;  %v3425_v19 = vpop.permute.xlu1 %3424 }
 0x4da   : > { %v3380_v45 = vpop.permute.xlu2 %3379  ;;  %v3383_v6 = vrot.slane %v3376_v13, 4  ;;  %v3432_v40 = vrot.slane %v3425_v19, 4 }
 0x4db   : > { %v3385_v59 = vrot.slane %v3380_v45, 4 }
 0x4dc   : > { %v3388_v49 = vsel %vm3387_vm15, %v3383_v6, %v3376_v13  ;;  %v3437_v34 = vsel %vm3436_vm0, %v3432_v40, %v3425_v19 }
 0x4dd   : > { %v6580_v43 = vsel %vm3387_vm15, %v3385_v59, %v3380_v45 }
 0x4e1   : > { %v3345_v57 = vpop.permute.xlu0 %3344  ;;  %v3455_v26 = vpop.permute.xlu1 %3454 }
 0x4e2   : > { %v3351_v31 = vrot.slane %v3345_v57, 4  ;;  %v3349_v1 = vpop.permute.xlu2 %3348  ;;  %v3461_v25 = vrot.slane %v3455_v26, 4 }
 0x4e3   : > { %v3353_v51 = vrot.slane %v3349_v1, 4 }
 0x4e4   : > { %3356 = vrot.lane.b32.xlu0 %v3351_v31, %s4228_s28 }
 0x4e5   : > { %3360 = vrot.lane.b32.xlu2 %v3353_v51, %s4228_s28 }
 0x4e9   : > { %v3328_v38 = vpop.permute.xlu0 %3327  ;;  %v3378_v35 = vpop.permute.xlu1 %3377 }
 0x4ea   : > { %3339 = vst.msk [vmem:[%s5505_s29 + $0x2c] sm:$0xf] %vm3337_vm14, %v3328_v38  ;;  %v3427_v11 = vpop.permute.xlu2 %3426  ;;  %v3384_v10 = vrot.slane %v3378_v35, 4 }
 0x4eb   : > { %v3433_v54 = vrot.slane %v3427_v11, 4 }
 0x4ec   : > { %v6587_v17 = vsel %vm3387_vm15, %v3384_v10, %v3378_v35 }
 0x4ed   : > { %v6590_v12 = vsel %vm3436_vm0, %v3433_v54, %v3427_v11  ;;  %3468 = vrot.lane.b32.xlu2 %v3462_v9, %s4229_s30 }
 0x4f1   : > { %v3298_v36 = vpop.permute.xlu0 %3297  ;;  %v3347_v53 = vpop.permute.xlu1 %3346 }
 0x4f2   : > { %v3303_v18 = vrot.slane %v3298_v36, 4  ;;  %v3352_v20 = vrot.slane %v3347_v53, 4  ;;  %v3404_v46 = vpop.permute.xlu2 %3403 }
 0x4f4   : > { %v3308_v5 = vsel %vm3305_vm13, %v3303_v18, %v3298_v36  ;;  %3358 = vrot.lane.b32.xlu1 %v3352_v20, %s4228_s28 }
 0x4f5   : > { %3319 = vst.msk [vmem:[%s5505_s29 + $0x44] sm:$0xff] %vm6560_vm12, %v3308_v5 }
 0x4f9   : > { %v3283_v4 = vpop.permute.xlu0 %3282  ;;  %v3330_v55 = vpop.permute.xlu1 %3329 }
 0x4fa   : > { %3292 = vst.msk [vmem:[%s5505_s29 + $0x60] sm:$0xf] %vm3288_vm1, %v3283_v4  ;;  %v3410_v23 = vpop.permute.xlu2 %3409  ;;  %vm3476_vm1 = vcmask 519264  }
 0x4fb   : > { %3340 = vst.msk [vmem:[%s5505_s29 + $0x48] sm:$0xf] %vm3337_vm14, %v3330_v55 }
 0x4fc   : > { %3466 = vrot.lane.b32.xlu1 %v3461_v25, %s4229_s30 }
 0x501   : > { %v3459_v16 = vpop.permute.xlu0 %3458  ;;  %v3300_v15 = vpop.permute.xlu1 %3299 }
 0x502   : > { %v3463_v39 = vrot.slane %v3459_v16, 4  ;;  %v3304_v27 = vrot.slane %v3300_v15, 4 }
 0x504   : > { %v3309_v28 = vsel %vm3305_vm13, %v3304_v27, %v3300_v15  ;;  %3470 = vrot.lane.b32.xlu0 %v3463_v39, %s4229_s30 }
 0x505   : > { %3320 = vst.msk [vmem:[%s5505_s29 + $0x60] sm:$0xff] %vm6560_vm12, %v3309_v28 }
 0x509   : > { %v3332_v41 = vpop.permute.xlu1 %3331  ;;  %v3429_v37 = vpop.permute.xlu0 %3428 }
 0x50a   : > { %3341 = vst.msk [vmem:[%s5505_s29 + $0x64] sm:$0xf] %vm3337_vm14, %v3332_v41  ;;  %v3434_v44 = vrot.slane %v3429_v37, 4 }
 0x50c   : > { %v3439_v32 = vsel %vm3436_vm0, %v3434_v44, %v3429_v37 }
 0x50f   : > { %v3355_v29 = vpop.permute.xlu2 %3354 }
 0x510   : > { %3367 = vst.msk [vmem:[%s5505_s29 + $0x10] sm:$0xf] %vm3366_vm4, %v3355_v29 }
 0x511   : > { %3399 = vst.msk [vmem:[%s5505_s29 + $0x10] sm:$0xff] %vm6610_vm7, %v3388_v49  ;;  %v3406_v22 = vpop.permute.xlu0 %3405  ;;  %v3408_v60 = vpop.permute.xlu1 %3407 }
 0x512   : > { %3416 = vst.msk [vmem:[%s5505_s29 + $0x14] sm:$0xf] %vm3415_vm8, %v3404_v46 }
 0x513   : > { %3448 = vst.msk [vmem:[%s5505_s29 + $0x14] sm:$0xff] %vm6617_vm9, %v3437_v34 }
 0x519   : > { %v3382_v61 = vpop.permute.xlu0 %3381  ;;  %v3431_v14 = vpop.permute.xlu1 %3430 }
 0x51a   : > { %v3386_v3 = vrot.slane %v3382_v61, 4  ;;  %v3435_v8 = vrot.slane %v3431_v14, 4 }
 0x51c   : > { %v3391_v7 = vsel %vm3387_vm15, %v3386_v3, %v3382_v61  ;;  %v3440_v62 = vsel %vm3436_vm0, %v3435_v8, %v3431_v14 }
 0x53f   : > { %v3361_v63 = vpop.permute.xlu2 %3360 }
 0x540   : > { %3370 = vst.msk [vmem:[%s5505_s29 + $0x64] sm:$0xf] %vm3366_vm4, %v3361_v63 }
 0x541   : > { %3402 = vst.msk [vmem:[%s5505_s29 + $0x64] sm:$0xff] %vm6610_vm7, %v3391_v7 }
 0x542   : > { %3419 = vst.msk [vmem:[%s5505_s29 + $0x68] sm:$0xf] %vm3415_vm8, %v3410_v23 }
 0x543   : > { %3451 = vst.msk [vmem:[%s5505_s29 + $0x68] sm:$0xff] %vm6617_vm9, %v3440_v62 }
 0x546   : > { %v3465_v33 = vpop.permute.xlu0 %3464 }
 0x547   : > { %3477 = vst.msk [vmem:[%s5505_s29 + $0x18] sm:$0xf] %vm3476_vm1, %v3465_v33  ;;  %v3469_v48 = vpop.permute.xlu2 %3468 }
 0x556   : > { %v3357_v52 = vpop.permute.xlu0 %3356 }
 0x557   : > { %3368 = vst.msk [vmem:[%s5505_s29 + $0x2c] sm:$0xf] %vm3366_vm4, %v3357_v52 }
 0x558   : > { %3400 = vst.msk [vmem:[%s5505_s29 + $0x2c] sm:$0xff] %vm6610_vm7, %v6587_v17 }
 0x559   : > { %3417 = vst.msk [vmem:[%s5505_s29 + $0x30] sm:$0xf] %vm3415_vm8, %v3406_v22 }
 0x55a   : > { %3449 = vst.msk [vmem:[%s5505_s29 + $0x30] sm:$0xff] %vm6617_vm9, %v6590_v12 }
 0x566   : > { %v3359_v56 = vpop.permute.xlu1 %3358 }
 0x567   : > { %3369 = vst.msk [vmem:[%s5505_s29 + $0x48] sm:$0xf] %vm3366_vm4, %v3359_v56 }
 0x568   : > { %3401 = vst.msk [vmem:[%s5505_s29 + $0x48] sm:$0xff] %vm6610_vm7, %v6580_v43 }
 0x569   : > { %3418 = vst.msk [vmem:[%s5505_s29 + $0x4c] sm:$0xf] %vm3415_vm8, %v3408_v60 }
 0x56a   : > { %3450 = vst.msk [vmem:[%s5505_s29 + $0x4c] sm:$0xff] %vm6617_vm9, %v3439_v32 }
 0x56b   : > { %3479 = vst.msk [vmem:[%s5505_s29 + $0x50] sm:$0xf] %vm3476_vm1, %v3469_v48 }
 0x56e   : > { %v3467_v47 = vpop.permute.xlu1 %3466 }
 0x56f   : > { %3478 = vst.msk [vmem:[%s5505_s29 + $0x34] sm:$0xf] %vm3476_vm1, %v3467_v47 }
 0x576   : > { %v3471_v21 = vpop.permute.xlu0 %3470 }
 0x577   : > { %3480 = vst.msk [vmem:[%s5505_s29 + $0x6c] sm:$0xf] %vm3476_vm1, %v3471_v21 }
 0x578   : > { %4155 = shalt.err (!%p4152_p5)
}
 0x579   : > { %s4230_s26 = smov 448  }
 0x57a   : > { %3955 = dma.vmem_to_hbm [thread:$0]  (%p4291_p4), %s3497_s9, 1792, %s3499_s10, %s3482_s11, %s4230_s26, %s4230_s26, %s4220_s5  }
 0x57b PF: > { %p3961_p6 = scmp.ge.s32.totalorder %s4206_s17, 2  ;;  %s3513_s29 = sand.u32 1, %s4186_s12  }
 0x57c   : > { %s3514_s30 = scalar_lea.sflag [#allocation3], %s3513_s29 }
 0x57d   : > { %p3958_p7 = pnand %p3961_p6, %p4298_p8 }
 0x57f   : > { %p3959_p9 = pneg %p3958_p7 }
 0x581   : > { %4181 = dma.done.wait (%p3959_p9), %s3514_s30, 1792  }
 0x582   : > { %4183 = vsyncadd (%p3959_p9), %s3514_s30, 4294965504  ;;  %s16_s17 = sadd.s32 1, %s4206_s17   ;;  %s6862_s12 = smov %s4190_s13 }
 0x583   : > { %p13_p10 = scmp.ge.s32.totalorder %s16_s17, 4   ;;  %s6863_s13 = smov %s4194_s14 }
 0x584   : > { %s6864_s14 = smov %s4304_s25  ;;  %s6865_s15 = smov %s4202_s16 }
 0x585   : > { %s6866_s16 = smov %s6868_s20  ;;  %15 = sbr.rel (!%p13_p10) target bundleno = 4 (0x4), region = 69 }
 0x58a   :  { %3520 = vsyncpa [#allocation3], 1 }
 0x58b   :  { %3522 = vsyncpa [#allocation3 + $0x1], 1 }

</bundles_post_ra>
